<compile_context>
chip_gen: v5e
topology: v5e:2x2
jax: 0.10.0
libtpu: 0.0.40
codegen_flags: <defaults>
</compile_context>

<pallas_src>
import jax
import jax.numpy as jnp
from jax import lax
from jax.experimental import pallas as pl
from jax.experimental.pallas import tpu as pltpu


def _se_kernel(xpad_ref, x_ref, wband_ref, shift_ref, w1_ref, w2_ref, out_ref):
    # xpad_ref : (1, H+2, (W+2)*C) bf16   padded input, row-flattened
    # x_ref    : (1, H, W*C)       f32    original input (residual path)
    # wband_ref: (3, (W+2)*C, W*C) bf16   banded conv weights (BN scale folded)
    # shift_ref: (1, W*C)          f32    folded BN shift (conv bias included)
    # w1_ref   : (W*C, Cr)         f32    avg-pool folded into squeeze FC
    # w2_ref   : (Cr, W*C)         f32    excite FC, pre-tiled along W
    # out_ref  : (1, H, W*C)
    _, Hp, _ = xpad_ref.shape
    H = Hp - 2

    xp = xpad_ref[0]  # (H+2, (W+2)*C) bf16

    # 3x3 conv (with BN scale folded into the weights) as 3 banded MXU matmuls,
    # accumulated in registers (f32).
    acc = jnp.dot(xp[0:H, :], wband_ref[0],
                  preferred_element_type=jnp.float32)
    acc = acc + jnp.dot(xp[1:1 + H, :], wband_ref[1],
                        preferred_element_type=jnp.float32)
    acc = acc + jnp.dot(xp[2:2 + H, :], wband_ref[2],
                        preferred_element_type=jnp.float32)

    # Folded BN shift + ReLU.
    out = jnp.maximum(acc + shift_ref[...], 0.0)           # (H, W*C) f32

    # Squeeze: the 1/(H*W) average and the sum over W are folded into w1_ref;
    # only the sum over H is done here.
    s = jnp.sum(out, axis=0, keepdims=True)                 # (1, W*C)
    h1 = jnp.maximum(jnp.dot(s, w1_ref[...],
                             preferred_element_type=jnp.float32), 0.0)  # (1, Cr)
    # Excite: fc2 is pre-tiled along W -> gate is already lane-dense.
    gate = jax.nn.sigmoid(jnp.dot(h1, w2_ref[...],
                                  preferred_element_type=jnp.float32))  # (1, W*C)

    # Gate, residual add with the original input, final ReLU.
    res = jnp.maximum(out * gate + x_ref[0], 0.0)
    out_ref[...] = res[None, :, :].astype(out_ref.dtype)


@jax.jit
def se_layer(x_nhwc, wconv_hwio, conv_bias, bn_gamma, bn_beta, bn_mean, bn_var,
             fc1_w, fc2_w):
    """x_nhwc: (B, H, W, C) f32; wconv_hwio: (3, 3, Cin, Cout).  Returns (B, H, W, C)."""
    eps = 1e-5
    B, H, W, C = x_nhwc.shape
    Cr = fc1_w.shape[1]

    # --- Weight preprocessing (plain JAX glue, done once per call) -----------
    bn_scale = bn_gamma / jnp.sqrt(bn_var + eps)                       # (C,)
    bn_shift = (conv_bias - bn_mean) * bn_scale + bn_beta              # (C,)
    w_scaled = wconv_hwio * bn_scale                                   # (3,3,Cin,Cout)

    # Block-banded weights: wband[dh][(w+dw)*C + ci, w*C + co] = w_scaled[dh,dw,ci,co]
    eye = jnp.eye(W, dtype=w_scaled.dtype)
    bands = []
    for dh in range(3):
        b = jnp.zeros(((W + 2) * C, W * C), w_scaled.dtype)
        for dw in range(3):
            shift_mat = jnp.zeros((W + 2, W), w_scaled.dtype).at[dw:dw + W, :].set(eye)
            b = b + jnp.kron(shift_mat, w_scaled[dh, dw])
        bands.append(b)
    wband = jnp.stack(bands).astype(jnp.bfloat16)                      # (3,(W+2)C,W*C)

    shift_flat = jnp.tile(bn_shift, W)[None, :]                        # (1, W*C)
    w1_eff = jnp.tile(fc1_w, (W, 1)) / float(H * W)                    # (W*C, Cr)
    w2_eff = jnp.tile(fc2_w, (1, W))                                   # (Cr, W*C)

    # --- Activations in lane-dense layout ------------------------------------
    xpad = jnp.pad(x_nhwc, ((0, 0), (1, 1), (1, 1), (0, 0)))
    xpad = xpad.reshape(B, H + 2, (W + 2) * C).astype(jnp.bfloat16)
    x_flat = x_nhwc.reshape(B, H, W * C)

    grid_spec = pltpu.PrefetchScalarGridSpec(
        num_scalar_prefetch=0,
        grid=(B,),
        in_specs=[
            pl.BlockSpec((1, H + 2, (W + 2) * C), lambda b: (b, 0, 0)),
            pl.BlockSpec((1, H, W * C), lambda b: (b, 0, 0)),
            pl.BlockSpec((3, (W + 2) * C, W * C), lambda b: (0, 0, 0)),
            pl.BlockSpec((1, W * C), lambda b: (0, 0)),
            pl.BlockSpec((W * C, Cr), lambda b: (0, 0)),
            pl.BlockSpec((Cr, W * C), lambda b: (0, 0)),
        ],
        out_specs=pl.BlockSpec((1, H, W * C), lambda b: (b, 0, 0)),
    )

    out_flat = pl.pallas_call(
        _se_kernel,
        out_shape=jax.ShapeDtypeStruct((B, H, W * C), x_nhwc.dtype),
        grid_spec=grid_spec,
        compiler_params=pltpu.CompilerParams(
            dimension_semantics=("parallel",)),
    )(xpad, x_flat, wband, shift_flat, w1_eff, w2_eff)

    return out_flat.reshape(B, H, W, C)


def _reference(x_nhwc, w_hwio, conv_bias, gamma, beta, mean, var, fc1_w, fc2_w,
               eps=1e-5):
    """Pure-JAX reference (eval-mode BN)."""
    conv = lax.conv_general_dilated(
        x_nhwc, w_hwio, window_strides=(1, 1), padding="SAME",
        dimension_numbers=("NHWC", "HWIO", "NHWC")) + conv_bias
    bn = (conv - mean) / jnp.sqrt(var + eps) * gamma + beta
    out = jax.nn.relu(bn)
    w = out.mean(axis=(1, 2), keepdims=True)                            # (B,1,1,C)
    w = jax.nn.relu(jnp.einsum("bhwc,cr->bhwr", w, fc1_w))
    w = jax.nn.sigmoid(jnp.einsum("bhwr,rc->bhwc", w, fc2_w))
    return jax.nn.relu(out * w + x_nhwc)


if __name__ == "__main__":
    # Channel must be >= reduction so that channel // 16 >= 1.
    B, C, H, W = 2, 32, 16, 16
    reduction = 16
    Cr = C // reduction

    key = jax.random.PRNGKey(0)
    ks = jax.random.split(key, 9)

    # Input (PyTorch would be NCHW; we build NHWC directly for the kernel).
    x_nhwc = jax.random.normal(ks[0], (B, H, W, C), dtype=jnp.float32)

    # conv1 weight (PyTorch OIHW) -> HWIO; bias (C,).
    w_oihw = jax.random.normal(ks[1], (C, C, 3, 3), dtype=jnp.float32) * 0.05
    conv_bias = jax.random.normal(ks[2], (C,), dtype=jnp.float32) * 0.1
    w_hwio = jnp.transpose(w_oihw, (2, 3, 1, 0))                        # (3,3,Cin,Cout)

    # bn1 (eval-mode) parameters.
    gamma = 1.0 + 0.1 * jax.random.normal(ks[3], (C,), dtype=jnp.float32)
    beta = 0.1 * jax.random.normal(ks[4], (C,), dtype=jnp.float32)
    mean = 0.1 * jax.random.normal(ks[5], (C,), dtype=jnp.float32)
    var = jnp.abs(1.0 + 0.1 * jax.random.normal(ks[6], (C,), dtype=jnp.float32))

    # fc1: 1x1 conv C -> C//r (no bias); fc2: 1x1 conv C//r -> C (no bias).
    fc1_w = jax.random.normal(ks[7], (C, Cr), dtype=jnp.float32) * 0.1
    fc2_w = jax.random.normal(ks[8], (Cr, C), dtype=jnp.float32) * 0.1

    out = se_layer(x_nhwc, w_hwio, conv_bias, gamma, beta, mean, var, fc1_w, fc2_w)
    out = jax.block_until_ready(out)

    ref = _reference(x_nhwc, w_hwio, conv_bias, gamma, beta, mean, var, fc1_w, fc2_w)
    assert out.shape == (B, H, W, C)
    # bf16 MXU path -> loosened tolerance (f32 accumulation keeps error small).
    max_err = float(jnp.max(jnp.abs(out - ref)))
    assert jnp.allclose(out, ref, rtol=2e-2, atol=2e-2), (
        f"mismatch vs reference (max abs err {max_err})")

    print("KERNEL_OK")
</pallas_src>

<mosaic_0001>
module attributes {stable_mosaic.version = 11 : i64} {
  func.func @_se_kernel(%arg0: i32, %arg1: memref<1x18x576xbf16, #tpu.memory_space<vmem>>, %arg2: memref<1x16x512xf32, #tpu.memory_space<vmem>>, %arg3: memref<3x576x512xbf16, #tpu.memory_space<vmem>>, %arg4: memref<1x512xf32, #tpu.memory_space<vmem>>, %arg5: memref<512x2xf32, #tpu.memory_space<vmem>>, %arg6: memref<2x512xf32, #tpu.memory_space<vmem>>, %arg7: memref<1x16x512xf32, #tpu.memory_space<vmem>>) attributes {dimension_semantics = [#tpu.dimension_semantics<parallel>], iteration_bounds = array<i64: 2>, scalar_prefetch = 0 : i64, scratch_operands = 0 : i64, tpu.core_type = #tpu.core_type<tc>, window_params = [{transform_indices = @transform_0, window_bounds = array<i64: 1, 18, 576>}, {transform_indices = @transform_1, window_bounds = array<i64: 1, 16, 512>}, {pipeline_mode = #tpu.pipeline_mode<synchronous>, transform_indices = @transform_2, window_bounds = array<i64: 3, 576, 512>}, {pipeline_mode = #tpu.pipeline_mode<synchronous>, transform_indices = @transform_3, window_bounds = array<i64: 1, 512>}, {pipeline_mode = #tpu.pipeline_mode<synchronous>, transform_indices = @transform_4, window_bounds = array<i64: 512, 2>}, {pipeline_mode = #tpu.pipeline_mode<synchronous>, transform_indices = @transform_5, window_bounds = array<i64: 2, 512>}, {transform_indices = @transform_6, window_bounds = array<i64: 1, 16, 512>}]} {
    %c0 = arith.constant 0 : index
    %c0_0 = arith.constant 0 : index
    %c0_1 = arith.constant 0 : index
    %0 = vector.load %arg1[%c0, %c0_0, %c0_1] : memref<1x18x576xbf16, #tpu.memory_space<vmem>>, vector<1x18x576xbf16>
    %1 = vector.shape_cast %0 : vector<1x18x576xbf16> to vector<18x576xbf16>
    %2 = vector.extract_strided_slice %1 {offsets = [0, 0], sizes = [16, 576], strides = [1, 1]} : vector<18x576xbf16> to vector<16x576xbf16>
    %c0_2 = arith.constant 0 : index
    %c0_3 = arith.constant 0 : index
    %c0_4 = arith.constant 0 : index
    %3 = vector.load %arg3[%c0_2, %c0_3, %c0_4] : memref<3x576x512xbf16, #tpu.memory_space<vmem>>, vector<1x576x512xbf16>
    %4 = vector.shape_cast %3 : vector<1x576x512xbf16> to vector<576x512xbf16>
    %cst = arith.constant dense<0.000000e+00> : vector<16x512xf32>
    %5 = tpu.matmul %2, %4, %cst {dimension_numbers = #tpu.dot_dimension_numbers<[1], [0], [0], [1], [0, 0, 1, 1], [], []>} : vector<16x576xbf16>, vector<576x512xbf16>, vector<16x512xf32> -> vector<16x512xf32>
    %6 = vector.extract_strided_slice %1 {offsets = [1, 0], sizes = [16, 576], strides = [1, 1]} : vector<18x576xbf16> to vector<16x576xbf16>
    %c1 = arith.constant 1 : index
    %c0_5 = arith.constant 0 : index
    %c0_6 = arith.constant 0 : index
    %7 = vector.load %arg3[%c1, %c0_5, %c0_6] : memref<3x576x512xbf16, #tpu.memory_space<vmem>>, vector<1x576x512xbf16>
    %8 = vector.shape_cast %7 : vector<1x576x512xbf16> to vector<576x512xbf16>
    %cst_7 = arith.constant dense<0.000000e+00> : vector<16x512xf32>
    %9 = tpu.matmul %6, %8, %cst_7 {dimension_numbers = #tpu.dot_dimension_numbers<[1], [0], [0], [1], [0, 0, 1, 1], [], []>} : vector<16x576xbf16>, vector<576x512xbf16>, vector<16x512xf32> -> vector<16x512xf32>
    %10 = arith.addf %5, %9 : vector<16x512xf32>
    %11 = vector.extract_strided_slice %1 {offsets = [2, 0], sizes = [16, 576], strides = [1, 1]} : vector<18x576xbf16> to vector<16x576xbf16>
    %c2 = arith.constant 2 : index
    %c0_8 = arith.constant 0 : index
    %c0_9 = arith.constant 0 : index
    %12 = vector.load %arg3[%c2, %c0_8, %c0_9] : memref<3x576x512xbf16, #tpu.memory_space<vmem>>, vector<1x576x512xbf16>
    %13 = vector.shape_cast %12 : vector<1x576x512xbf16> to vector<576x512xbf16>
    %cst_10 = arith.constant dense<0.000000e+00> : vector<16x512xf32>
    %14 = tpu.matmul %11, %13, %cst_10 {dimension_numbers = #tpu.dot_dimension_numbers<[1], [0], [0], [1], [0, 0, 1, 1], [], []>} : vector<16x576xbf16>, vector<576x512xbf16>, vector<16x512xf32> -> vector<16x512xf32>
    %15 = arith.addf %10, %14 : vector<16x512xf32>
    %c0_11 = arith.constant 0 : index
    %c0_12 = arith.constant 0 : index
    %16 = vector.load %arg4[%c0_11, %c0_12] : memref<1x512xf32, #tpu.memory_space<vmem>>, vector<1x512xf32>
    %17 = vector.broadcast %16 : vector<1x512xf32> to vector<16x512xf32>
    %18 = arith.addf %15, %17 : vector<16x512xf32>
    %cst_13 = arith.constant 0.000000e+00 : f32
    %19 = vector.broadcast %cst_13 : f32 to vector<16x512xf32>
    %20 = arith.maximumf %18, %19 : vector<16x512xf32>
    %cst_14 = arith.constant dense<0.000000e+00> : vector<512xf32>
    %21 = vector.multi_reduction <add>, %20, %cst_14 [0] : vector<16x512xf32> to vector<512xf32>
    %22 = vector.shape_cast %21 : vector<512xf32> to vector<1x512xf32>
    %c0_15 = arith.constant 0 : index
    %c0_16 = arith.constant 0 : index
    %23 = vector.load %arg5[%c0_15, %c0_16] : memref<512x2xf32, #tpu.memory_space<vmem>>, vector<512x2xf32>
    %cst_17 = arith.constant dense<0.000000e+00> : vector<1x2xf32>
    %24 = tpu.matmul %22, %23, %cst_17 {dimension_numbers = #tpu.dot_dimension_numbers<[1], [0], [0], [1], [0, 0, 1, 1], [], []>} : vector<1x512xf32>, vector<512x2xf32>, vector<1x2xf32> -> vector<1x2xf32>
    %cst_18 = arith.constant 0.000000e+00 : f32
    %25 = vector.broadcast %cst_18 : f32 to vector<1x2xf32>
    %26 = arith.maximumf %24, %25 : vector<1x2xf32>
    %c0_19 = arith.constant 0 : index
    %c0_20 = arith.constant 0 : index
    %27 = vector.load %arg6[%c0_19, %c0_20] : memref<2x512xf32, #tpu.memory_space<vmem>>, vector<2x512xf32>
    %cst_21 = arith.constant dense<0.000000e+00> : vector<1x512xf32>
    %28 = tpu.matmul %26, %27, %cst_21 {dimension_numbers = #tpu.dot_dimension_numbers<[1], [0], [0], [1], [0, 0, 1, 1], [], []>} : vector<1x2xf32>, vector<2x512xf32>, vector<1x512xf32> -> vector<1x512xf32>
    %29 = arith.negf %28 : vector<1x512xf32>
    %30 = math.exp %29 : vector<1x512xf32>
    %cst_22 = arith.constant 1.000000e+00 : f32
    %31 = vector.broadcast %cst_22 : f32 to vector<1x512xf32>
    %32 = arith.addf %31, %30 : vector<1x512xf32>
    %33 = arith.divf %31, %32 : vector<1x512xf32>
    %34 = vector.broadcast %33 : vector<1x512xf32> to vector<16x512xf32>
    %35 = arith.mulf %20, %34 : vector<16x512xf32>
    %c0_23 = arith.constant 0 : index
    %c0_24 = arith.constant 0 : index
    %c0_25 = arith.constant 0 : index
    %36 = vector.load %arg2[%c0_23, %c0_24, %c0_25] : memref<1x16x512xf32, #tpu.memory_space<vmem>>, vector<1x16x512xf32>
    %37 = vector.shape_cast %36 : vector<1x16x512xf32> to vector<16x512xf32>
    %38 = arith.addf %35, %37 : vector<16x512xf32>
    %cst_26 = arith.constant 0.000000e+00 : f32
    %39 = vector.broadcast %cst_26 : f32 to vector<16x512xf32>
    %40 = arith.maximumf %38, %39 : vector<16x512xf32>
    %41 = vector.shape_cast %40 : vector<16x512xf32> to vector<1x16x512xf32>
    %c0_27 = arith.constant 0 : index
    %c0_28 = arith.constant 0 : index
    %c0_29 = arith.constant 0 : index
    %42 = vector.load %arg7[%c0_27, %c0_28, %c0_29] : memref<1x16x512xf32, #tpu.memory_space<vmem>>, vector<1x16x512xf32>
    tpu.vector_store %arg7[%c0_27, %c0_28, %c0_29], %41 {strides = array<i32>} : memref<1x16x512xf32, #tpu.memory_space<vmem>>, vector<1x16x512xf32>,
    return
  }
  func.func @transform_0(%arg0: i32) -> (i32, i32, i32) {
    %c0_i32 = arith.constant 0 : i32
    %c0_i32_0 = arith.constant 0 : i32
    %c0_i32_1 = arith.constant 0 : i32
    return %arg0, %c0_i32, %c0_i32_0 : i32, i32, i32
  }
  func.func @transform_1(%arg0: i32) -> (i32, i32, i32) {
    %c0_i32 = arith.constant 0 : i32
    %c0_i32_0 = arith.constant 0 : i32
    %c0_i32_1 = arith.constant 0 : i32
    return %arg0, %c0_i32, %c0_i32_0 : i32, i32, i32
  }
  func.func @transform_2(%arg0: i32) -> (i32, i32, i32) {
    %c0_i32 = arith.constant 0 : i32
    %c0_i32_0 = arith.constant 0 : i32
    %c0_i32_1 = arith.constant 0 : i32
    %c0_i32_2 = arith.constant 0 : i32
    return %c0_i32, %c0_i32_0, %c0_i32_1 : i32, i32, i32
  }
  func.func @transform_3(%arg0: i32) -> (i32, i32) {
    %c0_i32 = arith.constant 0 : i32
    %c0_i32_0 = arith.constant 0 : i32
    %c0_i32_1 = arith.constant 0 : i32
    return %c0_i32, %c0_i32_0 : i32, i32
  }
  func.func @transform_4(%arg0: i32) -> (i32, i32) {
    %c0_i32 = arith.constant 0 : i32
    %c0_i32_0 = arith.constant 0 : i32
    %c0_i32_1 = arith.constant 0 : i32
    return %c0_i32, %c0_i32_0 : i32, i32
  }
  func.func @transform_5(%arg0: i32) -> (i32, i32) {
    %c0_i32 = arith.constant 0 : i32
    %c0_i32_0 = arith.constant 0 : i32
    %c0_i32_1 = arith.constant 0 : i32
    return %c0_i32, %c0_i32_0 : i32, i32
  }
  func.func @transform_6(%arg0: i32) -> (i32, i32, i32) {
    %c0_i32 = arith.constant 0 : i32
    %c0_i32_0 = arith.constant 0 : i32
    %c0_i32_1 = arith.constant 0 : i32
    return %arg0, %c0_i32, %c0_i32_0 : i32, i32, i32
  }
}

</mosaic_0001>

<bundles_post_ra>
// kernel: tile.18
= control target key start
LH: loop header
LB: loop body
LE: loop exit
PB: predicated region body
PF: predicated region fallthrough
CT: control target
= control target key end

     0   :  { %s28_s0 = inlined_call_operand.vmem [shape: f32[32], index: 0, kind: input, shape index: {}]   ;;  %s29_s1 = inlined_call_operand.vmem [shape: f32[16,32], index: 1, kind: output, shape index: {}]  }
   0x1   :  { %v4_v0 = vld [vmem:[%s28_s0] ss:$0 sm:$0xff] }
   0x2   :  { %5 = vst [vmem:[%s29_s1] sm:$0xff] %v4_v0 }
   0x3   :  { %8 = vst [vmem:[%s29_s1 + $0x8] sm:$0xff] %v4_v0 }

// kernel: tile.19
= control target key start
LH: loop header
LB: loop body
LE: loop exit
PB: predicated region body
PF: predicated region fallthrough
CT: control target
= control target key end

     0   :  { %s56_s8 = smov 96   ;;  %s57_s11 = smov 32   ;;  %vm3_vm0 = vcmask 261120   ;;  %vm9_vm1 = vcmask 1048320   ;;  %vm15_vm2 = vcmask 785920   ;;  %vm21_vm3 = vcmask 523520   ;;  %s93_s0 = inlined_call_operand.vmem [shape: f32[16,32], index: 0, kind: input, shape index: {}]   ;;  %s94_s1 = inlined_call_operand.vmem [shape: f32[1,512], index: 1, kind: output, shape index: {}]  }
   0x1   :  { %v47_v0 = vld [vmem:[%s93_s0 + $0x3] ss:$4 sm:$0xf]   ;;  %v49_v1 = vld [vmem:[%s93_s0 + $0x1] ss:$4 sm:$0xf]  }
   0x2   :  { %7 = vrot.lane.b32.xlu0 %v47_v0, %s56_s8  ;;  %19 = vrot.lane.b32.xlu1 %v49_v1, %s57_s11  ;;  %v48_v2 = vld [vmem:[%s93_s0 + $0x2] ss:$4 sm:$0xf]   ;;  %s58_s14 = smov 64  }
   0x3   :  { %v2_v3 = vld [vmem:[%s93_s0] ss:$4 sm:$0xf]  }
   0x4   :  { %4 = vst.msk [vmem:[#allocation0] ss:$8 sm:$0xf] %vm3_vm0, %v2_v3  }
   0xa   :  { %13 = vrot.lane.b32.xlu0 %v48_v2, %s58_s14 }
  0x74   :  { %v8_v4 = vpop.permute.xlu0 %7   ;;  %v20_v5 = vpop.permute.xlu1 %19  }
  0x75   :  { %10 = vst.msk [vmem:[#allocation0] ss:$8 sm:$0xf] %vm9_vm1, %v8_v4  }
  0x7c   :  { %v14_v6 = vpop.permute.xlu0 %13  }
  0x7d   :  { %16 = vst.msk [vmem:[#allocation0] ss:$8 sm:$0xf] %vm15_vm2, %v14_v6  }
  0x7e   :  { %22 = vst.msk [vmem:[#allocation0] ss:$8 sm:$0xf] %vm21_vm3, %v20_v5  }
  0x85   :  { %v25_v7 = vld [vmem:[#allocation0] sm:$0x1]  ;;  %v30_v8 = vld [vmem:[#allocation0 + $0x8] sm:$0x1]  ;;  %v36_v9 = vld [vmem:[#allocation0 + $0x10] sm:$0x1] }
  0x86   :  { %28 = vst [vmem:[%s94_s1] sm:$0x1] %v25_v7  ;;  %v42_v10 = vld [vmem:[#allocation0 + $0x18] sm:$0x1] }
  0x87   :  { %50 = vst [vmem:[%s94_s1 + $0x1] sm:$0x1] %v30_v8 }
  0x88   :  { %51 = vst [vmem:[%s94_s1 + $0x2] sm:$0x1] %v36_v9 }
  0x89   :  { %52 = vst [vmem:[%s94_s1 + $0x3] sm:$0x1] %v42_v10 }

// kernel: tile.29
= control target key start
LH: loop header
LB: loop body
LE: loop exit
PB: predicated region body
PF: predicated region fallthrough
CT: control target
= control target key end

     0   :  { %s8_s6 = smov 3  ;;  %s11_s7 = smov 12  ;;  %vm13_vm0 = vcmask 1043458   ;;  %vm18_vm1 = vcmask 1045508   ;;  %vm23_vm2 = vcmask 1047558   ;;  %vm3_vm3 = vcmask 261120   ;;  %s206_s0 = inlined_call_operand.vmem [shape: f32[2,16,32], index: 0, kind: input, shape index: {}]   ;;  %s207_s1 = inlined_call_operand.vmem [shape: f32[2,512], index: 1, kind: output, shape index: {}]  }
   0x1   :  { %v115_v0 = vld [vmem:[%s206_s0 + $0x3] ss:$16 sm:%s8_s6]   ;;  %v116_v1 = vld [vmem:[%s206_s0 - $0x19] ss:$16 sm:%s11_s7]   ;;  %s16_s12 = smov 48  ;;  %s21_s13 = smov 192 }
   0x2   :  { %v14_v2 = vsel %vm13_vm0, %v116_v1, %v115_v0  ;;  %v117_v3 = vld [vmem:[%s206_s0 - $0x35] ss:$16 sm:%s16_s12]   ;;  %v118_v4 = vld [vmem:[%s206_s0 - $0x51] ss:$16 sm:%s21_s13]   ;;  %s36_s18 = smov 3  ;;  %s39_s21 = smov 12 }
   0x3   :  { %v19_v5 = vsel %vm18_vm1, %v117_v3, %v14_v2  ;;  %v119_v6 = vld [vmem:[%s206_s0 + $0x2] ss:$16 sm:%s36_s18]   ;;  %s44_s22 = smov 48  ;;  %v120_v8 = vld [vmem:[%s206_s0 - $0x1a] ss:$16 sm:%s39_s21]   ;;  %s49_s27 = smov 192 }
   0x4   :  { %v24_v7 = vsel %vm23_vm2, %v118_v4, %v19_v5  ;;  %v121_v9 = vld [vmem:[%s206_s0 - $0x36] ss:$16 sm:%s44_s22]   ;;  %s133_s28 = smov 96   ;;  %v42_v10 = vsel %vm13_vm0, %v120_v8, %v119_v6  ;;  %v122_v11 = vld [vmem:[%s206_s0 - $0x52] ss:$16 sm:%s49_s27]   ;;  %s64_s2 = smov 3 }
   0x5   :  { %25 = vrot.lane.b32.xlu0 %v24_v7, %s133_s28  ;;  %s67_s3 = smov 12  ;;  %v123_v12 = vld [vmem:[%s206_s0 + $0x1] ss:$16 sm:%s64_s2]   ;;  %s72_s8 = smov 48  ;;  %v47_v14 = vsel %vm18_vm1, %v121_v9, %v42_v10  ;;  %v2_v21 = vld [vmem:[%s206_s0] ss:$4 sm:$0xff]  }
   0x6   :  { %v124_v13 = vld [vmem:[%s206_s0 - $0x1b] ss:$16 sm:%s67_s3]   ;;  %s77_s9 = smov 192  ;;  %v125_v16 = vld [vmem:[%s206_s0 - $0x37] ss:$16 sm:%s72_s8]   ;;  %v52_v20 = vsel %vm23_vm2, %v122_v11, %v47_v14  ;;  %s134_s14 = smov 32  }
   0x7   :  { %v70_v15 = vsel %vm13_vm0, %v124_v13, %v123_v12  ;;  %v126_v17 = vld [vmem:[%s206_s0 - $0x53] ss:$16 sm:%s77_s9]   ;;  %s135_s15 = smov 64   ;;  %4 = vst.msk [vmem:[#allocation0] ss:$8 sm:$0xf] %vm3_vm3, %v2_v21  }
   0x8   :  { %v75_v18 = vsel %vm18_vm1, %v125_v16, %v70_v15  ;;  %6 = vst.msk [vmem:[#allocation0 - $0x1f] ss:$8 sm:$0xf0] %vm3_vm3, %v2_v21   ;;  %vm27_vm4 = vcmask 1048320   ;;  %vm55_vm5 = vcmask 785920   ;;  %vm83_vm6 = vcmask 523520  }
   0x9   :  { %v80_v19 = vsel %vm23_vm2, %v126_v17, %v75_v18 }
   0xa   :  { %81 = vrot.lane.b32.xlu1 %v80_v19, %s134_s14 }
   0xd   :  { %53 = vrot.lane.b32.xlu0 %v52_v20, %s135_s15 }
  0x77   :  { %v26_v22 = vpop.permute.xlu0 %25  }
  0x78   :  { %28 = vst.msk [vmem:[#allocation0] sm:$0x3] %vm27_vm4, %v26_v22  }
  0x79   :  { %30 = vst.msk [vmem:[#allocation0 + $0x6] sm:$0xc] %vm27_vm4, %v26_v22  }
  0x7a   :  { %32 = vst.msk [vmem:[#allocation0 + $0xc] sm:$0x30] %vm27_vm4, %v26_v22  }
  0x7b   :  { %34 = vst.msk [vmem:[#allocation0 + $0x12] sm:$0xc0] %vm27_vm4, %v26_v22  }
  0x7c   :  { %v82_v23 = vpop.permute.xlu1 %81  }
  0x7f   :  { %v54_v24 = vpop.permute.xlu0 %53  }
  0x80   :  { %56 = vst.msk [vmem:[#allocation0] sm:$0x3] %vm55_vm5, %v54_v24  }
  0x81   :  { %58 = vst.msk [vmem:[#allocation0 + $0x6] sm:$0xc] %vm55_vm5, %v54_v24  }
  0x82   :  { %60 = vst.msk [vmem:[#allocation0 + $0xc] sm:$0x30] %vm55_vm5, %v54_v24  }
  0x83   :  { %62 = vst.msk [vmem:[#allocation0 + $0x12] sm:$0xc0] %vm55_vm5, %v54_v24  }
  0x84   :  { %84 = vst.msk [vmem:[#allocation0] sm:$0x3] %vm83_vm6, %v82_v23  }
  0x85   :  { %86 = vst.msk [vmem:[#allocation0 + $0x6] sm:$0xc] %vm83_vm6, %v82_v23  }
  0x86   :  { %88 = vst.msk [vmem:[#allocation0 + $0xc] sm:$0x30] %vm83_vm6, %v82_v23  }
  0x87   :  { %90 = vst.msk [vmem:[#allocation0 + $0x12] sm:$0xc0] %vm83_vm6, %v82_v23  }
  0x8b   :  { %v93_v25 = vld [vmem:[#allocation0] sm:$0x3] }
  0x8c   :  { %96 = vst [vmem:[%s207_s1] sm:$0x3] %v93_v25  ;;  %v98_v26 = vld [vmem:[#allocation0 + $0x8] sm:$0x3] }
  0x8d   :  { %127 = vst [vmem:[%s207_s1 + $0x2] sm:$0x3] %v98_v26  ;;  %v104_v27 = vld [vmem:[#allocation0 + $0x10] sm:$0x3] }
  0x8e   :  { %128 = vst [vmem:[%s207_s1 + $0x4] sm:$0x3] %v104_v27  ;;  %v110_v28 = vld [vmem:[#allocation0 + $0x18] sm:$0x3] }
  0x8f   :  { %129 = vst [vmem:[%s207_s1 + $0x6] sm:$0x3] %v110_v28 }

// kernel: se_layer.1
= control target key start
LH: loop header
LB: loop body
LE: loop exit
PB: predicated region body
PF: predicated region fallthrough
CT: control target
= control target key end

     0   :  { %s6921_s21 = smov 0   ;;  %s10202_s0 = inlined_call_operand.vmem [shape: bf16[2,18,576], index: 0, kind: input, shape index: {}]   ;;  %s10203_s1 = inlined_call_operand.vmem [shape: f32[2,16,512], index: 1, kind: input, shape index: {}]   ;;  %s10204_s2 = inlined_call_operand.vmem [shape: bf16[3,576,512], index: 2, kind: input, shape index: {}]   ;;  %s10205_s3 = inlined_call_operand.vmem [shape: f32[1,512], index: 3, kind: input, shape index: {}]   ;;  %s10206_s4 = inlined_call_operand.vmem [shape: f32[512,2], index: 4, kind: input, shape index: {}]   ;;  %s10207_s5 = inlined_call_operand.vmem [shape: f32[2,512], index: 5, kind: input, shape index: {}]   ;;  %s10208_s6 = inlined_call_operand.vmem [shape: f32[2,16,512], index: 6, kind: output, shape index: {}]  }
   0x1 LB: > { %s4342_s22 = sadd.s32 4294967295, %s6884_s21   ;;  %p4346_p0 = scmp.ge.s32.totalorder %s6884_s21, 1  ;;  %s6884_s21 = sphi %s6921_s21, %s16_s21  }
   0x2   : > { %p222_p1 = scmp.lt.s32.totalorder %s6884_s21, 3 }
   0x4   : > { %p223_p2 = pnand %p4346_p0, %p222_p1 }
   0x5   : > { %p257_p3 = scmp.lt.s32.totalorder (!%p223_p2), %s4342_s22, 1 }
   0x6   : > { %226 = sbr.rel (%p223_p2) target bundleno = 921 (0x399), region = 44 }
   0xb   : > { %v4630_v0 = vld [vmem:[%s10204_s2 + $0x560] sm:$0xf]  ;;  %v6595_v1 = vld [vmem:[%s10204_s2 + $0x56c] sm:$0xf0]  ;;  %s10214_s22 = smov (!%p257_p3, %s4342_s22), 1  ;;  %vm1390_vm1 = vcmask 523264  }
   0xc   : > { %v4758_v2 = vld [vmem:[%s10204_s2 + $0x660] sm:$0xf]  ;;  %v4631_v3 = vor.u32 %v6595_v1, %v4630_v0  ;;  %v6627_v4 = vld [vmem:[%s10204_s2 + $0x66c] sm:$0xf0]  ;;  %s6853_s7 = smul.u32 60, %s10214_s22  ;;  %vm2825_vm2 = vcmask 1046528  }
   0xd   : > { %v4886_v5 = vld [vmem:[%s10204_s2 + $0x760] sm:$0xf]  ;;  %v6659_v6 = vld [vmem:[%s10204_s2 + $0x76c] sm:$0xf0]  ;;  %v4759_v7 = vor.u32 %v6627_v4, %v4758_v2  ;;  %vm605_vm0 = vsmask.f32 7424 }
   0xe   : > { %v4887_v8 = vor.u32 %v6659_v6, %v4886_v5  ;;  %v5014_v9 = vld [vmem:[%s10204_s2 + $0x860] sm:$0xf]  ;;  %v6691_v10 = vld [vmem:[%s10204_s2 + $0x86c] sm:$0xf0]  ;;  %1394 = vmatpush.bf16.msra.mxu0 %v4631_v3  ;;  %s7255_s20 = scalar_lea.vmem %s10202_s0, %s6853_s7  ;;  %vm4066_vm3 = vcmask 1041408   ;;  %vm4062_vm4 = vcmask 15360  }
   0xf   : > { %v4614_v11 = vld [vmem:[%s10204_s2 + $0x540] sm:$0xf]  ;;  %v5015_v12 = vor.u32 %v6691_v10, %v5014_v9  ;;  %v6591_v13 = vld [vmem:[%s10204_s2 + $0x54c] sm:$0xf0]  ;;  %1408 = vmatpush.bf16.msra.mxu1 %v4759_v7  ;;  %s6414_s15 = sshll.u32 %s10214_s22, 6 }
  0x10   : > { %v4742_v14 = vld [vmem:[%s10204_s2 + $0x640] sm:$0xf]  ;;  %v6623_v15 = vld [vmem:[%s10204_s2 + $0x64c] sm:$0xf0]  ;;  %1422 = vmatpush.bf16.msra.mxu2 %v4887_v8  ;;  %v4615_v16 = vor.u32 %v6591_v13, %v4614_v11  ;;  %s10134_s18 = scalar_lea.vmem %s10203_s1, %s6414_s15  ;;  %s10170_s24 = scalar_lea.vmem %s10208_s6, %s6414_s15 }
  0x11   : > { %v4743_v17 = vor.u32 %v6623_v15, %v4742_v14  ;;  %v4870_v18 = vld [vmem:[%s10204_s2 + $0x740] sm:$0xf]  ;;  %v6655_v19 = vld [vmem:[%s10204_s2 + $0x74c] sm:$0xf0]  ;;  %1436 = vmatpush.bf16.msra.mxu3 %v5015_v12 }
  0x12   : > { %v4998_v20 = vld [vmem:[%s10204_s2 + $0x840] sm:$0xf]  ;;  %v4871_v21 = vor.u32 %v6655_v19, %v4870_v18  ;;  %v6687_v22 = vld [vmem:[%s10204_s2 + $0x84c] sm:$0xf0]  ;;  %1395 = vmatpush.bf16.msra.mxu0 %v4615_v16 }
  0x13   : > { %v4598_v23 = vld [vmem:[%s10204_s2 + $0x520] sm:$0xf]  ;;  %v6587_v24 = vld [vmem:[%s10204_s2 + $0x52c] sm:$0xf0]  ;;  %v4999_v25 = vor.u32 %v6687_v22, %v4998_v20  ;;  %1409 = vmatpush.bf16.msra.mxu1 %v4743_v17 }
  0x14   : > { %v4726_v26 = vld [vmem:[%s10204_s2 + $0x620] sm:$0xf]  ;;  %v6619_v27 = vld [vmem:[%s10204_s2 + $0x62c] sm:$0xf0]  ;;  %v4599_v29 = vor.u32 %v6587_v24, %v4598_v23  ;;  %1423 = vmatpush.bf16.msra.mxu2 %v4871_v21 }
  0x15   : > { %v4854_v28 = vld [vmem:[%s10204_s2 + $0x720] sm:$0xf]  ;;  %v6651_v30 = vld [vmem:[%s10204_s2 + $0x72c] sm:$0xf0]  ;;  %v4727_v33 = vor.u32 %v6619_v27, %v4726_v26  ;;  %1437 = vmatpush.bf16.msra.mxu3 %v4999_v25 }
  0x16   : > { %v4982_v31 = vld [vmem:[%s10204_s2 + $0x820] sm:$0xf]  ;;  %v6683_v32 = vld [vmem:[%s10204_s2 + $0x82c] sm:$0xf0]  ;;  %v4855_v34 = vor.u32 %v6651_v30, %v4854_v28  ;;  %1396 = vmatpush.bf16.msra.mxu0 %v4599_v29  ;;  %v7138_v29 = vld [vmem:[%s10204_s2 + $0x564] sm:$0xf] }
  0x17   : > { %v4582_v35 = vld [vmem:[%s10204_s2 + $0x500] sm:$0xf]  ;;  %v6583_v36 = vld [vmem:[%s10204_s2 + $0x50c] sm:$0xf0]  ;;  %v4983_v38 = vor.u32 %v6683_v32, %v4982_v31  ;;  %1410 = vmatpush.bf16.msra.mxu1 %v4727_v33  ;;  %v7143_v30 = vld [vmem:[%s10204_s2 + $0x570] sm:$0xf0] }
  0x18   : > { %v4710_v37 = vld [vmem:[%s10204_s2 + $0x600] sm:$0xf]  ;;  %v6615_v39 = vld [vmem:[%s10204_s2 + $0x60c] sm:$0xf0]  ;;  %v4583_v44 = vor.u32 %v6583_v36, %v4582_v35  ;;  %1424 = vmatpush.bf16.msra.mxu2 %v4855_v34  ;;  %v7148_v31 = vld [vmem:[%s10204_s2 + $0x664] sm:$0xf] }
  0x19   : > { %v4838_v40 = vld [vmem:[%s10204_s2 + $0x700] sm:$0xf]  ;;  %v6647_v41 = vld [vmem:[%s10204_s2 + $0x70c] sm:$0xf0]  ;;  %v4711_v45 = vor.u32 %v6615_v39, %v4710_v37  ;;  %1438 = vmatpush.bf16.msra.mxu3 %v4983_v38  ;;  %v7153_v32 = vld [vmem:[%s10204_s2 + $0x670] sm:$0xf0] }
  0x1a   : > { %v4966_v42 = vld [vmem:[%s10204_s2 + $0x800] sm:$0xf]  ;;  %v6679_v43 = vld [vmem:[%s10204_s2 + $0x80c] sm:$0xf0]  ;;  %v4839_v46 = vor.u32 %v6647_v41, %v4838_v40  ;;  %1397 = vmatpush.bf16.msra.mxu0 %v4583_v44  ;;  %v7160_v34 = vld [vmem:[%s10204_s2 + $0x764] sm:$0xf] }
  0x1b   : > { %v4566_v47 = vld [vmem:[%s10204_s2 + $0x4e0] sm:$0xf]  ;;  %v6579_v48 = vld [vmem:[%s10204_s2 + $0x4ec] sm:$0xf0]  ;;  %v4967_v50 = vor.u32 %v6679_v43, %v4966_v42  ;;  %1411 = vmatpush.bf16.msra.mxu1 %v4711_v45  ;;  %v7165_v35 = vld [vmem:[%s10204_s2 + $0x770] sm:$0xf0] }
  0x1c   : > { %v4694_v49 = vld [vmem:[%s10204_s2 + $0x5e0] sm:$0xf]  ;;  %v6611_v51 = vld [vmem:[%s10204_s2 + $0x5ec] sm:$0xf0]  ;;  %v4567_v56 = vor.u32 %v6579_v48, %v4566_v47  ;;  %1425 = vmatpush.bf16.msra.mxu2 %v4839_v46  ;;  %v7180_v38 = vld [vmem:[%s10204_s2 + $0x544] sm:$0xf] }
  0x1d   : > { %v4822_v52 = vld [vmem:[%s10204_s2 + $0x6e0] sm:$0xf]  ;;  %v6643_v53 = vld [vmem:[%s10204_s2 + $0x6ec] sm:$0xf0]  ;;  %v4695_v57 = vor.u32 %v6611_v51, %v4694_v49  ;;  %1439 = vmatpush.bf16.msra.mxu3 %v4967_v50  ;;  %v7185_v39 = vld [vmem:[%s10204_s2 + $0x550] sm:$0xf0] }
  0x1e   : > { %v4950_v54 = vld [vmem:[%s10204_s2 + $0x7e0] sm:$0xf]  ;;  %v6675_v55 = vld [vmem:[%s10204_s2 + $0x7ec] sm:$0xf0]  ;;  %v4823_v58 = vor.u32 %v6643_v53, %v4822_v52  ;;  %1398 = vmatpush.bf16.msra.mxu0 %v4567_v56  ;;  %v7194_v40 = vld [vmem:[%s10204_s2 + $0x644] sm:$0xf]  ;;  %v4635_v52 = vor.u32 %v7138_v29, %v7143_v30  ;;  %v4763_v53 = vor.u32 %v7148_v31, %v7153_v32 }
  0x1f   : > { %v4550_v59 = vld [vmem:[%s10204_s2 + $0x4c0] sm:$0xf]  ;;  %v6575_v60 = vld [vmem:[%s10204_s2 + $0x4cc] sm:$0xf0]  ;;  %v4951_v62 = vor.u32 %v6675_v55, %v4950_v54  ;;  %1412 = vmatpush.bf16.msra.mxu1 %v4695_v57  ;;  %v7199_v41 = vld [vmem:[%s10204_s2 + $0x650] sm:$0xf0]  ;;  %v4891_v57 = vor.u32 %v7160_v34, %v7165_v35 }
  0x20   : > { %v4678_v61 = vld [vmem:[%s10204_s2 + $0x5c0] sm:$0xf]  ;;  %v6607_v63 = vld [vmem:[%s10204_s2 + $0x5cc] sm:$0xf0]  ;;  %v4551_v4 = vor.u32 %v6575_v60, %v4550_v59  ;;  %1426 = vmatpush.bf16.msra.mxu2 %v4823_v58  ;;  %v7204_v43 = vld [vmem:[%s10204_s2 + $0x744] sm:$0xf]  ;;  %v4619_v59 = vor.u32 %v7180_v38, %v7185_v39 }
  0x21   : > { %v4806_v0 = vld [vmem:[%s10204_s2 + $0x6c0] sm:$0xf]  ;;  %v6639_v1 = vld [vmem:[%s10204_s2 + $0x6cc] sm:$0xf0]  ;;  %v4679_v6 = vor.u32 %v6607_v63, %v4678_v61  ;;  %1440 = vmatpush.bf16.msra.mxu3 %v4951_v62  ;;  %v7209_v44 = vld [vmem:[%s10204_s2 + $0x750] sm:$0xf0] }
  0x22   : > { %v4934_v2 = vld [vmem:[%s10204_s2 + $0x7c0] sm:$0xf]  ;;  %v6671_v3 = vld [vmem:[%s10204_s2 + $0x7cc] sm:$0xf0]  ;;  %v4807_v7 = vor.u32 %v6639_v1, %v4806_v0  ;;  %1399 = vmatpush.bf16.msra.mxu0 %v4551_v4  ;;  %v7226_v49 = vld [vmem:[%s10204_s2 + $0x524] sm:$0xf]  ;;  %v4747_v1 = vor.u32 %v7194_v40, %v7199_v41 }
  0x23   : > { %v4534_v5 = vld [vmem:[%s10204_s2 + $0x4a0] sm:$0xf]  ;;  %v6571_v8 = vld [vmem:[%s10204_s2 + $0x4ac] sm:$0xf0]  ;;  %v4935_v11 = vor.u32 %v6671_v3, %v4934_v2  ;;  %1413 = vmatpush.bf16.msra.mxu1 %v4679_v6  ;;  %v7238_v54 = vld [vmem:[%s10204_s2 + $0x530] sm:$0xf0]  ;;  %v4875_v2 = vor.u32 %v7204_v43, %v7209_v44 }
  0x24   : > { %v4662_v9 = vld [vmem:[%s10204_s2 + $0x5a0] sm:$0xf]  ;;  %v6603_v10 = vld [vmem:[%s10204_s2 + $0x5ac] sm:$0xf0]  ;;  %v4535_v18 = vor.u32 %v6571_v8, %v4534_v5  ;;  %1427 = vmatpush.bf16.msra.mxu2 %v4807_v7  ;;  %v7243_v55 = vld [vmem:[%s10204_s2 + $0x624] sm:$0xf]  ;;  %v4603_v4 = vor.u32 %v7226_v49, %v7238_v54 }
  0x25   : > { %v4790_v12 = vld [vmem:[%s10204_s2 + $0x6a0] sm:$0xf]  ;;  %v6635_v13 = vld [vmem:[%s10204_s2 + $0x6ac] sm:$0xf0]  ;;  %v4663_v23 = vor.u32 %v6603_v10, %v4662_v9  ;;  %1441 = vmatpush.bf16.msra.mxu3 %v4935_v11  ;;  %v7248_v56 = vld [vmem:[%s10204_s2 + $0x630] sm:$0xf0] }
  0x26   : > { %v4918_v14 = vld [vmem:[%s10204_s2 + $0x7a0] sm:$0xf]  ;;  %v6667_v15 = vld [vmem:[%s10204_s2 + $0x7ac] sm:$0xf0]  ;;  %v4791_v24 = vor.u32 %v6635_v13, %v4790_v12  ;;  %1400 = vmatpush.bf16.msra.mxu0 %v4535_v18  ;;  %v7264_v60 = vld [vmem:[%s10204_s2 + $0x724] sm:$0xf]  ;;  %v4731_v10 = vor.u32 %v7243_v55, %v7248_v56 }
  0x27   : > { %v4518_v16 = vld [vmem:[%s10204_s2 + $0x480] sm:$0xf]  ;;  %v6567_v17 = vld [vmem:[%s10204_s2 + $0x48c] sm:$0xf0]  ;;  %v4919_v33 = vor.u32 %v6667_v15, %v4918_v14  ;;  %1414 = vmatpush.bf16.msra.mxu1 %v4663_v23  ;;  %v7269_v61 = vld [vmem:[%s10204_s2 + $0x730] sm:$0xf0] }
  0x28   : > { %v7106_v19 = vld [vmem:[%s10204_s2 + $0x580] sm:$0xf]  ;;  %v6599_v20 = vld [vmem:[%s10204_s2 + $0x58c] sm:$0xf0]  ;;  %v4519_v42 = vor.u32 %v6567_v17, %v4518_v16  ;;  %1428 = vmatpush.bf16.msra.mxu2 %v4791_v24  ;;  %v6418_v63 = vld [vmem:[%s7255_s20 + $0x10] sm:$0xf0]  ;;  %v4859_v11 = vor.u32 %v7264_v60, %v7269_v61 }
  0x29   : > { %v4774_v21 = vld [vmem:[%s10204_s2 + $0x680] sm:$0xf]  ;;  %v6631_v22 = vld [vmem:[%s10204_s2 + $0x68c] sm:$0xf0]  ;;  %v4647_v46 = vor.u32 %v6599_v20, %v7106_v19  ;;  %1442 = vmatpush.bf16.msra.mxu3 %v4919_v33  ;;  %v279_v0 = vld [vmem:[%s7255_s20 + $0x28] sm:$0x11] }
  0x2a   : > { %v7120_v25 = vld [vmem:[%s10204_s2 + $0x780] sm:$0xf]  ;;  %v7125_v26 = vld [vmem:[%s10204_s2 + $0x78c] sm:$0xf0]  ;;  %v4775_v47 = vor.u32 %v6631_v22, %v4774_v21  ;;  %1401 = vmatpush.bf16.msra.mxu0 %v4519_v42  ;;  %v590_v5 = vunpack.c.l.b16 %v279_v0  ;;  %v4506_v7 = vld [vmem:[%s7255_s20 + $0x8] sm:$0xf]  ;;  %v591_v17 = vunpack.c.h.b16 %v279_v0 }
  0x2b   : > { %v7130_v27 = vld [vmem:[%s10204_s2 + $0x8e0] sm:$0xf]  ;;  %v6707_v28 = vld [vmem:[%s10204_s2 + $0x8ec] sm:$0xf0]  ;;  %v4903_v50 = vor.u32 %v7125_v26, %v7120_v25  ;;  %1415 = vmatpush.bf16.msra.mxu1 %v4647_v46  ;;  %v6419_v8 = vld [vmem:[%s7255_s20 + $0x18] sm:$0xf0] }
  0x2c   : > { %v7170_v36 = vld [vmem:[%s10204_s2 + $0x8c0] sm:$0xf]  ;;  %v7175_v37 = vld [vmem:[%s10204_s2 + $0x8cc] sm:$0xf0]  ;;  %v5079_v51 = vor.u32 %v6707_v28, %v7130_v27  ;;  %1429 = vmatpush.bf16.msra.mxu2 %v4775_v47  ;;  %v7291_v13 = vor.u32 %v6419_v8, %v4506_v7  ;;  %v6417_v14 = vld [vmem:[%s7255_s20 + $0xc] sm:$0xf]  ;;  %v7295_v18 = vpack.c.b16 %v590_v5, %v590_v5  ;;  %v7316_v39 = vpack.c.b16 %v591_v17, %v591_v17 }
  0x2d   : > { %v7214_v45 = vld [vmem:[%s10204_s2 + $0x8a0] sm:$0xf]  ;;  %v7221_v48 = vld [vmem:[%s10204_s2 + $0x8ac] sm:$0xf0]  ;;  %v5063_v58 = vor.u32 %v7175_v37, %v7170_v36  ;;  %1443 = vmatpush.bf16.msra.mxu3 %v4903_v50  ;;  %v6416_v22 = vld [vmem:[%s7255_s20 + $0x4] sm:$0xf] }
  0x2e   : > { %v4498_v62 = vld [vmem:[%s7255_s20] sm:$0xf]  ;;  %v5047_v3 = vor.u32 %v7221_v48, %v7214_v45  ;;  %v280_v9 = vld [vmem:[%s7255_s20 + $0x30] sm:$0x11]  ;;  %1454 = vmatpush.bf16.msrb.mxu0 %v5079_v51  ;;  %v4500_v23 = vld [vmem:[%s7255_s20 + $0x14] sm:$0xf0] }
  0x2f   : > { %v7282_v6 = vor.u32 %v6418_v63, %v4498_v62  ;;  %v592_v12 = vunpack.c.l.b16 %v280_v9  ;;  %v4508_v15 = vld [vmem:[%s7255_s20 + $0x1c] sm:$0xf0]  ;;  %v593_v16 = vunpack.c.h.b16 %v280_v9  ;;  %1464 = vmatpush.bf16.msrb.mxu1 %v4635_v52  ;;  %v631_v25 = vshrl.u32 %v7291_v13, 16  ;;  %v6695_v41 = vld [vmem:[%s10204_s2 + $0x88c] sm:$0xf0] }
  0x30   : > { %1478 = vmatpush.bf16.msrb.mxu2 %v4763_v53  ;;  %v7299_v21 = vor.u32 %v6417_v14, %v4508_v15  ;;  %v633_v26 = vshll.u32 %v7291_v13, 16  ;;  %v614_v29 = vshll.u32 %v7295_v18, 16  ;;  %v7314_v35 = vor.u32 %v6416_v22, %v4500_v23  ;;  %v5030_v40 = vld [vmem:[%s10204_s2 + $0x880] sm:$0xf]  ;;  %v6581_v47 = vld [vmem:[%s10204_s2 + $0x504] sm:$0xf] }
  0x31   : > { %v607_v19 = vshrl.u32 %v7282_v6, 16  ;;  %v609_v20 = vshll.u32 %v7282_v6, 16  ;;  %1492 = vmatpush.bf16.msrb.mxu3 %v4891_v57  ;;  %v7303_v24 = vpack.c.b16 %v592_v12, %v592_v12  ;;  %v7307_v27 = vpack.c.b16 %v593_v16, %v593_v16  ;;  %v6689_v57 = vld [vmem:[%s10204_s2 + $0x864] sm:$0xf]  ;;  %v4584_v62 = vld [vmem:[%s10204_s2 + $0x510] sm:$0xf0] }
  0x32   : > { %v643_v30 = vshrl.u32 %v7299_v21, 16  ;;  %v645_v31 = vshll.u32 %v7299_v21, 16  ;;  %v635_v32 = vrot.slane %v633_v26, 1  ;;  %1455 = vmatpush.bf16.msrb.mxu0 %v5063_v58  ;;  %v616_v37 = vrot.slane %v614_v29, 1  ;;  %v5016_v58 = vld [vmem:[%s10204_s2 + $0x870] sm:$0xf0] }
  0x33   : > { %v611_v28 = vrot.slane %v609_v20, 1  ;;  %v638_v33 = vshll.u32 %v7303_v24, 16  ;;  %v650_v34 = vshll.u32 %v7307_v27, 16  ;;  %1465 = vmatpush.bf16.msrb.mxu1 %v4619_v59  ;;  %v619_v46 = vshrl.u32 %v7314_v35, 16  ;;  %v6613_v63 = vld [vmem:[%s10204_s2 + $0x604] sm:$0xf] }
  0x34   : > { %1479 = vmatpush.bf16.msrb.mxu2 %v4747_v1  ;;  %v647_v38 = vrot.slane %v645_v31, 1  ;;  %v636_v42 = vor.u32 %v635_v32, %v631_v25  ;;  %v621_v52 = vshll.u32 %v7314_v35, 16  ;;  %v626_v53 = vshll.u32 %v7316_v39, 16  ;;  %v4712_v0 = vld [vmem:[%s10204_s2 + $0x610] sm:$0xf0] }
  0x35   : > { %v612_v36 = vor.u32 %v611_v28, %v607_v19  ;;  %v640_v43 = vrot.slane %v638_v33, 1  ;;  %1493 = vmatpush.bf16.msrb.mxu3 %v4875_v2  ;;  %v652_v44 = vrot.slane %v650_v34, 1  ;;  %v5031_v7 = vor.u32 %v6695_v41, %v5030_v40  ;;  %v6645_v8 = vld [vmem:[%s10204_s2 + $0x704] sm:$0xf]  ;;  %v4840_v9 = vld [vmem:[%s10204_s2 + $0x710] sm:$0xf0] }
  0x36   : > { %v648_v51 = vor.u32 %v647_v38, %v643_v30  ;;  %v623_v2 = vrot.slane %v621_v52, 1  ;;  %v628_v5 = vrot.slane %v626_v53, 1  ;;  %1456 = vmatpush.bf16.msrb.mxu0 %v5047_v3  ;;  %v5019_v12 = vor.u32 %v6689_v57, %v5016_v58  ;;  %v6577_v45 = vld [vmem:[%s10204_s2 + $0x4e4] sm:$0xf]  ;;  %v4514_v3 = vld [vmem:[%s7255_s20 + $0x10] sm:$0xf] }
  0x37   : > { %v7329_v50 = vsel %vm605_vm0, %v612_v36, %v616_v37  ;;  %v7341_v59 = vsel %vm605_vm0, %v636_v42, %v640_v43  ;;  %1466 = vmatpush.bf16.msrb.mxu1 %v4603_v4  ;;  %v6685_v48 = vld [vmem:[%s10204_s2 + $0x844] sm:$0xf]  ;;  %v4587_v49 = vor.u32 %v6581_v47, %v4584_v62  ;;  %v4715_v54 = vor.u32 %v6613_v63, %v4712_v0  ;;  %v5000_v4 = vld [vmem:[%s10204_s2 + $0x850] sm:$0xf0]  ;;  %v281_v16 = vld [vmem:[%s7255_s20 + $0x38] sm:$0x1] }
  0x38   : > { %1402 = vmatmul.bf16.vlgmr.msra.gmra.mxu0 %v7329_v50  ;;  %1430 = vmatmul.bf16.vlgmr.msra.gmra.mxu2 %v7341_v59  ;;  %v7354_v1 = vsel %vm605_vm0, %v648_v51, %v652_v44  ;;  %v624_v14 = vor.u32 %v623_v2, %v619_v46  ;;  %v6420_v15 = vld [vmem:[%s7255_s20 + $0x20] sm:$0xf0]  ;;  %v4843_v17 = vor.u32 %v6645_v8, %v4840_v9  ;;  %v4568_v19 = vld [vmem:[%s10204_s2 + $0x4f0] sm:$0xf0]  ;;  %v594_v60 = vunpack.c.l.b16 %v281_v16 }
  0x39   : > { %1444 = vmatmul.bf16.vlgmr.msra.gmra.mxu3 %v7354_v1  ;;  %1480 = vmatpush.bf16.msrb.mxu2 %v4731_v10  ;;  %v6609_v55 = vld [vmem:[%s10204_s2 + $0x5e4] sm:$0xf]  ;;  %v4696_v56 = vld [vmem:[%s10204_s2 + $0x5f0] sm:$0xf0]  ;;  %v7396_v61 = vor.u32 %v6420_v15, %v4514_v3  ;;  %v5003_v22 = vor.u32 %v6685_v48, %v5000_v4  ;;  %v4571_v29 = vor.u32 %v6577_v45, %v4568_v19 }
  0x3a   : > { %1494 = vmatpush.bf16.msrb.mxu3 %v4859_v11  ;;  %v7399_v10 = vsel %vm605_vm0, %v624_v14, %v628_v5  ;;  %1457 = vmatpush.bf16.msrb.mxu0 %v5031_v7  ;;  %v6641_v11 = vld [vmem:[%s10204_s2 + $0x6e4] sm:$0xf]  ;;  %v4824_v20 = vld [vmem:[%s10204_s2 + $0x6f0] sm:$0xf0]  ;;  %v7408_v23 = vpack.c.b16 %v594_v60, %v594_v60  ;;  %v4699_v30 = vor.u32 %v6609_v55, %v4696_v56  ;;  %v4638_v55 = vld [vmem:[%s10204_s2 + $0x568] sm:$0xf] }
  0x3b   : > { %1416 = vmatmul.bf16.vlgmr.msra.gmra.mxu1 %v7399_v10  ;;  %v655_v25 = vshrl.u32 %v7396_v61, 16  ;;  %v657_v26 = vshll.u32 %v7396_v61, 16  ;;  %v6573_v28 = vld [vmem:[%s10204_s2 + $0x4c4] sm:$0xf]  ;;  %v4552_v31 = vld [vmem:[%s10204_s2 + $0x4d0] sm:$0xf0]  ;;  %v4827_v34 = vor.u32 %v6641_v11, %v4824_v20 }
  0x3c   : > { %1467 = vmatpush.bf16.msrb.mxu1 %v4587_v49  ;;  %v6681_v32 = vld [vmem:[%s10204_s2 + $0x824] sm:$0xf]  ;;  %v4984_v33 = vld [vmem:[%s10204_s2 + $0x830] sm:$0xf0]  ;;  %v662_v37 = vshll.u32 %v7408_v23, 16  ;;  %v4555_v47 = vor.u32 %v6573_v28, %v4552_v31 }
  0x3d   : > { %1481 = vmatpush.bf16.msrb.mxu2 %v4715_v54  ;;  %v659_v36 = vrot.slane %v657_v26, 1  ;;  %v6605_v38 = vld [vmem:[%s10204_s2 + $0x5c4] sm:$0xf]  ;;  %v4680_v40 = vld [vmem:[%s10204_s2 + $0x5d0] sm:$0xf0]  ;;  %v4987_v46 = vor.u32 %v6681_v32, %v4984_v33 }
  0x3e   : > { %1506 = vmatpush.bf16.msra.mxu0 %v5019_v12  ;;  %1495 = vmatpush.bf16.msrb.mxu3 %v4843_v17  ;;  %v6637_v41 = vld [vmem:[%s10204_s2 + $0x6c4] sm:$0xf]  ;;  %v4808_v42 = vld [vmem:[%s10204_s2 + $0x6d0] sm:$0xf0]  ;;  %v664_v44 = vrot.slane %v662_v37, 1  ;;  %v4683_v51 = vor.u32 %v6605_v38, %v4680_v40 }
  0x3f   : > { %v660_v43 = vor.u32 %v659_v36, %v655_v25  ;;  %v6569_v52 = vld [vmem:[%s10204_s2 + $0x4a4] sm:$0xf]  ;;  %v4968_v57 = vld [vmem:[%s10204_s2 + $0x810] sm:$0xf0]  ;;  %v4811_v58 = vor.u32 %v6637_v41, %v4808_v42  ;;  %v6596_v60 = vld [vmem:[%s10204_s2 + $0x574] sm:$0xf0] }
  0x40   : > { %1468 = vmatpush.bf16.msrb.mxu1 %v4571_v29  ;;  %v6677_v53 = vld [vmem:[%s10204_s2 + $0x804] sm:$0xf]  ;;  %v4536_v62 = vld [vmem:[%s10204_s2 + $0x4b0] sm:$0xf0]  ;;  %v4766_v11 = vld [vmem:[%s10204_s2 + $0x668] sm:$0xf]  ;;  %v4639_v31 = vor.u32 %v6596_v60, %v4638_v55 }
  0x41   : > { %1482 = vmatpush.bf16.msrb.mxu2 %v4699_v30  ;;  %v6601_v63 = vld [vmem:[%s10204_s2 + $0x5a4] sm:$0xf]  ;;  %v4664_v0 = vld [vmem:[%s10204_s2 + $0x5b0] sm:$0xf0]  ;;  %v7456_v2 = vsel %vm605_vm0, %v660_v43, %v664_v44  ;;  %v4971_v8 = vor.u32 %v6677_v53, %v4968_v57  ;;  %v4539_v45 = vor.u32 %v6569_v52, %v4536_v62  ;;  %v6628_v20 = vld [vmem:[%s10204_s2 + $0x674] sm:$0xf0] }
  0x42   : > { %1507 = vmatpush.bf16.msra.mxu0 %v5003_v22  ;;  %1496 = vmatpush.bf16.msrb.mxu3 %v4827_v34  ;;  %v6633_v5 = vld [vmem:[%s10204_s2 + $0x6a4] sm:$0xf]  ;;  %v4792_v7 = vld [vmem:[%s10204_s2 + $0x6b0] sm:$0xf0]  ;;  %v4667_v48 = vor.u32 %v6601_v63, %v4664_v0  ;;  %v4767_v32 = vor.u32 %v6628_v20, %v4766_v11  ;;  %v4622_v36 = vld [vmem:[%s10204_s2 + $0x548] sm:$0xf] }
  0x43   : > { %v6565_v9 = vld [vmem:[%s10204_s2 + $0x484] sm:$0xf]  ;;  %v4520_v12 = vld [vmem:[%s10204_s2 + $0x490] sm:$0xf0]  ;;  %v4795_v54 = vor.u32 %v6633_v5, %v4792_v7  ;;  %v6592_v37 = vld [vmem:[%s10204_s2 + $0x554] sm:$0xf0] }
  0x44   : > { %1469 = vmatpush.bf16.msrb.mxu1 %v4555_v47  ;;  %v6597_v3 = vld [vmem:[%s10204_s2 + $0x584] sm:$0xf]  ;;  %v4952_v49 = vld [vmem:[%s10204_s2 + $0x7f0] sm:$0xf0]  ;;  %v4523_v22 = vor.u32 %v6565_v9, %v4520_v12  ;;  %v4750_v38 = vld [vmem:[%s10204_s2 + $0x648] sm:$0xf] }
  0x45   : > { %1483 = vmatpush.bf16.msrb.mxu2 %v4683_v51  ;;  %v6673_v14 = vld [vmem:[%s10204_s2 + $0x7e4] sm:$0xf]  ;;  %v4648_v4 = vld [vmem:[%s10204_s2 + $0x590] sm:$0xf0]  ;;  %v6624_v40 = vld [vmem:[%s10204_s2 + $0x654] sm:$0xf0] }
  0x46   : > { %1508 = vmatpush.bf16.msra.mxu0 %v4987_v46  ;;  %1497 = vmatpush.bf16.msrb.mxu3 %v4811_v58  ;;  %v6629_v15 = vld [vmem:[%s10204_s2 + $0x684] sm:$0xf]  ;;  %v4776_v16 = vld [vmem:[%s10204_s2 + $0x690] sm:$0xf0]  ;;  %v4955_v56 = vor.u32 %v6673_v14, %v4952_v49  ;;  %v4651_v25 = vor.u32 %v6597_v3, %v4648_v4  ;;  %v4623_v46 = vor.u32 %v6592_v37, %v4622_v36  ;;  %v4606_v53 = vld [vmem:[%s10204_s2 + $0x528] sm:$0xf] }
  0x47   : > { %v6705_v17 = vld [vmem:[%s10204_s2 + $0x8e4] sm:$0xf]  ;;  %v5080_v19 = vld [vmem:[%s10204_s2 + $0x8f0] sm:$0xf0]  ;;  %v4779_v26 = vor.u32 %v6629_v15, %v4776_v16  ;;  %v4751_v47 = vor.u32 %v6624_v40, %v4750_v38  ;;  %v6588_v57 = vld [vmem:[%s10204_s2 + $0x534] sm:$0xf0] }
  0x48   : > { %5092 = vmatmul.msk.bf16.vlgmr.msrb.gmra.mxu0 %vm1390_vm1, %v7456_v2  ;;  %1470 = vmatpush.bf16.msrb.mxu1 %v4539_v45  ;;  %v5083_v28 = vor.u32 %v6705_v17, %v5080_v19  ;;  %v6669_v29 = vld [vmem:[%s10204_s2 + $0x7c4] sm:$0xf]  ;;  %v4936_v30 = vld [vmem:[%s10204_s2 + $0x7d0] sm:$0xf0]  ;;  %v4734_v58 = vld [vmem:[%s10204_s2 + $0x628] sm:$0xf]  ;;  %v4607_v12 = vor.u32 %v6588_v57, %v4606_v53 }
  0x49   : > { %1484 = vmatpush.bf16.msrb.mxu2 %v4667_v48  ;;  %v6701_v33 = vld [vmem:[%s10204_s2 + $0x8c4] sm:$0xf]  ;;  %v5064_v34 = vld [vmem:[%s10204_s2 + $0x8d0] sm:$0xf0]  ;;  %v4939_v41 = vor.u32 %v6669_v29, %v4936_v30  ;;  %v6620_v62 = vld [vmem:[%s10204_s2 + $0x634] sm:$0xf0] }
  0x4a   : > { %1509 = vmatpush.bf16.msra.mxu0 %v4971_v8  ;;  %1498 = vmatpush.bf16.msrb.mxu3 %v4795_v54  ;;  %v5067_v42 = vor.u32 %v6701_v33, %v5064_v34  ;;  %v6665_v43 = vld [vmem:[%s10204_s2 + $0x7a4] sm:$0xf]  ;;  %v4920_v44 = vld [vmem:[%s10204_s2 + $0x7b0] sm:$0xf0]  ;;  %v4735_v45 = vor.u32 %v6620_v62, %v4734_v58  ;;  %v4590_v48 = vld [vmem:[%s10204_s2 + $0x508] sm:$0xf] }
  0x4b   : > { %v6697_v51 = vld [vmem:[%s10204_s2 + $0x8a4] sm:$0xf]  ;;  %v5048_v52 = vld [vmem:[%s10204_s2 + $0x8b0] sm:$0xf0]  ;;  %v4923_v63 = vor.u32 %v6665_v43, %v4920_v44  ;;  %v4894_v3 = vld [vmem:[%s10204_s2 + $0x768] sm:$0xf] }
  0x4c   : > { %1471 = vmatpush.bf16.msrb.mxu1 %v4523_v22  ;;  %v6661_v0 = vld [vmem:[%s10204_s2 + $0x784] sm:$0xf]  ;;  %v5051_v5 = vor.u32 %v6697_v51, %v5048_v52  ;;  %v4904_v7 = vld [vmem:[%s10204_s2 + $0x790] sm:$0xf0]  ;;  %v6660_v14 = vld [vmem:[%s10204_s2 + $0x774] sm:$0xf0] }
  0x4d   : > { %1485 = vmatpush.bf16.msrb.mxu2 %v4651_v25  ;;  %v6693_v8 = vld [vmem:[%s10204_s2 + $0x884] sm:$0xf]  ;;  %v5032_v9 = vld [vmem:[%s10204_s2 + $0x890] sm:$0xf0]  ;;  %v6584_v49 = vld [vmem:[%s10204_s2 + $0x514] sm:$0xf0]  ;;  %v4907_v15 = vor.u32 %v6661_v0, %v4904_v7  ;;  %v4895_v55 = vor.u32 %v6660_v14, %v4894_v3 }
  0x4e   : > { %1510 = vmatpush.bf16.msra.mxu0 %v4955_v56  ;;  %1499 = vmatpush.bf16.msrb.mxu3 %v4779_v26  ;;  %v4718_v54 = vld [vmem:[%s10204_s2 + $0x608] sm:$0xf]  ;;  %v6616_v4 = vld [vmem:[%s10204_s2 + $0x614] sm:$0xf0]  ;;  %v5035_v19 = vor.u32 %v6693_v8, %v5032_v9  ;;  %v4591_v56 = vor.u32 %v6584_v49, %v4590_v48 }
  0x4f   : > { %1472 = vmatmul.bf16.vlgmr.msrb.gmra.mxu1 %v7329_v50  ;;  %v5022_v16 = vld [vmem:[%s10204_s2 + $0x868] sm:$0xf]  ;;  %v6692_v17 = vld [vmem:[%s10204_s2 + $0x874] sm:$0xf0]  ;;  %v4719_v60 = vor.u32 %v6616_v4, %v4718_v54 }
  0x50   : > { %1524 = vmatpush.bf16.msra.mxu1 %v5083_v28  ;;  %1486 = vmatmul.bf16.vlgmr.msrb.gmra.mxu2 %v7399_v10  ;;  %v4574_v11 = vld [vmem:[%s10204_s2 + $0x4e8] sm:$0xf]  ;;  %v6656_v22 = vld [vmem:[%s10204_s2 + $0x754] sm:$0xf0]  ;;  %v5023_v25 = vor.u32 %v6692_v17, %v5022_v16 }
  0x51   : > { %1534 = vmatpush.bf16.msra.mxu2 %v4639_v31  ;;  %1500 = vmatmul.bf16.vlgmr.msrb.gmra.mxu3 %v7341_v59  ;;  %v4878_v20 = vld [vmem:[%s10204_s2 + $0x748] sm:$0xf]  ;;  %v6580_v26 = vld [vmem:[%s10204_s2 + $0x4f4] sm:$0xf0] }
  0x52   : > { %1548 = vmatpush.bf16.msra.mxu3 %v4767_v32  ;;  %1511 = vmatpush.bf16.msra.mxu0 %v4939_v41  ;;  %v4702_v28 = vld [vmem:[%s10204_s2 + $0x5e8] sm:$0xf]  ;;  %v6612_v29 = vld [vmem:[%s10204_s2 + $0x5f4] sm:$0xf0]  ;;  %v4879_v32 = vor.u32 %v6656_v22, %v4878_v20  ;;  %v4575_v33 = vor.u32 %v6580_v26, %v4574_v11  ;;  %v4640_v11 = vld [vmem:[%s10204_s2 + $0x578] sm:$0xf0] }
  0x53   : > { %v5006_v30 = vld [vmem:[%s10204_s2 + $0x848] sm:$0xf]  ;;  %v6688_v31 = vld [vmem:[%s10204_s2 + $0x854] sm:$0xf0]  ;;  %v4703_v34 = vor.u32 %v6612_v29, %v4702_v28 }
  0x54   : > { %1525 = vmatpush.bf16.msra.mxu1 %v5067_v42  ;;  %v4558_v36 = vld [vmem:[%s10204_s2 + $0x4c8] sm:$0xf]  ;;  %v6652_v38 = vld [vmem:[%s10204_s2 + $0x734] sm:$0xf0]  ;;  %v5007_v40 = vor.u32 %v6688_v31, %v5006_v30 }
  0x55   : > { %1535 = vmatpush.bf16.msra.mxu2 %v4623_v46  ;;  %v4862_v37 = vld [vmem:[%s10204_s2 + $0x728] sm:$0xf]  ;;  %v6576_v41 = vld [vmem:[%s10204_s2 + $0x4d4] sm:$0xf0] }
  0x56   : > { %1549 = vmatpush.bf16.msra.mxu3 %v4751_v47  ;;  %1512 = vmatpush.bf16.msra.mxu0 %v4923_v63  ;;  %v4686_v42 = vld [vmem:[%s10204_s2 + $0x5c8] sm:$0xf]  ;;  %v6608_v43 = vld [vmem:[%s10204_s2 + $0x5d4] sm:$0xf0]  ;;  %v4863_v47 = vor.u32 %v6652_v38, %v4862_v37  ;;  %v4559_v51 = vor.u32 %v6576_v41, %v4558_v36  ;;  %v6590_v37 = vld [vmem:[%s10204_s2 + $0x54c] sm:$0xf] }
  0x57   : > { %v4990_v44 = vld [vmem:[%s10204_s2 + $0x828] sm:$0xf]  ;;  %v6684_v46 = vld [vmem:[%s10204_s2 + $0x834] sm:$0xf0]  ;;  %v4687_v52 = vor.u32 %v6608_v43, %v4686_v42  ;;  %v4624_v38 = vld [vmem:[%s10204_s2 + $0x558] sm:$0xf0] }
  0x58   : > { %1526 = vmatpush.bf16.msra.mxu1 %v5051_v5  ;;  %v4542_v53 = vld [vmem:[%s10204_s2 + $0x4a8] sm:$0xf]  ;;  %v6648_v58 = vld [vmem:[%s10204_s2 + $0x714] sm:$0xf0]  ;;  %v4991_v62 = vor.u32 %v6684_v46, %v4990_v44  ;;  %v4627_v46 = vor.u32 %v6590_v37, %v4624_v38 }
  0x59   : > { %1536 = vmatpush.bf16.msra.mxu2 %v4607_v12  ;;  %v4846_v57 = vld [vmem:[%s10204_s2 + $0x708] sm:$0xf]  ;;  %v6572_v63 = vld [vmem:[%s10204_s2 + $0x4b4] sm:$0xf0] }
  0x5a   : > { %1550 = vmatpush.bf16.msra.mxu3 %v4735_v45  ;;  %1513 = vmatpush.bf16.msra.mxu0 %v4907_v15  ;;  %v4670_v0 = vld [vmem:[%s10204_s2 + $0x5a8] sm:$0xf]  ;;  %v6604_v5 = vld [vmem:[%s10204_s2 + $0x5b4] sm:$0xf0]  ;;  %v4847_v9 = vor.u32 %v6648_v58, %v4846_v57  ;;  %v4543_v45 = vor.u32 %v6572_v63, %v4542_v53  ;;  %v6586_v57 = vld [vmem:[%s10204_s2 + $0x52c] sm:$0xf] }
  0x5b   : > { %v4974_v7 = vld [vmem:[%s10204_s2 + $0x808] sm:$0xf]  ;;  %v6680_v8 = vld [vmem:[%s10204_s2 + $0x814] sm:$0xf0]  ;;  %v4671_v48 = vor.u32 %v6604_v5, %v4670_v0  ;;  %v4608_v58 = vld [vmem:[%s10204_s2 + $0x538] sm:$0xf0] }
  0x5c   : > { %1527 = vmatpush.bf16.msra.mxu1 %v5035_v19  ;;  %v4526_v12 = vld [vmem:[%s10204_s2 + $0x488] sm:$0xf]  ;;  %v6568_v3 = vld [vmem:[%s10204_s2 + $0x494] sm:$0xf0]  ;;  %v4975_v54 = vor.u32 %v6680_v8, %v4974_v7 }
  0x5d   : > { %1537 = vmatpush.bf16.msra.mxu2 %v4591_v56  ;;  %1514 = vmatmul.bf16.vlgmr.msra.gmra.mxu0 %v7354_v1  ;;  %v4830_v14 = vld [vmem:[%s10204_s2 + $0x6e8] sm:$0xf]  ;;  %v6644_v49 = vld [vmem:[%s10204_s2 + $0x6f4] sm:$0xf0]  ;;  %v4527_v20 = vor.u32 %v6568_v3, %v4526_v12  ;;  %v4768_v12 = vld [vmem:[%s10204_s2 + $0x678] sm:$0xf0] }
  0x5e   : > { %1562 = vmatpush.bf16.msrb.mxu0 %v4895_v55  ;;  %1551 = vmatpush.bf16.msra.mxu3 %v4719_v60  ;;  %v4654_v4 = vld [vmem:[%s10204_s2 + $0x588] sm:$0xf]  ;;  %v6600_v15 = vld [vmem:[%s10204_s2 + $0x594] sm:$0xf0]  ;;  %v4831_v56 = vor.u32 %v6644_v49, %v4830_v14  ;;  %v6594_v60 = vld [vmem:[%s10204_s2 + $0x56c] sm:$0xf] }
  0x5f   : > { %5093 = vmatmul.msk.bf16.vlgmr.msra.gmra.mxu1 %vm1390_vm1, %v7456_v2  ;;  %v4958_v16 = vld [vmem:[%s10204_s2 + $0x7e8] sm:$0xf]  ;;  %v6676_v17 = vld [vmem:[%s10204_s2 + $0x7f4] sm:$0xf0]  ;;  %v4655_v22 = vor.u32 %v6600_v15, %v4654_v4  ;;  %v4643_v31 = vor.u32 %v6594_v60, %v4640_v11  ;;  %v6582_v14 = vld [vmem:[%s10204_s2 + $0x50c] sm:$0xf] }
  0x60   : > { %1576 = vmatpush.bf16.msrb.mxu1 %v5023_v25  ;;  %v5086_v19 = vld [vmem:[%s10204_s2 + $0x8e8] sm:$0xf]  ;;  %v6708_v55 = vld [vmem:[%s10204_s2 + $0x8f4] sm:$0xf0]  ;;  %v4959_v28 = vor.u32 %v6676_v17, %v4958_v16  ;;  %v6658_v4 = vld [vmem:[%s10204_s2 + $0x76c] sm:$0xf] }
  0x61   : > { %1538 = vmatpush.bf16.msra.mxu2 %v4575_v33  ;;  %v4814_v25 = vld [vmem:[%s10204_s2 + $0x6c8] sm:$0xf]  ;;  %v6640_v26 = vld [vmem:[%s10204_s2 + $0x6d4] sm:$0xf0]  ;;  %v5087_v29 = vor.u32 %v6708_v55, %v5086_v19  ;;  %v4896_v15 = vld [vmem:[%s10204_s2 + $0x778] sm:$0xf0] }
  0x62   : > { %1563 = vmatpush.bf16.msrb.mxu0 %v4879_v32  ;;  %1552 = vmatpush.bf16.msra.mxu3 %v4703_v34  ;;  %v4942_v30 = vld [vmem:[%s10204_s2 + $0x7c8] sm:$0xf]  ;;  %v6672_v32 = vld [vmem:[%s10204_s2 + $0x7d4] sm:$0xf0]  ;;  %v4815_v36 = vor.u32 %v6640_v26, %v4814_v25  ;;  %v6690_v17 = vld [vmem:[%s10204_s2 + $0x86c] sm:$0xf] }
  0x63   : > { %v5070_v33 = vld [vmem:[%s10204_s2 + $0x8c8] sm:$0xf]  ;;  %v6704_v34 = vld [vmem:[%s10204_s2 + $0x8d4] sm:$0xf0]  ;;  %v4943_v42 = vor.u32 %v6672_v32, %v4942_v30  ;;  %v5024_v19 = vld [vmem:[%s10204_s2 + $0x878] sm:$0xf0] }
  0x64   : > { %1577 = vmatpush.bf16.msrb.mxu1 %v5007_v40  ;;  %v4798_v40 = vld [vmem:[%s10204_s2 + $0x6a8] sm:$0xf]  ;;  %v6636_v41 = vld [vmem:[%s10204_s2 + $0x6b4] sm:$0xf0]  ;;  %v5071_v43 = vor.u32 %v6704_v34, %v5070_v33  ;;  %v6622_v60 = vld [vmem:[%s10204_s2 + $0x64c] sm:$0xf]  ;;  %v5027_v26 = vor.u32 %v6690_v17, %v5024_v19 }
  0x65   : > { %1539 = vmatpush.bf16.msra.mxu2 %v4559_v51  ;;  %v4926_v44 = vld [vmem:[%s10204_s2 + $0x7a8] sm:$0xf]  ;;  %v4799_v53 = vor.u32 %v6636_v41, %v4798_v40  ;;  %v6632_v63 = vld [vmem:[%s10204_s2 + $0x694] sm:$0xf0]  ;;  %v4752_v11 = vld [vmem:[%s10204_s2 + $0x658] sm:$0xf0] }
  0x66   : > { %1564 = vmatpush.bf16.msrb.mxu0 %v4863_v47  ;;  %1553 = vmatpush.bf16.msra.mxu3 %v4687_v52  ;;  %v6668_v47 = vld [vmem:[%s10204_s2 + $0x7b4] sm:$0xf0]  ;;  %v5054_v51 = vld [vmem:[%s10204_s2 + $0x8a8] sm:$0xf]  ;;  %v6578_v25 = vld [vmem:[%s10204_s2 + $0x4ec] sm:$0xf] }
  0x67   : > { %v6700_v52 = vld [vmem:[%s10204_s2 + $0x8b4] sm:$0xf0]  ;;  %v4910_v0 = vld [vmem:[%s10204_s2 + $0x788] sm:$0xf]  ;;  %v4927_v5 = vor.u32 %v6668_v47, %v4926_v44  ;;  %v4880_v30 = vld [vmem:[%s10204_s2 + $0x758] sm:$0xf0] }
  0x68   : > { %1578 = vmatpush.bf16.msrb.mxu1 %v4991_v62  ;;  %v4782_v62 = vld [vmem:[%s10204_s2 + $0x688] sm:$0xf]  ;;  %v5055_v7 = vor.u32 %v6700_v52, %v5054_v51  ;;  %v6664_v8 = vld [vmem:[%s10204_s2 + $0x794] sm:$0xf0]  ;;  %v6686_v32 = vld [vmem:[%s10204_s2 + $0x84c] sm:$0xf] }
  0x69   : > { %1540 = vmatpush.bf16.msra.mxu2 %v4543_v45  ;;  %v4611_v45 = vor.u32 %v6586_v57, %v4608_v58  ;;  %v6696_v3 = vld [vmem:[%s10204_s2 + $0x894] sm:$0xf0]  ;;  %v4783_v49 = vor.u32 %v6632_v63, %v4782_v62  ;;  %v4911_v55 = vor.u32 %v6664_v8, %v4910_v0  ;;  %v5008_v33 = vld [vmem:[%s10204_s2 + $0x858] sm:$0xf0]  ;;  %v6618_v34 = vld [vmem:[%s10204_s2 + $0x62c] sm:$0xf] }
  0x6a   : > { %1565 = vmatpush.bf16.msrb.mxu0 %v4847_v9  ;;  %1554 = vmatpush.bf16.msra.mxu3 %v4671_v48  ;;  %v6626_v9 = vld [vmem:[%s10204_s2 + $0x66c] sm:$0xf]  ;;  %v5038_v48 = vld [vmem:[%s10204_s2 + $0x888] sm:$0xf]  ;;  %v5011_v41 = vor.u32 %v6686_v32, %v5008_v33  ;;  %v4864_v44 = vld [vmem:[%s10204_s2 + $0x738] sm:$0xf0] }
  0x6b   : > { %v4771_v16 = vor.u32 %v6626_v9, %v4768_v12  ;;  %v6574_v40 = vld [vmem:[%s10204_s2 + $0x4cc] sm:$0xf]  ;;  %v4992_v51 = vld [vmem:[%s10204_s2 + $0x838] sm:$0xf0] }
  0x6c   : > { %1579 = vmatpush.bf16.msrb.mxu1 %v4975_v54  ;;  %v4592_v54 = vld [vmem:[%s10204_s2 + $0x518] sm:$0xf0]  ;;  %v6682_v47 = vld [vmem:[%s10204_s2 + $0x82c] sm:$0xf] }
  0x6d   : > { %1541 = vmatpush.bf16.msra.mxu2 %v4527_v20  ;;  %v4595_v20 = vor.u32 %v6582_v14, %v4592_v54  ;;  %v6614_v52 = vld [vmem:[%s10204_s2 + $0x60c] sm:$0xf]  ;;  %v4995_v63 = vor.u32 %v6682_v47, %v4992_v51  ;;  %v4544_v0 = vld [vmem:[%s10204_s2 + $0x4b8] sm:$0xf0] }
  0x6e   : > { %1566 = vmatpush.bf16.msrb.mxu0 %v4831_v56  ;;  %1555 = vmatpush.bf16.msra.mxu3 %v4655_v22  ;;  %v5039_v56 = vor.u32 %v6696_v3, %v5038_v48  ;;  %v4899_v22 = vor.u32 %v6658_v4, %v4896_v15  ;;  %v6570_v62 = vld [vmem:[%s10204_s2 + $0x4ac] sm:$0xf]  ;;  %v4976_v12 = vld [vmem:[%s10204_s2 + $0x818] sm:$0xf0] }
  0x6f   : > { %v6678_v9 = vld [vmem:[%s10204_s2 + $0x80c] sm:$0xf]  ;;  %v4704_v48 = vld [vmem:[%s10204_s2 + $0x5f8] sm:$0xf0]  ;;  %v4547_v3 = vor.u32 %v6570_v62, %v4544_v0  ;;  %v5210_v0 = vld [vmem:[%s10204_s2 + $0xe0] sm:$0xf] }
  0x70   : > { %1580 = vmatpush.bf16.msrb.mxu1 %v4959_v28  ;;  %1542 = vmatmul.bf16.vlgmr.msra.gmra.mxu2 %v7329_v50  ;;  %v4576_v28 = vld [vmem:[%s10204_s2 + $0x4f8] sm:$0xf0]  ;;  %v4979_v4 = vor.u32 %v6678_v9, %v4976_v12  ;;  %v6642_v15 = vld [vmem:[%s10204_s2 + $0x6ec] sm:$0xf] }
  0x71   : > { %1594 = vmatpush.bf16.msrb.mxu2 %v5087_v29  ;;  %1556 = vmatmul.bf16.vlgmr.msra.gmra.mxu3 %v7399_v10  ;;  %v6654_v29 = vld [vmem:[%s10204_s2 + $0x74c] sm:$0xf]  ;;  %v4579_v37 = vor.u32 %v6578_v25, %v4576_v28  ;;  %v4528_v54 = vld [vmem:[%s10204_s2 + $0x498] sm:$0xf0] }
  0x72   : > { %1604 = vmatpush.bf16.msrb.mxu3 %v4643_v31  ;;  %1567 = vmatpush.bf16.msrb.mxu0 %v4815_v36  ;;  %v4755_v31 = vor.u32 %v6622_v60, %v4752_v11  ;;  %v4736_v36 = vld [vmem:[%s10204_s2 + $0x638] sm:$0xf0]  ;;  %v4883_v38 = vor.u32 %v6654_v29, %v4880_v30  ;;  %v6674_v17 = vld [vmem:[%s10204_s2 + $0x7ec] sm:$0xf] }
  0x73   : > { %v5088_v60 = vld [vmem:[%s10204_s2 + $0x8f8] sm:$0xf0]  ;;  %v6606_v11 = vld [vmem:[%s10204_s2 + $0x5cc] sm:$0xf] }
  0x74   : > { %1581 = vmatpush.bf16.msrb.mxu1 %v4943_v42  ;;  %v4560_v42 = vld [vmem:[%s10204_s2 + $0x4d8] sm:$0xf0]  ;;  %v6638_v29 = vld [vmem:[%s10204_s2 + $0x6cc] sm:$0xf] }
  0x75   : > { %1595 = vmatpush.bf16.msrb.mxu2 %v5071_v43  ;;  %v6650_v43 = vld [vmem:[%s10204_s2 + $0x72c] sm:$0xf]  ;;  %v4563_v57 = vor.u32 %v6574_v40, %v4560_v42  ;;  %v4816_v30 = vld [vmem:[%s10204_s2 + $0x6d8] sm:$0xf0] }
  0x76   : > { %1605 = vmatpush.bf16.msrb.mxu3 %v4627_v46  ;;  %1568 = vmatpush.bf16.msrb.mxu0 %v4799_v53  ;;  %v4739_v46 = vor.u32 %v6618_v34, %v4736_v36  ;;  %v4720_v53 = vld [vmem:[%s10204_s2 + $0x618] sm:$0xf0]  ;;  %v4867_v58 = vor.u32 %v6650_v43, %v4864_v44  ;;  %v6702_v34 = vld [vmem:[%s10204_s2 + $0x8cc] sm:$0xf]  ;;  %v4819_v40 = vor.u32 %v6638_v29, %v4816_v30  ;;  %v5450_v29 = vld [vmem:[%s10204_s2 + $0x2c0] sm:$0xf] }
  0x77   : > { %v4723_v8 = vor.u32 %v6614_v52, %v4720_v53  ;;  %v4944_v33 = vld [vmem:[%s10204_s2 + $0x7d8] sm:$0xf0]  ;;  %v6634_v43 = vld [vmem:[%s10204_s2 + $0x6ac] sm:$0xf]  ;;  %v6511_v30 = vld [vmem:[%s10204_s2 + $0x2cc] sm:$0xf0] }
  0x78   : > { %1582 = vmatpush.bf16.msrb.mxu1 %v4927_v5  ;;  %v6646_v5 = vld [vmem:[%s10204_s2 + $0x70c] sm:$0xf]  ;;  %v5072_v36 = vld [vmem:[%s10204_s2 + $0x8d8] sm:$0xf0] }
  0x79   : > { %1596 = vmatpush.bf16.msrb.mxu2 %v5055_v7  ;;  %v4848_v7 = vld [vmem:[%s10204_s2 + $0x718] sm:$0xf0]  ;;  %v5075_v42 = vor.u32 %v6702_v34, %v5072_v36  ;;  %v6698_v52 = vld [vmem:[%s10204_s2 + $0x8ac] sm:$0xf]  ;;  %v5451_v36 = vor.u32 %v6511_v30, %v5450_v29  ;;  %v5114_v30 = vld [vmem:[%s10204_s2 + $0x20] sm:$0xf] }
  0x7a   : > { %1606 = vmatpush.bf16.msrb.mxu3 %v4611_v45  ;;  %1569 = vmatpush.bf16.msrb.mxu0 %v4783_v49  ;;  %v6610_v45 = vld [vmem:[%s10204_s2 + $0x5ec] sm:$0xf]  ;;  %v4851_v14 = vor.u32 %v6646_v5, %v4848_v7  ;;  %v4800_v44 = vld [vmem:[%s10204_s2 + $0x6b8] sm:$0xf0] }
  0x7b   : > { %v6566_v49 = vld [vmem:[%s10204_s2 + $0x48c] sm:$0xf]  ;;  %v4707_v19 = vor.u32 %v6610_v45, %v4704_v48  ;;  %v4928_v51 = vld [vmem:[%s10204_s2 + $0x7b8] sm:$0xf0]  ;;  %v4803_v62 = vor.u32 %v6634_v43, %v4800_v44  ;;  %v5434_v43 = vld [vmem:[%s10204_s2 + $0x2a0] sm:$0xf] }
  0x7c   : > { %1583 = vmatpush.bf16.msrb.mxu1 %v4911_v55  ;;  %v4960_v55 = vld [vmem:[%s10204_s2 + $0x7f8] sm:$0xf0]  ;;  %v6662_v9 = vld [vmem:[%s10204_s2 + $0x78c] sm:$0xf]  ;;  %v6507_v44 = vld [vmem:[%s10204_s2 + $0x2ac] sm:$0xf0] }
  0x7d   : > { %1597 = vmatpush.bf16.msrb.mxu2 %v5039_v56  ;;  %1570 = vmatmul.bf16.vlgmr.msrb.gmra.mxu0 %v7341_v59  ;;  %v6706_v56 = vld [vmem:[%s10204_s2 + $0x8ec] sm:$0xf]  ;;  %v5056_v53 = vld [vmem:[%s10204_s2 + $0x8b8] sm:$0xf0] }
  0x7e   : > { %1618 = vmatpush.bf16.msra.mxu0 %v4771_v16  ;;  %1607 = vmatpush.bf16.msrb.mxu3 %v4595_v20  ;;  %v4832_v16 = vld [vmem:[%s10204_s2 + $0x6f8] sm:$0xf0]  ;;  %v5091_v28 = vor.u32 %v6706_v56, %v5088_v60  ;;  %v5059_v7 = vor.u32 %v6698_v52, %v5056_v53  ;;  %v6694_v48 = vld [vmem:[%s10204_s2 + $0x88c] sm:$0xf]  ;;  %v5435_v52 = vor.u32 %v6507_v44, %v5434_v43  ;;  %v5290_v53 = vld [vmem:[%s10204_s2 + $0x180] sm:$0xf] }
  0x7f   : > { %1584 = vmatmul.bf16.vlgmr.msrb.gmra.mxu1 %v7354_v1  ;;  %v4688_v20 = vld [vmem:[%s10204_s2 + $0x5d8] sm:$0xf0]  ;;  %v4835_v25 = vor.u32 %v6642_v15, %v4832_v16  ;;  %v6515_v15 = vld [vmem:[%s10204_s2 + $0x2ec] sm:$0xf0] }
  0x80   : > { %1632 = vmatpush.bf16.msra.mxu1 %v4899_v22  ;;  %5094 = vmatmul.msk.bf16.vlgmr.msrb.gmra.mxu2 %vm1390_vm1, %v7456_v2  ;;  %v4531_v22 = vor.u32 %v6566_v49, %v4528_v54  ;;  %v4691_v32 = vor.u32 %v6606_v11, %v4688_v20  ;;  %v4912_v12 = vld [vmem:[%s10204_s2 + $0x798] sm:$0xf0]  ;;  %v6483_v54 = vld [vmem:[%s10204_s2 + $0x1ec] sm:$0xf0]  ;;  %v5194_v20 = vld [vmem:[%s10204_s2 + $0xc0] sm:$0xf] }
  0x81   : > { %1646 = vmatpush.bf16.msra.mxu2 %v5027_v26  ;;  %v4963_v26 = vor.u32 %v6674_v17, %v4960_v55  ;;  %v5594_v17 = vld [vmem:[%s10204_s2 + $0x3e0] sm:$0xf]  ;;  %v4915_v55 = vor.u32 %v6662_v9, %v4912_v12  ;;  %v6423_v43 = vld [vmem:[%s10204_s2 + $0xc] sm:$0xf0] }
  0x82   : > { %1619 = vmatpush.bf16.msra.mxu0 %v4755_v31  ;;  %1608 = vmatpush.bf16.msrb.mxu3 %v4579_v37  ;;  %v6670_v31 = vld [vmem:[%s10204_s2 + $0x7cc] sm:$0xf]  ;;  %v5146_v9 = vld [vmem:[%s10204_s2 + $0x60] sm:$0xf] }
  0x83   : > { %v6602_v37 = vld [vmem:[%s10204_s2 + $0x5ac] sm:$0xf]  ;;  %v5274_v12 = vld [vmem:[%s10204_s2 + $0x160] sm:$0xf] }
  0x84   : > { %1633 = vmatpush.bf16.msra.mxu1 %v4883_v38  ;;  %v4672_v38 = vld [vmem:[%s10204_s2 + $0x5b8] sm:$0xf0] }
  0x85   : > { %1647 = vmatpush.bf16.msra.mxu2 %v5011_v41  ;;  %v4947_v41 = vor.u32 %v6670_v31, %v4944_v33  ;;  %v4675_v47 = vor.u32 %v6602_v37, %v4672_v38  ;;  %v5578_v31 = vld [vmem:[%s10204_s2 + $0x3c0] sm:$0xf]  ;;  %v6443_v38 = vld [vmem:[%s10204_s2 + $0xac] sm:$0xf0] }
  0x86   : > { %1620 = vmatpush.bf16.msra.mxu0 %v4739_v46  ;;  %1609 = vmatpush.bf16.msrb.mxu3 %v4563_v57  ;;  %v6666_v46 = vld [vmem:[%s10204_s2 + $0x7ac] sm:$0xf]  ;;  %v5178_v37 = vld [vmem:[%s10204_s2 + $0xa0] sm:$0xf] }
  0x87   : > { %v6598_v57 = vld [vmem:[%s10204_s2 + $0x58c] sm:$0xf]  ;;  %v4931_v5 = vor.u32 %v6666_v46, %v4928_v51  ;;  %v6539_v46 = vld [vmem:[%s10204_s2 + $0x3ac] sm:$0xf0] }
  0x88   : > { %1634 = vmatpush.bf16.msra.mxu1 %v4867_v58  ;;  %v4656_v58 = vld [vmem:[%s10204_s2 + $0x598] sm:$0xf0] }
  0x89   : > { %1648 = vmatpush.bf16.msra.mxu2 %v4995_v63  ;;  %v6630_v63 = vld [vmem:[%s10204_s2 + $0x68c] sm:$0xf]  ;;  %v4659_v45 = vor.u32 %v6598_v57, %v4656_v58  ;;  %v6471_v58 = vld [vmem:[%s10204_s2 + $0x18c] sm:$0xf0] }
  0x8a   : > { %1621 = vmatpush.bf16.msra.mxu0 %v4723_v8  ;;  %1610 = vmatpush.bf16.msrb.mxu3 %v4547_v3  ;;  %v4784_v8 = vld [vmem:[%s10204_s2 + $0x698] sm:$0xf0] }
  0x8b   : > { %v5040_v3 = vld [vmem:[%s10204_s2 + $0x898] sm:$0xf0]  ;;  %v4787_v16 = vor.u32 %v6630_v63, %v4784_v8  ;;  %v6503_v63 = vld [vmem:[%s10204_s2 + $0x28c] sm:$0xf0] }
  0x8c   : > { %1635 = vmatpush.bf16.msra.mxu1 %v4851_v14  ;;  %v5338_v14 = vld [vmem:[%s10204_s2 + $0x1e0] sm:$0xf]  ;;  %v5043_v56 = vor.u32 %v6694_v48, %v5040_v3  ;;  %v6467_v48 = vld [vmem:[%s10204_s2 + $0x16c] sm:$0xf0] }
  0x8d   : > { %1649 = vmatpush.bf16.msra.mxu2 %v4979_v4  ;;  %v5466_v4 = vld [vmem:[%s10204_s2 + $0x2e0] sm:$0xf]  ;;  %v5339_v60 = vor.u32 %v6483_v54, %v5338_v14  ;;  %v6499_v14 = vld [vmem:[%s10204_s2 + $0x26c] sm:$0xf0] }
  0x8e   : > { %1622 = vmatpush.bf16.msra.mxu0 %v4707_v19  ;;  %1611 = vmatpush.bf16.msrb.mxu3 %v4531_v22  ;;  %v6547_v19 = vld [vmem:[%s10204_s2 + $0x3ec] sm:$0xf0]  ;;  %v5467_v11 = vor.u32 %v6515_v15, %v5466_v4  ;;  %v5402_v3 = vld [vmem:[%s10204_s2 + $0x260] sm:$0xf]  ;;  %v5275_v15 = vor.u32 %v6467_v48, %v5274_v12 }
  0x8f   : > { %v6447_v22 = vld [vmem:[%s10204_s2 + $0xcc] sm:$0xf0] }
  0x90   : > { %1636 = vmatpush.bf16.msra.mxu1 %v4835_v25  ;;  %v5322_v25 = vld [vmem:[%s10204_s2 + $0x1c0] sm:$0xf]  ;;  %v5195_v33 = vor.u32 %v6447_v22, %v5194_v20  ;;  %v6531_v54 = vld [vmem:[%s10204_s2 + $0x36c] sm:$0xf0] }
  0x91   : > { %1650 = vmatpush.bf16.msra.mxu2 %v4963_v26  ;;  %1612 = vmatmul.bf16.vlgmr.msrb.gmra.mxu3 %v7329_v50  ;;  %v6451_v50 = vld [vmem:[%s10204_s2 + $0xec] sm:$0xf0]  ;;  %v5595_v26 = vor.u32 %v6547_v19, %v5594_v17  ;;  %v5130_v17 = vld [vmem:[%s10204_s2 + $0x40] sm:$0xf] }
  0x92   : > { %1664 = vmatpush.bf16.msra.mxu3 %v5091_v28  ;;  %1623 = vmatpush.bf16.msra.mxu0 %v4691_v32  ;;  %v5211_v49 = vor.u32 %v6451_v50, %v5210_v0  ;;  %v6479_v28 = vld [vmem:[%s10204_s2 + $0x1cc] sm:$0xf0]  ;;  %v5546_v0 = vld [vmem:[%s10204_s2 + $0x380] sm:$0xf] }
  0x93   : > { %v6543_v32 = vld [vmem:[%s10204_s2 + $0x3cc] sm:$0xf0]  ;;  %v5323_v34 = vor.u32 %v6479_v28, %v5322_v25  ;;  %v5514_v22 = vld [vmem:[%s10204_s2 + $0x340] sm:$0xf] }
  0x94   : > { %1637 = vmatpush.bf16.msra.mxu1 %v4819_v40  ;;  %v5306_v40 = vld [vmem:[%s10204_s2 + $0x1a0] sm:$0xf]  ;;  %v6535_v50 = vld [vmem:[%s10204_s2 + $0x38c] sm:$0xf0] }
  0x95   : > { %1651 = vmatpush.bf16.msra.mxu2 %v4947_v41  ;;  %v5579_v41 = vor.u32 %v6543_v32, %v5578_v31  ;;  %v6431_v19 = vld [vmem:[%s10204_s2 + $0x4c] sm:$0xf0]  ;;  %v5242_v32 = vld [vmem:[%s10204_s2 + $0x120] sm:$0xf] }
  0x96   : > { %1665 = vmatpush.bf16.msra.mxu3 %v5075_v42  ;;  %1624 = vmatpush.bf16.msra.mxu0 %v4675_v47  ;;  %v6475_v42 = vld [vmem:[%s10204_s2 + $0x1ac] sm:$0xf0]  ;;  %v5179_v47 = vor.u32 %v6443_v38, %v5178_v37  ;;  %v5498_v38 = vld [vmem:[%s10204_s2 + $0x320] sm:$0xf] }
  0x97   : > { %v5307_v51 = vor.u32 %v6475_v42, %v5306_v40  ;;  %v6495_v20 = vld [vmem:[%s10204_s2 + $0x24c] sm:$0xf0]  ;;  %v5098_v42 = vld [vmem:[%s10204_s2] sm:$0xf] }
  0x98   : > { %1638 = vmatpush.bf16.msra.mxu1 %v4803_v62  ;;  %v5418_v62 = vld [vmem:[%s10204_s2 + $0x280] sm:$0xf]  ;;  %v6527_v25 = vld [vmem:[%s10204_s2 + $0x34c] sm:$0xf0] }
  0x99   : > { %1652 = vmatpush.bf16.msra.mxu2 %v4931_v5  ;;  %v5419_v8 = vor.u32 %v6503_v63, %v5418_v62  ;;  %v6427_v31 = vld [vmem:[%s10204_s2 + $0x2c] sm:$0xf0]  ;;  %v6449_v62 = vld [vmem:[%s10204_s2 + $0xe4] sm:$0xf]  ;;  %v5099_v63 = vor.u32 %v6423_v43, %v5098_v42  ;;  %v5164_v43 = vld [vmem:[%s10204_s2 + $0x90] sm:$0xf0] }
  0x9a   : > { %1666 = vmatpush.bf16.msra.mxu3 %v5059_v7  ;;  %1625 = vmatpush.bf16.msra.mxu0 %v4659_v45  ;;  %v5291_v7 = vor.u32 %v6471_v58, %v5290_v53  ;;  %v5547_v45 = vor.u32 %v6535_v50, %v5546_v0  ;;  %v6491_v37 = vld [vmem:[%s10204_s2 + $0x22c] sm:$0xf0]  ;;  %v5212_v0 = vld [vmem:[%s10204_s2 + $0xf0] sm:$0xf0]  ;;  %v6481_v50 = vld [vmem:[%s10204_s2 + $0x1e4] sm:$0xf] }
  0x9b   : > { %v6523_v40 = vld [vmem:[%s10204_s2 + $0x32c] sm:$0xf0]  ;;  %v5215_v48 = vor.u32 %v6449_v62, %v5212_v0  ;;  %v6437_v42 = vld [vmem:[%s10204_s2 + $0x84] sm:$0xf] }
  0x9c   : > { %1639 = vmatpush.bf16.msra.mxu1 %v4787_v16  ;;  %v5403_v16 = vor.u32 %v6499_v14, %v5402_v3  ;;  %v6519_v53 = vld [vmem:[%s10204_s2 + $0x30c] sm:$0xf0]  ;;  %v5642_v14 = vld [vmem:[%s10204_s2 + $0x440] sm:$0xf]  ;;  %v5167_v0 = vor.u32 %v6437_v42, %v5164_v43  ;;  %v5548_v42 = vld [vmem:[%s10204_s2 + $0x390] sm:$0xf0] }
  0x9d   : > { %1653 = vmatpush.bf16.msra.mxu2 %v4915_v55  ;;  %1626 = vmatmul.bf16.vlgmr.msra.gmra.mxu0 %v7399_v10  ;;  %v5562_v10 = vld [vmem:[%s10204_s2 + $0x3a0] sm:$0xf]  ;;  %v6563_v58 = vld [vmem:[%s10204_s2 + $0x46c] sm:$0xf0] }
  0x9e   : > { %2400 = vmatpush.bf16.msrb.mxu0 %v5211_v49  ;;  %1667 = vmatpush.bf16.msra.mxu3 %v5043_v56  ;;  %v5563_v57 = vor.u32 %v6539_v46, %v5562_v10  ;;  %v5530_v49 = vld [vmem:[%s10204_s2 + $0x360] sm:$0xf] }
  0x9f   : > { %1640 = vmatmul.bf16.vlgmr.msra.gmra.mxu1 %v7341_v59  ;;  %v6439_v59 = vld [vmem:[%s10204_s2 + $0x8c] sm:$0xf0]  ;;  %v5258_v55 = vld [vmem:[%s10204_s2 + $0x140] sm:$0xf]  ;;  %v5531_v56 = vor.u32 %v6531_v54, %v5530_v49  ;;  %v6445_v54 = vld [vmem:[%s10204_s2 + $0xc4] sm:$0xf] }
  0xa0   : > { %2414 = vmatpush.bf16.msrb.mxu1 %v5339_v60  ;;  %1654 = vmatmul.bf16.vlgmr.msra.gmra.mxu2 %v7354_v1  ;;  %v5162_v1 = vld [vmem:[%s10204_s2 + $0x80] sm:$0xf]  ;;  %v6463_v60 = vld [vmem:[%s10204_s2 + $0x14c] sm:$0xf0] }
  0xa1   : > { %2428 = vmatpush.bf16.msrb.mxu2 %v5467_v11  ;;  %5095 = vmatmul.msk.bf16.vlgmr.msra.gmra.mxu3 %vm1390_vm1, %v7456_v2  ;;  %v5163_v5 = vor.u32 %v6439_v59, %v5162_v1  ;;  %v6435_v2 = vld [vmem:[%s10204_s2 + $0x6c] sm:$0xf0]  ;;  %v5386_v11 = vld [vmem:[%s10204_s2 + $0x240] sm:$0xf]  ;;  %v5259_v28 = vor.u32 %v6463_v60, %v5258_v55  ;;  %v6509_v55 = vld [vmem:[%s10204_s2 + $0x2c4] sm:$0xf] }
  0xa2   : > { %2442 = vmatpush.bf16.msrb.mxu3 %v5595_v26  ;;  %2401 = vmatpush.bf16.msrb.mxu0 %v5195_v33  ;;  %v5147_v4 = vor.u32 %v6435_v2, %v5146_v9  ;;  %v5131_v26 = vor.u32 %v6431_v19, %v5130_v17  ;;  %v5387_v29 = vor.u32 %v6495_v20, %v5386_v11  ;;  %v5226_v46 = vld [vmem:[%s10204_s2 + $0x100] sm:$0xf]  ;;  %v6487_v1 = vld [vmem:[%s10204_s2 + $0x20c] sm:$0xf0]  ;;  %v6513_v9 = vld [vmem:[%s10204_s2 + $0x2e4] sm:$0xf] }
  0xa3   : > { %v5515_v33 = vor.u32 %v6527_v25, %v5514_v22  ;;  %v5482_v59 = vld [vmem:[%s10204_s2 + $0x300] sm:$0xf]  ;;  %v5468_v2 = vld [vmem:[%s10204_s2 + $0x2f0] sm:$0xf0]  ;;  %v6559_v49 = vld [vmem:[%s10204_s2 + $0x44c] sm:$0xf0] }
  0xa4   : > { %2415 = vmatpush.bf16.msrb.mxu1 %v5323_v34  ;;  %v6459_v34 = vld [vmem:[%s10204_s2 + $0x12c] sm:$0xf0]  ;;  %v5483_v12 = vor.u32 %v6519_v53, %v5482_v59  ;;  %v5324_v17 = vld [vmem:[%s10204_s2 + $0x1d0] sm:$0xf0]  ;;  %v5643_v60 = vor.u32 %v6559_v49, %v5642_v14  ;;  %v5626_v22 = vld [vmem:[%s10204_s2 + $0x420] sm:$0xf] }
  0xa5   : > { %2429 = vmatpush.bf16.msrb.mxu2 %v5451_v36  ;;  %v5370_v36 = vld [vmem:[%s10204_s2 + $0x220] sm:$0xf]  ;;  %v5243_v44 = vor.u32 %v6459_v34, %v5242_v32  ;;  %v6555_v25 = vld [vmem:[%s10204_s2 + $0x42c] sm:$0xf0]  ;;  %v6505_v32 = vld [vmem:[%s10204_s2 + $0x2a4] sm:$0xf] }
  0xa6   : > { %2443 = vmatpush.bf16.msrb.mxu3 %v5579_v41  ;;  %2402 = vmatpush.bf16.msrb.mxu0 %v5179_v47  ;;  %v5115_v41 = vor.u32 %v6427_v31, %v5114_v30  ;;  %v5371_v10 = vor.u32 %v6491_v37, %v5370_v36  ;;  %v6455_v47 = vld [vmem:[%s10204_s2 + $0x10c] sm:$0xf0]  ;;  %v6473_v30 = vld [vmem:[%s10204_s2 + $0x1a4] sm:$0xf]  ;;  %v5308_v31 = vld [vmem:[%s10204_s2 + $0x1b0] sm:$0xf0]  ;;  %v5627_v34 = vor.u32 %v6555_v25, %v5626_v22 }
  0xa7   : > { %v5610_v36 = vld [vmem:[%s10204_s2 + $0x400] sm:$0xf]  ;;  %v5420_v59 = vld [vmem:[%s10204_s2 + $0x290] sm:$0xf0]  ;;  %v6545_v53 = vld [vmem:[%s10204_s2 + $0x3e4] sm:$0xf] }
  0xa8   : > { %2416 = vmatpush.bf16.msrb.mxu1 %v5307_v51  ;;  %v5354_v51 = vld [vmem:[%s10204_s2 + $0x200] sm:$0xf]  ;;  %v6541_v14 = vld [vmem:[%s10204_s2 + $0x3c4] sm:$0xf]  ;;  %v5580_v49 = vld [vmem:[%s10204_s2 + $0x3d0] sm:$0xf0] }
  0xa9   : > { %2430 = vmatpush.bf16.msrb.mxu2 %v5435_v52  ;;  %v5499_v52 = vor.u32 %v6523_v40, %v5498_v38  ;;  %v5311_v40 = vor.u32 %v6473_v30, %v5308_v31  ;;  %v6537_v22 = vld [vmem:[%s10204_s2 + $0x3a4] sm:$0xf]  ;;  %v5564_v25 = vld [vmem:[%s10204_s2 + $0x3b0] sm:$0xf0] }
  0xaa   : > { %2444 = vmatpush.bf16.msrb.mxu3 %v5563_v57  ;;  %2403 = vmatpush.bf16.msrb.mxu0 %v5163_v5  ;;  %v5658_v57 = vld [vmem:[%s10204_s2 + $0x460] sm:$0xf]  ;;  %v5340_v5 = vld [vmem:[%s10204_s2 + $0x1f0] sm:$0xf0]  ;;  %v6425_v31 = vld [vmem:[%s10204_s2 + $0x24] sm:$0xf] }
  0xab   : > { %v5343_v3 = vor.u32 %v6481_v50, %v5340_v5  ;;  %v6433_v5 = vld [vmem:[%s10204_s2 + $0x64] sm:$0xf] }
  0xac   : > { %2417 = vmatpush.bf16.msrb.mxu1 %v5291_v7  ;;  %v5227_v7 = vor.u32 %v6455_v47, %v5226_v46  ;;  %v6469_v46 = vld [vmem:[%s10204_s2 + $0x184] sm:$0xf]  ;;  %v5292_v47 = vld [vmem:[%s10204_s2 + $0x190] sm:$0xf0] }
  0xad   : > { %2431 = vmatpush.bf16.msrb.mxu2 %v5419_v8  ;;  %v5355_v8 = vor.u32 %v6487_v1, %v5354_v51  ;;  %v6501_v51 = vld [vmem:[%s10204_s2 + $0x284] sm:$0xf]  ;;  %v5295_v50 = vor.u32 %v6469_v46, %v5292_v47  ;;  %v5100_v46 = vld [vmem:[%s10204_s2 + $0x10] sm:$0xf0] }
  0xae   : > { %2445 = vmatpush.bf16.msrb.mxu3 %v5547_v45  ;;  %2404 = vmatpush.bf16.msrb.mxu0 %v5147_v4  ;;  %v5659_v45 = vor.u32 %v6563_v58, %v5658_v57  ;;  %v5471_v4 = vor.u32 %v6513_v9, %v5468_v2  ;;  %v5596_v57 = vld [vmem:[%s10204_s2 + $0x3f0] sm:$0xf0]  ;;  %v5423_v9 = vor.u32 %v6501_v51, %v5420_v59  ;;  %v6453_v47 = vld [vmem:[%s10204_s2 + $0x104] sm:$0xf] }
  0xaf   : > { %v5599_v2 = vor.u32 %v6545_v53, %v5596_v57  ;;  %v5228_v59 = vld [vmem:[%s10204_s2 + $0x110] sm:$0xf0]  ;;  %v6485_v53 = vld [vmem:[%s10204_s2 + $0x204] sm:$0xf] }
  0xb0   : > { %2418 = vmatpush.bf16.msrb.mxu1 %v5275_v15  ;;  %v5196_v15 = vld [vmem:[%s10204_s2 + $0xd0] sm:$0xf0] }
  0xb1   : > { %2432 = vmatpush.bf16.msrb.mxu2 %v5403_v16  ;;  %v6477_v16 = vld [vmem:[%s10204_s2 + $0x1c4] sm:$0xf]  ;;  %v5199_v11 = vor.u32 %v6445_v54, %v5196_v15  ;;  %v5356_v57 = vld [vmem:[%s10204_s2 + $0x210] sm:$0xf0] }
  0xb2   : > { %2446 = vmatpush.bf16.msrb.mxu3 %v5531_v56  ;;  %2405 = vmatpush.bf16.msrb.mxu0 %v5131_v26  ;;  %v5452_v56 = vld [vmem:[%s10204_s2 + $0x2d0] sm:$0xf0]  ;;  %v5327_v20 = vor.u32 %v6477_v16, %v5324_v17  ;;  %v6441_v26 = vld [vmem:[%s10204_s2 + $0xa4] sm:$0xf] }
  0xb3   : > { %v6429_v15 = vld [vmem:[%s10204_s2 + $0x44] sm:$0xf]  ;;  %v5132_v16 = vld [vmem:[%s10204_s2 + $0x50] sm:$0xf0] }
  0xb4   : > { %2419 = vmatpush.bf16.msrb.mxu1 %v5259_v28  ;;  %v5455_v28 = vor.u32 %v6509_v55, %v5452_v56  ;;  %v6461_v55 = vld [vmem:[%s10204_s2 + $0x144] sm:$0xf]  ;;  %v5260_v56 = vld [vmem:[%s10204_s2 + $0x150] sm:$0xf0] }
  0xb5   : > { %2433 = vmatpush.bf16.msrb.mxu2 %v5387_v29  ;;  %v1403_v19 = vpop.f32.mrf.mxu0  ;;  %v5180_v29 = vld [vmem:[%s10204_s2 + $0xb0] sm:$0xf0]  ;;  %v5263_v30 = vor.u32 %v6461_v55, %v5260_v56  ;;  %v5202_v55 = vld [vmem:[%s10204_s2 + $0xc8] sm:$0xf]  ;;  %v6448_v56 = vld [vmem:[%s10204_s2 + $0xd4] sm:$0xf0] }
  0xb6   : > { %2447 = vmatpush.bf16.msrb.mxu3 %v5515_v33  ;;  %2406 = vmatpush.bf16.msrb.mxu0 %v5115_v41  ;;  %v5436_v33 = vld [vmem:[%s10204_s2 + $0x2b0] sm:$0xf0]  ;;  %v5183_v38 = vor.u32 %v6441_v26, %v5180_v29  ;;  %v6551_v41 = vld [vmem:[%s10204_s2 + $0x40c] sm:$0xf0]  ;;  %v5135_v29 = vor.u32 %v6429_v15, %v5132_v16  ;;  %v6557_v16 = vld [vmem:[%s10204_s2 + $0x444] sm:$0xf] }
  0xb7   : > { %v5611_v62 = vor.u32 %v6551_v41, %v5610_v36  ;;  %v6457_v36 = vld [vmem:[%s10204_s2 + $0x124] sm:$0xf]  ;;  %v5516_v15 = vld [vmem:[%s10204_s2 + $0x350] sm:$0xf0] }
  0xb8   : > { %2420 = vmatpush.bf16.msrb.mxu1 %v5243_v44  ;;  %v1417_v37 = vpop.f32.mrf.mxu1  ;;  %v6533_v41 = vld [vmem:[%s10204_s2 + $0x384] sm:$0xf] }
  0xb9   : > { %2434 = vmatpush.bf16.msrb.mxu2 %v5371_v10  ;;  %v1418_v44 = vadd.f32 %v1417_v37, %v1403_v19  ;;  %v5439_v10 = vor.u32 %v6505_v32, %v5436_v33  ;;  %v5583_v19 = vor.u32 %v6541_v14, %v5580_v49  ;;  %v5116_v32 = vld [vmem:[%s10204_s2 + $0x30] sm:$0xf0] }
  0xba   : > { %2448 = vmatpush.bf16.msrb.mxu3 %v5499_v52  ;;  %2407 = vmatpush.bf16.msrb.mxu0 %v5099_v63  ;;  %v5244_v37 = vld [vmem:[%s10204_s2 + $0x130] sm:$0xf0]  ;;  %v5119_v43 = vor.u32 %v6425_v31, %v5116_v32  ;;  %v6521_v31 = vld [vmem:[%s10204_s2 + $0x324] sm:$0xf] }
  0xbb   : > { %v1431_v1 = vpop.f32.mrf.mxu2  ;;  %v5500_v32 = vld [vmem:[%s10204_s2 + $0x330] sm:$0xf0] }
  0xbc   : > { %2421 = vmatpush.bf16.msrb.mxu1 %v5227_v7  ;;  %v1432_v58 = vadd.f32 %v1431_v1, %v1418_v44  ;;  %v1445_v63 = vpop.f32.mrf.mxu3  ;;  %v5148_v7 = vld [vmem:[%s10204_s2 + $0x70] sm:$0xf0]  ;;  %v5247_v44 = vor.u32 %v6457_v36, %v5244_v37  ;;  %v5551_v1 = vor.u32 %v6533_v41, %v5548_v42 }
  0xbd   : > { %2435 = vmatpush.bf16.msrb.mxu2 %v5355_v8  ;;  %2408 = vmatmul.bf16.vlgmr.msrb.gmra.mxu0 %v7282_v6  ;;  %v8271_v52 = vpop.f32.mrf.mxu0  ;;  %v5151_v54 = vor.u32 %v6433_v5, %v5148_v7  ;;  %v5218_v5 = vld [vmem:[%s10204_s2 + $0xe8] sm:$0xf]  ;;  %v6452_v7 = vld [vmem:[%s10204_s2 + $0xf4] sm:$0xf0]  ;;  %v5628_v37 = vld [vmem:[%s10204_s2 + $0x430] sm:$0xf0] }
  0xbe   : > { %2449 = vmatpush.bf16.msrb.mxu3 %v5483_v12  ;;  %2460 = vmatpush.bf16.msra.mxu0 %v5659_v45  ;;  %v1446_v8 = vadd.f32 %v1445_v63, %v1432_v58  ;;  %v6465_v12 = vld [vmem:[%s10204_s2 + $0x164] sm:$0xf]  ;;  %v5276_v45 = vld [vmem:[%s10204_s2 + $0x170] sm:$0xf0] }
  0xbf   : > { %2422 = vmatmul.bf16.vlgmr.msrb.gmra.mxu1 %v7314_v35  ;;  %v5532_v63 = vld [vmem:[%s10204_s2 + $0x370] sm:$0xf0] }
  0xc0   : > { %2470 = vmatpush.bf16.msra.mxu1 %v5215_v48  ;;  %2436 = vmatmul.bf16.vlgmr.msrb.gmra.mxu2 %v7291_v13  ;;  %v6497_v48 = vld [vmem:[%s10204_s2 + $0x264] sm:$0xf] }
  0xc1   : > { %2484 = vmatpush.bf16.msra.mxu2 %v5343_v3  ;;  %2450 = vmatmul.bf16.vlgmr.msrb.gmra.mxu3 %v7299_v21  ;;  %v5404_v3 = vld [vmem:[%s10204_s2 + $0x270] sm:$0xf0] }
  0xc2   : > { %2498 = vmatpush.bf16.msra.mxu3 %v5471_v4  ;;  %2461 = vmatpush.bf16.msra.mxu0 %v5643_v60  ;;  %v5279_v4 = vor.u32 %v6465_v12, %v5276_v45  ;;  %v5407_v17 = vor.u32 %v6497_v48, %v5404_v3  ;;  %v6493_v60 = vld [vmem:[%s10204_s2 + $0x244] sm:$0xf]  ;;  %v5231_v12 = vor.u32 %v6453_v47, %v5228_v59  ;;  %v5346_v45 = vld [vmem:[%s10204_s2 + $0x1e8] sm:$0xf]  ;;  %v6484_v48 = vld [vmem:[%s10204_s2 + $0x1f4] sm:$0xf0] }
  0xc3   : > { %v8378_v58 = vpop.f32.mrf.mxu2  ;;  %v5359_v3 = vor.u32 %v6485_v53, %v5356_v57  ;;  %v6517_v47 = vld [vmem:[%s10204_s2 + $0x304] sm:$0xf]  ;;  %v5484_v59 = vld [vmem:[%s10204_s2 + $0x310] sm:$0xf0] }
  0xc4   : > { %2471 = vmatpush.bf16.msra.mxu1 %v5199_v11  ;;  %v6549_v53 = vld [vmem:[%s10204_s2 + $0x404] sm:$0xf]  ;;  %v5612_v57 = vld [vmem:[%s10204_s2 + $0x410] sm:$0xf0] }
  0xc5   : > { %2485 = vmatpush.bf16.msra.mxu2 %v5327_v20  ;;  %v1459_v11 = vpop.f32.mrf.mxu0  ;;  %v5388_v20 = vld [vmem:[%s10204_s2 + $0x250] sm:$0xf0] }
  0xc6   : > { %2499 = vmatpush.bf16.msra.mxu3 %v5455_v28  ;;  %2462 = vmatpush.bf16.msra.mxu0 %v5627_v34  ;;  %v8330_v26 = vadd.f32 %v1459_v11, %v1446_v8  ;;  %v8332_v28 = vpop.f32.mrf.mxu1  ;;  %v5391_v33 = vor.u32 %v6493_v60, %v5388_v20  ;;  %v5567_v34 = vor.u32 %v6537_v22, %v5564_v25  ;;  %v8398_v8 = vpop.f32.mrf.mxu3  ;;  %v5330_v11 = vld [vmem:[%s10204_s2 + $0x1c8] sm:$0xf]  ;;  %v6480_v20 = vld [vmem:[%s10204_s2 + $0x1d4] sm:$0xf0] }
  0xc8   : > { %2472 = vmatpush.bf16.msra.mxu1 %v5183_v38  ;;  %v6489_v38 = vld [vmem:[%s10204_s2 + $0x224] sm:$0xf] }
  0xc9   : > { %2486 = vmatpush.bf16.msra.mxu2 %v5311_v40  ;;  %v5372_v40 = vld [vmem:[%s10204_s2 + $0x230] sm:$0xf0] }
  0xca   : > { %2500 = vmatpush.bf16.msra.mxu3 %v5439_v10  ;;  %2463 = vmatpush.bf16.msra.mxu0 %v5611_v62  ;;  %v6421_v10 = vld [vmem:[%s10204_s2 + $0x4] sm:$0xf]  ;;  %v5375_v51 = vor.u32 %v6489_v38, %v5372_v40  ;;  %v5186_v38 = vld [vmem:[%s10204_s2 + $0xa8] sm:$0xf]  ;;  %v6444_v40 = vld [vmem:[%s10204_s2 + $0xb4] sm:$0xf0] }
  0xcb   : > { %v6529_v62 = vld [vmem:[%s10204_s2 + $0x364] sm:$0xf] }
  0xcc   : > { %2473 = vmatpush.bf16.msra.mxu1 %v5167_v0  ;;  %v6561_v0 = vld [vmem:[%s10204_s2 + $0x464] sm:$0xf]  ;;  %v5535_v14 = vor.u32 %v6529_v62, %v5532_v63  ;;  %v5170_v63 = vld [vmem:[%s10204_s2 + $0x88] sm:$0xf] }
  0xcd   : > { %2487 = vmatpush.bf16.msra.mxu2 %v5295_v50  ;;  %5672 = vmatmul.msk.bf16.vlgmr.msra.gmra.mxu0 %vm1390_vm1, %v7396_v61  ;;  %v5660_v50 = vld [vmem:[%s10204_s2 + $0x470] sm:$0xf0]  ;;  %v8424_v60 = vpop.f32.mrf.mxu0 }
  0xce   : > { %2501 = vmatpush.bf16.msra.mxu3 %v5423_v9  ;;  %2512 = vmatpush.bf16.msrb.mxu0 %v5599_v2  ;;  %v1473_v9 = vpop.f32.mrf.mxu1  ;;  %v5103_v2 = vor.u32 %v6421_v10, %v5100_v46  ;;  %v5663_v49 = vor.u32 %v6561_v0, %v5660_v50  ;;  %v5503_v46 = vor.u32 %v6521_v31, %v5500_v32  ;;  %v6440_v0 = vld [vmem:[%s10204_s2 + $0x94] sm:$0xf0]  ;;  %v5298_v50 = vld [vmem:[%s10204_s2 + $0x188] sm:$0xf] }
  0xd0   : > { %2474 = vmatpush.bf16.msra.mxu1 %v5151_v54  ;;  %v5219_v54 = vor.u32 %v6452_v7, %v5218_v5  ;;  %v6472_v7 = vld [vmem:[%s10204_s2 + $0x194] sm:$0xf0] }
  0xd1   : > { %2488 = vmatpush.bf16.msra.mxu2 %v5279_v4  ;;  %v6525_v4 = vld [vmem:[%s10204_s2 + $0x344] sm:$0xf] }
  0xd2   : > { %2502 = vmatpush.bf16.msra.mxu3 %v5407_v17  ;;  %2513 = vmatpush.bf16.msrb.mxu0 %v5583_v19  ;;  %v5347_v17 = vor.u32 %v6484_v48, %v5346_v45  ;;  %v5644_v19 = vld [vmem:[%s10204_s2 + $0x450] sm:$0xf0]  ;;  %v5519_v22 = vor.u32 %v6525_v4, %v5516_v15  ;;  %v5487_v45 = vor.u32 %v6517_v47, %v5484_v59  ;;  %v5602_v48 = vld [vmem:[%s10204_s2 + $0x3e8] sm:$0xf] }
  0xd3   : > { %v5647_v25 = vor.u32 %v6557_v16, %v5644_v19  ;;  %v5154_v15 = vld [vmem:[%s10204_s2 + $0x68] sm:$0xf]  ;;  %v6436_v16 = vld [vmem:[%s10204_s2 + $0x74] sm:$0xf0] }
  0xd4   : > { %2475 = vmatpush.bf16.msra.mxu1 %v5135_v29  ;;  %v5203_v29 = vor.u32 %v6448_v56, %v5202_v55  ;;  %v1501_v42 = vpop.f32.mrf.mxu3  ;;  %v6468_v55 = vld [vmem:[%s10204_s2 + $0x174] sm:$0xf0]  ;;  %v5458_v56 = vld [vmem:[%s10204_s2 + $0x2c8] sm:$0xf] }
  0xd5   : > { %2489 = vmatpush.bf16.msra.mxu2 %v5263_v30  ;;  %v1487_v30 = vpop.f32.mrf.mxu2  ;;  %v5250_v59 = vld [vmem:[%s10204_s2 + $0x128] sm:$0xf] }
  0xd6   : > { %2503 = vmatpush.bf16.msra.mxu3 %v5391_v33  ;;  %2514 = vmatpush.bf16.msrb.mxu0 %v5567_v34  ;;  %v6553_v33 = vld [vmem:[%s10204_s2 + $0x424] sm:$0xf]  ;;  %v5331_v34 = vor.u32 %v6480_v20, %v5330_v11  ;;  %v1488_v36 = vadd.f32 %v1487_v30, %v1473_v9  ;;  %v8453_v41 = vpop.f32.mrf.mxu1  ;;  %v5474_v9 = vld [vmem:[%s10204_s2 + $0x2e8] sm:$0xf]  ;;  %v6512_v11 = vld [vmem:[%s10204_s2 + $0x2d4] sm:$0xf0]  ;;  %v5155_v30 = vor.u32 %v6436_v16, %v5154_v15 }
  0xd7   : > { %v5459_v32 = vor.u32 %v6512_v11, %v5458_v56  ;;  %v6532_v16 = vld [vmem:[%s10204_s2 + $0x374] sm:$0xf0]  ;;  %v6450_v56 = vld [vmem:[%s10204_s2 + $0xec] sm:$0xf]  ;;  %v5220_v11 = vld [vmem:[%s10204_s2 + $0xf8] sm:$0xf0] }
  0xd8   : > { %2476 = vmatpush.bf16.msra.mxu1 %v5119_v43  ;;  %v5314_v43 = vld [vmem:[%s10204_s2 + $0x1a8] sm:$0xf]  ;;  %v1502_v10 = vadd.f32 %v1501_v42, %v1488_v36  ;;  %v6508_v42 = vld [vmem:[%s10204_s2 + $0x2b4] sm:$0xf0] }
  0xd9   : > { %2490 = vmatpush.bf16.msra.mxu2 %v5247_v44  ;;  %v6476_v44 = vld [vmem:[%s10204_s2 + $0x1b4] sm:$0xf0]  ;;  %v5266_v36 = vld [vmem:[%s10204_s2 + $0x148] sm:$0xf] }
  0xda   : > { %2504 = vmatpush.bf16.msra.mxu3 %v5375_v51  ;;  %2515 = vmatpush.bf16.msrb.mxu0 %v5551_v1  ;;  %v5631_v51 = vor.u32 %v6553_v33, %v5628_v37  ;;  %v5187_v1 = vor.u32 %v6444_v40, %v5186_v38  ;;  %v5315_v62 = vor.u32 %v6476_v44, %v5314_v43  ;;  %v1515_v5 = vpop.f32.mrf.mxu0  ;;  %v5138_v33 = vld [vmem:[%s10204_s2 + $0x48] sm:$0xf]  ;;  %v6464_v38 = vld [vmem:[%s10204_s2 + $0x154] sm:$0xf0] }
  0xdb   : > { %v5442_v40 = vld [vmem:[%s10204_s2 + $0x2a8] sm:$0xf]  ;;  %v6540_v44 = vld [vmem:[%s10204_s2 + $0x3b4] sm:$0xf0] }
  0xdc   : > { %2477 = vmatpush.bf16.msra.mxu1 %v5103_v2  ;;  %v6516_v2 = vld [vmem:[%s10204_s2 + $0x2f4] sm:$0xf0]  ;;  %v5570_v43 = vld [vmem:[%s10204_s2 + $0x3a8] sm:$0xf]  ;;  %v5443_v47 = vor.u32 %v6508_v42, %v5442_v40  ;;  %v8597_v15 = vpop.f32.mrf.mxu3  ;;  %v6446_v40 = vld [vmem:[%s10204_s2 + $0xcc] sm:$0xf] }
  0xdd   : > { %2491 = vmatpush.bf16.msra.mxu2 %v5231_v12  ;;  %v1516_v12 = vadd.f32 %v1515_v5, %v1502_v10  ;;  %v5475_v4 = vor.u32 %v6516_v2, %v5474_v9  ;;  %v5204_v42 = vld [vmem:[%s10204_s2 + $0xd8] sm:$0xf0] }
  0xde   : > { %2505 = vmatpush.bf16.msra.mxu3 %v5359_v3  ;;  %2516 = vmatpush.bf16.msrb.mxu0 %v5535_v14  ;;  %v6548_v3 = vld [vmem:[%s10204_s2 + $0x3f4] sm:$0xf0]  ;;  %v5615_v14 = vor.u32 %v6549_v53, %v5612_v57  ;;  %v1529_v20 = vpop.f32.mrf.mxu1  ;;  %v5571_v53 = vor.u32 %v6540_v44, %v5570_v43 }
  0xdf   : > { %2478 = vmatmul.bf16.vlgmr.msra.gmra.mxu1 %v7282_v6  ;;  %v5603_v19 = vor.u32 %v6548_v3, %v5602_v48  ;;  %v6460_v57 = vld [vmem:[%s10204_s2 + $0x134] sm:$0xf0] }
  0xe0   : > { %2530 = vmatpush.bf16.msrb.mxu1 %v5663_v49  ;;  %2492 = vmatmul.bf16.vlgmr.msra.gmra.mxu2 %v7314_v35  ;;  %v5171_v49 = vor.u32 %v6440_v0, %v5170_v63  ;;  %v6504_v63 = vld [vmem:[%s10204_s2 + $0x294] sm:$0xf0]  ;;  %v5554_v0 = vld [vmem:[%s10204_s2 + $0x388] sm:$0xf]  ;;  %v5251_v9 = vor.u32 %v6460_v57, %v5250_v59  ;;  %v5207_v59 = vor.u32 %v6446_v40, %v5204_v42  ;;  %v6478_v42 = vld [vmem:[%s10204_s2 + $0x1cc] sm:$0xf] }
  0xe1   : > { %2540 = vmatpush.bf16.msrb.mxu2 %v5219_v54  ;;  %2506 = vmatmul.bf16.vlgmr.msra.gmra.mxu3 %v7291_v13  ;;  %v5299_v54 = vor.u32 %v6472_v7, %v5298_v50  ;;  %v6536_v50 = vld [vmem:[%s10204_s2 + $0x394] sm:$0xf0]  ;;  %v5106_v7 = vld [vmem:[%s10204_s2 + $0x8] sm:$0xf] }
  0xe2   : > { %2554 = vmatpush.bf16.msrb.mxu3 %v5347_v17  ;;  %2517 = vmatpush.bf16.msrb.mxu0 %v5519_v22  ;;  %v5282_v17 = vld [vmem:[%s10204_s2 + $0x168] sm:$0xf]  ;;  %v6456_v48 = vld [vmem:[%s10204_s2 + $0x114] sm:$0xf0]  ;;  %v5555_v3 = vor.u32 %v6536_v50, %v5554_v0  ;;  %v6442_v50 = vld [vmem:[%s10204_s2 + $0xac] sm:$0xf] }
  0xe3   : > { %v5586_v22 = vld [vmem:[%s10204_s2 + $0x3c8] sm:$0xf]  ;;  %v5283_v31 = vor.u32 %v6468_v55, %v5282_v17  ;;  %v6524_v57 = vld [vmem:[%s10204_s2 + $0x334] sm:$0xf0] }
  0xe4   : > { %2531 = vmatpush.bf16.msrb.mxu1 %v5647_v25  ;;  %v6544_v25 = vld [vmem:[%s10204_s2 + $0x3d4] sm:$0xf0]  ;;  %v5666_v17 = vld [vmem:[%s10204_s2 + $0x468] sm:$0xf] }
  0xe5   : > { %2541 = vmatpush.bf16.msrb.mxu2 %v5203_v29  ;;  %v8521_v29 = vadd.f32 %v1529_v20, %v1516_v12  ;;  %v5587_v37 = vor.u32 %v6544_v25, %v5586_v22  ;;  %v6424_v12 = vld [vmem:[%s10204_s2 + $0x14] sm:$0xf0] }
  0xe6   : > { %2555 = vmatpush.bf16.msrb.mxu3 %v5331_v34  ;;  %2518 = vmatpush.bf16.msrb.mxu0 %v5503_v46  ;;  %v6432_v34 = vld [vmem:[%s10204_s2 + $0x54] sm:$0xf0]  ;;  %v5267_v46 = vor.u32 %v6464_v38, %v5266_v36  ;;  %v5107_v55 = vor.u32 %v6424_v12, %v5106_v7 }
  0xe7   : > { %v5139_v10 = vor.u32 %v6432_v34, %v5138_v33  ;;  %v5522_v33 = vld [vmem:[%s10204_s2 + $0x348] sm:$0xf]  ;;  %v5223_v34 = vor.u32 %v6450_v56, %v5220_v11  ;;  %v6528_v36 = vld [vmem:[%s10204_s2 + $0x354] sm:$0xf0]  ;;  %v6514_v56 = vld [vmem:[%s10204_s2 + $0x2ec] sm:$0xf] }
  0xe8   : > { %2532 = vmatpush.bf16.msrb.mxu1 %v5631_v51  ;;  %v5122_v51 = vld [vmem:[%s10204_s2 + $0x28] sm:$0xf]  ;;  %v6560_v38 = vld [vmem:[%s10204_s2 + $0x454] sm:$0xf0]  ;;  %v5523_v44 = vor.u32 %v6528_v36, %v5522_v33  ;;  %v5156_v36 = vld [vmem:[%s10204_s2 + $0x78] sm:$0xf0] }
  0xe9   : > { %2542 = vmatpush.bf16.msrb.mxu2 %v5187_v1  ;;  %v6428_v1 = vld [vmem:[%s10204_s2 + $0x34] sm:$0xf0] }
  0xea   : > { %2556 = vmatpush.bf16.msrb.mxu3 %v5315_v62  ;;  %2519 = vmatpush.bf16.msrb.mxu0 %v5487_v45  ;;  %v5426_v62 = vld [vmem:[%s10204_s2 + $0x288] sm:$0xf]  ;;  %v5123_v5 = vor.u32 %v6428_v1, %v5122_v51 }
  0xeb   : > { %v5427_v2 = vor.u32 %v6504_v63, %v5426_v62  ;;  %v5234_v45 = vld [vmem:[%s10204_s2 + $0x108] sm:$0xf]  ;;  %v6556_v63 = vld [vmem:[%s10204_s2 + $0x434] sm:$0xf0] }
  0xec   : > { %2533 = vmatpush.bf16.msrb.mxu1 %v5615_v14  ;;  %v5410_v14 = vld [vmem:[%s10204_s2 + $0x268] sm:$0xf]  ;;  %v5235_v20 = vor.u32 %v6456_v48, %v5234_v45 }
  0xed   : > { %2543 = vmatpush.bf16.msrb.mxu2 %v5171_v49  ;;  %2520 = vmatmul.bf16.vlgmr.msrb.gmra.mxu0 %v7299_v21  ;;  %v6500_v49 = vld [vmem:[%s10204_s2 + $0x274] sm:$0xf0]  ;;  %v5506_v51 = vld [vmem:[%s10204_s2 + $0x328] sm:$0xf] }
  0xee   : > { %2557 = vmatpush.bf16.msrb.mxu3 %v5299_v54  ;;  %2568 = vmatpush.bf16.msra.mxu0 %v5475_v4  ;;  %v5538_v54 = vld [vmem:[%s10204_s2 + $0x368] sm:$0xf]  ;;  %v8595_v4 = vpop.f32.mrf.mxu2  ;;  %v5411_v22 = vor.u32 %v6500_v49, %v5410_v14  ;;  %v5507_v12 = vor.u32 %v6524_v57, %v5506_v51  ;;  %v5588_v51 = vld [vmem:[%s10204_s2 + $0x3d8] sm:$0xf0] }
  0xef   : > { %5673 = vmatmul.msk.bf16.vlgmr.msrb.gmra.mxu1 %vm1390_vm1, %v7396_v61  ;;  %v5539_v25 = vor.u32 %v6532_v16, %v5538_v54  ;;  %v5634_v62 = vld [vmem:[%s10204_s2 + $0x428] sm:$0xf]  ;;  %v6552_v54 = vld [vmem:[%s10204_s2 + $0x414] sm:$0xf0]  ;;  %v6438_v16 = vld [vmem:[%s10204_s2 + $0x8c] sm:$0xf] }
  0xf0   : > { %2582 = vmatpush.bf16.msra.mxu1 %v5603_v19  ;;  %v6564_v19 = vld [vmem:[%s10204_s2 + $0x474] sm:$0xf0]  ;;  %v5635_v45 = vor.u32 %v6556_v63, %v5634_v62  ;;  %v5490_v48 = vld [vmem:[%s10204_s2 + $0x308] sm:$0xf]  ;;  %v5140_v57 = vld [vmem:[%s10204_s2 + $0x58] sm:$0xf0] }
  0xf1   : > { %2544 = vmatpush.bf16.msrb.mxu2 %v5155_v30  ;;  %v5667_v30 = vor.u32 %v6564_v19, %v5666_v17  ;;  %v5618_v14 = vld [vmem:[%s10204_s2 + $0x408] sm:$0xf]  ;;  %v5172_v17 = vld [vmem:[%s10204_s2 + $0x98] sm:$0xf0]  ;;  %v6482_v19 = vld [vmem:[%s10204_s2 + $0x1ec] sm:$0xf] }
  0xf2   : > { %2558 = vmatpush.bf16.msrb.mxu3 %v5283_v31  ;;  %2569 = vmatpush.bf16.msra.mxu0 %v5459_v32  ;;  %v5394_v31 = vld [vmem:[%s10204_s2 + $0x248] sm:$0xf]  ;;  %v6496_v32 = vld [vmem:[%s10204_s2 + $0x254] sm:$0xf0] }
  0xf3   : > { %v5395_v43 = vor.u32 %v6496_v32, %v5394_v31  ;;  %v5619_v31 = vor.u32 %v6552_v54, %v5618_v14  ;;  %v5175_v32 = vor.u32 %v6438_v16, %v5172_v17  ;;  %v6426_v14 = vld [vmem:[%s10204_s2 + $0x2c] sm:$0xf] }
  0xf4   : > { %2583 = vmatpush.bf16.msra.mxu1 %v5587_v37  ;;  %v5650_v37 = vld [vmem:[%s10204_s2 + $0x448] sm:$0xf] }
  0xf5   : > { %2545 = vmatpush.bf16.msrb.mxu2 %v5139_v10  ;;  %v5651_v10 = vor.u32 %v6560_v38, %v5650_v37  ;;  %v8714_v37 = vpop.f32.mrf.mxu0 }
  0xf6   : > { %2559 = vmatpush.bf16.msrb.mxu3 %v5267_v46  ;;  %2570 = vmatpush.bf16.msra.mxu0 %v5443_v47  ;;  %v5378_v46 = vld [vmem:[%s10204_s2 + $0x228] sm:$0xf]  ;;  %v6492_v47 = vld [vmem:[%s10204_s2 + $0x234] sm:$0xf0]  ;;  %v1543_v1 = vpop.f32.mrf.mxu2 }
  0xf7   : > { %v5379_v7 = vor.u32 %v6492_v47, %v5378_v46  ;;  %v5460_v46 = vld [vmem:[%s10204_s2 + $0x2d8] sm:$0xf0]  ;;  %v6542_v47 = vld [vmem:[%s10204_s2 + $0x3cc] sm:$0xf] }
  0xf8   : > { %2584 = vmatpush.bf16.msra.mxu1 %v5571_v53  ;;  %v1557_v53 = vpop.f32.mrf.mxu3  ;;  %v5591_v63 = vor.u32 %v6542_v47, %v5588_v51  ;;  %v5540_v47 = vld [vmem:[%s10204_s2 + $0x378] sm:$0xf0]  ;;  %v6562_v51 = vld [vmem:[%s10204_s2 + $0x46c] sm:$0xf] }
  0xf9   : > { %2546 = vmatpush.bf16.msrb.mxu2 %v5123_v5  ;;  %v8658_v0 = vadd.f32 %v1557_v53, %v1543_v1  ;;  %v5188_v5 = vld [vmem:[%s10204_s2 + $0xb8] sm:$0xf0]  ;;  %v6430_v53 = vld [vmem:[%s10204_s2 + $0x4c] sm:$0xf] }
  0xfa   : > { %2560 = vmatpush.bf16.msrb.mxu3 %v5251_v9  ;;  %2571 = vmatpush.bf16.msra.mxu0 %v5427_v2  ;;  %v5362_v9 = vld [vmem:[%s10204_s2 + $0x208] sm:$0xf]  ;;  %v6488_v2 = vld [vmem:[%s10204_s2 + $0x214] sm:$0xf0]  ;;  %v5191_v49 = vor.u32 %v6442_v50, %v5188_v5  ;;  %v6474_v50 = vld [vmem:[%s10204_s2 + $0x1ac] sm:$0xf] }
  0xfb   : > { %v5363_v11 = vor.u32 %v6488_v2, %v5362_v9  ;;  %v5316_v5 = vld [vmem:[%s10204_s2 + $0x1b8] sm:$0xf0] }
  0xfc   : > { %2585 = vmatpush.bf16.msra.mxu1 %v5555_v3  ;;  %v6520_v3 = vld [vmem:[%s10204_s2 + $0x314] sm:$0xf0]  ;;  %v5444_v2 = vld [vmem:[%s10204_s2 + $0x2b8] sm:$0xf0] }
  0xfd   : > { %2547 = vmatpush.bf16.msrb.mxu2 %v5107_v55  ;;  %v5348_v55 = vld [vmem:[%s10204_s2 + $0x1f8] sm:$0xf0]  ;;  %v8770_v54 = vpop.f32.mrf.mxu0 }
  0xfe   : > { %2561 = vmatpush.bf16.msrb.mxu3 %v5235_v20  ;;  %2572 = vmatpush.bf16.msra.mxu0 %v5411_v22  ;;  %v5476_v20 = vld [vmem:[%s10204_s2 + $0x2f8] sm:$0xf0]  ;;  %v6546_v22 = vld [vmem:[%s10204_s2 + $0x3ec] sm:$0xf]  ;;  %v5351_v33 = vor.u32 %v6482_v19, %v5348_v55  ;;  %v8751_v9 = vpop.f32.mrf.mxu2 }
  0xff   : > { %v5479_v38 = vor.u32 %v6514_v56, %v5476_v20  ;;  %v6470_v19 = vld [vmem:[%s10204_s2 + $0x18c] sm:$0xf]  ;;  %v5300_v55 = vld [vmem:[%s10204_s2 + $0x198] sm:$0xf0] }
 0x100   : > { %2586 = vmatpush.bf16.msra.mxu1 %v5539_v25  ;;  %2548 = vmatmul.bf16.vlgmr.msrb.gmra.mxu2 %v7282_v6  ;;  %v5604_v25 = vld [vmem:[%s10204_s2 + $0x3f8] sm:$0xf0]  ;;  %v6502_v56 = vld [vmem:[%s10204_s2 + $0x28c] sm:$0xf] }
 0x101   : > { %2600 = vmatpush.bf16.msra.mxu2 %v5667_v30  ;;  %2562 = vmatmul.bf16.vlgmr.msrb.gmra.mxu3 %v7314_v35  ;;  %v5491_v30 = vor.u32 %v6520_v3, %v5490_v48  ;;  %v5607_v40 = vor.u32 %v6546_v22, %v5604_v25  ;;  %v5143_v48 = vor.u32 %v6430_v53, %v5140_v57  ;;  %v5428_v20 = vld [vmem:[%s10204_s2 + $0x298] sm:$0xf0]  ;;  %v6534_v22 = vld [vmem:[%s10204_s2 + $0x38c] sm:$0xf] }
 0x102   : > { %2610 = vmatpush.bf16.msra.mxu3 %v5223_v34  ;;  %2573 = vmatpush.bf16.msra.mxu0 %v5395_v43  ;;  %v6434_v34 = vld [vmem:[%s10204_s2 + $0x6c] sm:$0xf]  ;;  %v5332_v43 = vld [vmem:[%s10204_s2 + $0x1d8] sm:$0xf0]  ;;  %v5319_v3 = vor.u32 %v6474_v50, %v5316_v5 }
 0x103   : > { %v5159_v1 = vor.u32 %v6434_v34, %v5156_v36  ;;  %v5556_v25 = vld [vmem:[%s10204_s2 + $0x398] sm:$0xf0]  ;;  %v8800_v34 = vpop.f32.mrf.mxu3  ;;  %v5431_v36 = vor.u32 %v6502_v56, %v5428_v20  ;;  %v6462_v50 = vld [vmem:[%s10204_s2 + $0x14c] sm:$0xf] }
 0x104   : > { %2587 = vmatpush.bf16.msra.mxu1 %v5523_v44  ;;  %v6510_v44 = vld [vmem:[%s10204_s2 + $0x2cc] sm:$0xf]  ;;  %v5268_v5 = vld [vmem:[%s10204_s2 + $0x158] sm:$0xf0] }
 0x105   : > { %2601 = vmatpush.bf16.msra.mxu2 %v5651_v10  ;;  %v8725_v10 = vpop.f32.mrf.mxu1  ;;  %v5463_v62 = vor.u32 %v6510_v44, %v5460_v46  ;;  %v5412_v44 = vld [vmem:[%s10204_s2 + $0x278] sm:$0xf0]  ;;  %v6530_v46 = vld [vmem:[%s10204_s2 + $0x36c] sm:$0xf] }
 0x106   : > { %2611 = vmatpush.bf16.msra.mxu3 %v5207_v59  ;;  %2574 = vmatpush.bf16.msra.mxu0 %v5379_v7  ;;  %v5335_v59 = vor.u32 %v6478_v42, %v5332_v43  ;;  %v6506_v7 = vld [vmem:[%s10204_s2 + $0x2ac] sm:$0xf]  ;;  %v5284_v42 = vld [vmem:[%s10204_s2 + $0x178] sm:$0xf0] }
 0x107   : > { %v5447_v16 = vor.u32 %v6506_v7, %v5444_v2  ;;  %v6498_v43 = vld [vmem:[%s10204_s2 + $0x26c] sm:$0xf] }
 0x108   : > { %2588 = vmatpush.bf16.msra.mxu1 %v5507_v12  ;;  %v6538_v12 = vld [vmem:[%s10204_s2 + $0x3ac] sm:$0xf] }
 0x109   : > { %2602 = vmatpush.bf16.msra.mxu2 %v5635_v45  ;;  %v5572_v45 = vld [vmem:[%s10204_s2 + $0x3b8] sm:$0xf0]  ;;  %v6494_v7 = vld [vmem:[%s10204_s2 + $0x24c] sm:$0xf] }
 0x10a   : > { %2612 = vmatpush.bf16.msra.mxu3 %v5191_v49  ;;  %2575 = vmatpush.bf16.msra.mxu0 %v5363_v11  ;;  %v5124_v49 = vld [vmem:[%s10204_s2 + $0x38] sm:$0xf0]  ;;  %v5575_v17 = vor.u32 %v6538_v12, %v5572_v45  ;;  %v6526_v45 = vld [vmem:[%s10204_s2 + $0x34c] sm:$0xf] }
 0x10b   : > { %v5396_v12 = vld [vmem:[%s10204_s2 + $0x258] sm:$0xf0]  ;;  %v6458_v20 = vld [vmem:[%s10204_s2 + $0x12c] sm:$0xf] }
 0x10c   : > { %2589 = vmatpush.bf16.msra.mxu1 %v5491_v30  ;;  %v5127_v30 = vor.u32 %v6426_v14, %v5124_v49  ;;  %v6558_v14 = vld [vmem:[%s10204_s2 + $0x44c] sm:$0xf]  ;;  %v5652_v49 = vld [vmem:[%s10204_s2 + $0x458] sm:$0xf0] }
 0x10d   : > { %2603 = vmatpush.bf16.msra.mxu2 %v5619_v31  ;;  %2576 = vmatmul.bf16.vlgmr.msra.gmra.mxu0 %v7291_v13  ;;  %v8781_v11 = vpop.f32.mrf.mxu1  ;;  %v5303_v31 = vor.u32 %v6470_v19, %v5300_v55  ;;  %v5399_v55 = vor.u32 %v6494_v7, %v5396_v12  ;;  %v5934_v7 = vld [vmem:[%s10204_s2 + $0x9e0] sm:$0xf] }
 0x10e   : > { %2613 = vmatpush.bf16.msra.mxu3 %v5175_v32  ;;  %2624 = vmatpush.bf16.msrb.mxu0 %v5351_v33  ;;  %v6422_v32 = vld [vmem:[%s10204_s2 + $0xc] sm:$0xf]  ;;  %v5108_v33 = vld [vmem:[%s10204_s2 + $0x18] sm:$0xf0]  ;;  %v6062_v12 = vld [vmem:[%s10204_s2 + $0xae0] sm:$0xf] }
 0x10f   : > { %2590 = vmatmul.bf16.vlgmr.msra.gmra.mxu1 %v7299_v21  ;;  %v5111_v53 = vor.u32 %v6422_v32, %v5108_v33  ;;  %v6522_v32 = vld [vmem:[%s10204_s2 + $0x32c] sm:$0xf]  ;;  %v5508_v33 = vld [vmem:[%s10204_s2 + $0x338] sm:$0xf0] }
 0x110   : > { %2638 = vmatpush.bf16.msrb.mxu1 %v5479_v38  ;;  %5674 = vmatmul.msk.bf16.vlgmr.msra.gmra.mxu2 %vm1390_vm1, %v7396_v61  ;;  %v5559_v38 = vor.u32 %v6534_v22, %v5556_v25  ;;  %v5252_v22 = vld [vmem:[%s10204_s2 + $0x138] sm:$0xf0]  ;;  %v6490_v25 = vld [vmem:[%s10204_s2 + $0x22c] sm:$0xf] }
 0x111   : > { %2652 = vmatpush.bf16.msrb.mxu2 %v5607_v40  ;;  %v6466_v40 = vld [vmem:[%s10204_s2 + $0x16c] sm:$0xf] }
 0x112   : > { %2614 = vmatpush.bf16.msra.mxu3 %v5159_v1  ;;  %2625 = vmatpush.bf16.msrb.mxu0 %v5335_v59  ;;  %v5668_v1 = vld [vmem:[%s10204_s2 + $0x478] sm:$0xf0]  ;;  %v8826_v59 = vpop.f32.mrf.mxu2  ;;  %v5287_v57 = vor.u32 %v6466_v40, %v5284_v42  ;;  %v5255_v40 = vor.u32 %v6458_v20, %v5252_v22  ;;  %v6454_v42 = vld [vmem:[%s10204_s2 + $0x10c] sm:$0xf] }
 0x113   : > { %v5671_v2 = vor.u32 %v6562_v51, %v5668_v1  ;;  %v5364_v51 = vld [vmem:[%s10204_s2 + $0x218] sm:$0xf0]  ;;  %v6518_v1 = vld [vmem:[%s10204_s2 + $0x30c] sm:$0xf] }
 0x114   : > { %2639 = vmatpush.bf16.msrb.mxu1 %v5463_v62  ;;  %v5415_v62 = vor.u32 %v6498_v43, %v5412_v44  ;;  %v1613_v19 = vpop.f32.mrf.mxu3  ;;  %v5236_v43 = vld [vmem:[%s10204_s2 + $0x118] sm:$0xf0] }
 0x115   : > { %2653 = vmatpush.bf16.msrb.mxu2 %v5591_v63  ;;  %v5543_v63 = vor.u32 %v6530_v46, %v5540_v47  ;;  %v5511_v46 = vor.u32 %v6522_v32, %v5508_v33  ;;  %v6486_v47 = vld [vmem:[%s10204_s2 + $0x20c] sm:$0xf] }
 0x116   : > { %2615 = vmatpush.bf16.msra.mxu3 %v5143_v48  ;;  %2626 = vmatpush.bf16.msrb.mxu0 %v5319_v3  ;;  %v5524_v48 = vld [vmem:[%s10204_s2 + $0x358] sm:$0xf0]  ;;  %v8846_v3 = vpop.f32.mrf.mxu0  ;;  %v5367_v20 = vor.u32 %v6486_v47, %v5364_v51  ;;  %v6799_v47 = vld [vmem:[%s10204_s2 + $0xbcc] sm:$0xf0]  ;;  %v6302_v51 = vld [vmem:[%s10204_s2 + $0xcc0] sm:$0xf] }
 0x117   : > { %v5527_v56 = vor.u32 %v6526_v45, %v5524_v48  ;;  %v5239_v48 = vor.u32 %v6454_v42, %v5236_v43  ;;  %v6046_v42 = vld [vmem:[%s10204_s2 + $0xac0] sm:$0xf] }
 0x118   : > { %2640 = vmatpush.bf16.msrb.mxu1 %v5447_v16  ;;  %v8854_v16 = vpop.f32.mrf.mxu1 }
 0x119   : > { %2654 = vmatpush.bf16.msrb.mxu2 %v5575_v17  ;;  %v5271_v17 = vor.u32 %v6462_v50, %v5268_v5  ;;  %v5620_v50 = vld [vmem:[%s10204_s2 + $0x418] sm:$0xf0] }
 0x11a   : > { %2616 = vmatpush.bf16.msra.mxu3 %v5127_v30  ;;  %2627 = vmatpush.bf16.msrb.mxu0 %v5303_v31  ;;  %v5655_v30 = vor.u32 %v6558_v14, %v5652_v49  ;;  %v5380_v31 = vld [vmem:[%s10204_s2 + $0x238] sm:$0xf0]  ;;  %v6771_v49 = vld [vmem:[%s10204_s2 + $0xaec] sm:$0xf0] }
 0x11b   : > { %v5383_v44 = vor.u32 %v6490_v25, %v5380_v31  ;;  %v6835_v25 = vld [vmem:[%s10204_s2 + $0xcec] sm:$0xf0]  ;;  %v6063_v33 = vor.u32 %v6771_v49, %v6062_v12 }
 0x11c   : > { %2641 = vmatpush.bf16.msrb.mxu1 %v5431_v36  ;;  %v6554_v36 = vld [vmem:[%s10204_s2 + $0x42c] sm:$0xf]  ;;  %v6731_v12 = vld [vmem:[%s10204_s2 + $0x9ac] sm:$0xf0] }
 0x11d   : > { %2655 = vmatpush.bf16.msrb.mxu2 %v5559_v38  ;;  %v5636_v38 = vld [vmem:[%s10204_s2 + $0x438] sm:$0xf0] }
 0x11e   : > { %2617 = vmatpush.bf16.msra.mxu3 %v5111_v53  ;;  %2628 = vmatpush.bf16.msrb.mxu0 %v5287_v57  ;;  %v8896_v53 = vpop.f32.mrf.mxu2  ;;  %v5639_v57 = vor.u32 %v6554_v36, %v5636_v38  ;;  %v1627_v5 = vpop.f32.mrf.mxu0  ;;  %v5918_v38 = vld [vmem:[%s10204_s2 + $0x9c0] sm:$0xf] }
 0x11f   : > { %v1628_v45 = vadd.f32 %v1627_v5, %v1613_v19  ;;  %v6318_v19 = vld [vmem:[%s10204_s2 + $0xce0] sm:$0xf] }
 0x120   : > { %2642 = vmatpush.bf16.msrb.mxu1 %v5415_v62  ;;  %v5492_v62 = vld [vmem:[%s10204_s2 + $0x318] sm:$0xf0]  ;;  %v1641_v14 = vpop.f32.mrf.mxu1  ;;  %v6319_v43 = vor.u32 %v6835_v25, %v6318_v19 }
 0x121   : > { %2656 = vmatpush.bf16.msrb.mxu2 %v5543_v63  ;;  %2618 = vmatmul.bf16.vlgmr.msra.gmra.mxu3 %v7282_v6  ;;  %v6550_v63 = vld [vmem:[%s10204_s2 + $0x40c] sm:$0xf]  ;;  %v5495_v22 = vor.u32 %v6518_v1, %v5492_v62  ;;  %v1642_v31 = vadd.f32 %v1641_v14, %v1628_v45  ;;  %v6831_v1 = vld [vmem:[%s10204_s2 + $0xccc] sm:$0xf0]  ;;  %v6030_v45 = vld [vmem:[%s10204_s2 + $0xaa0] sm:$0xf] }
 0x122   : > { %2670 = vmatpush.bf16.msrb.mxu3 %v5671_v2  ;;  %2629 = vmatpush.bf16.msrb.mxu0 %v5271_v17  ;;  %v6739_v2 = vld [vmem:[%s10204_s2 + $0x9ec] sm:$0xf0]  ;;  %v6190_v17 = vld [vmem:[%s10204_s2 + $0xbe0] sm:$0xf] }
 0x123   : > { %v5935_v32 = vor.u32 %v6739_v2, %v5934_v7  ;;  %v5902_v2 = vld [vmem:[%s10204_s2 + $0x9a0] sm:$0xf] }
 0x124   : > { %2643 = vmatpush.bf16.msrb.mxu1 %v5399_v55  ;;  %v6803_v55 = vld [vmem:[%s10204_s2 + $0xbec] sm:$0xf0] }
 0x125   : > { %2657 = vmatpush.bf16.msrb.mxu2 %v5527_v56  ;;  %v1615_v56 = vpop.f32.mrf.mxu3  ;;  %v6191_v36 = vor.u32 %v6803_v55, %v6190_v17  ;;  %v6763_v17 = vld [vmem:[%s10204_s2 + $0xaac] sm:$0xf0]  ;;  %v6158_v55 = vld [vmem:[%s10204_s2 + $0xba0] sm:$0xf] }
 0x126   : > { %2671 = vmatpush.bf16.msrb.mxu3 %v5655_v30  ;;  %2630 = vmatpush.bf16.msrb.mxu0 %v5255_v40  ;;  %v5623_v30 = vor.u32 %v6550_v63, %v5620_v50  ;;  %v6735_v40 = vld [vmem:[%s10204_s2 + $0x9cc] sm:$0xf0]  ;;  %v1629_v7 = vpop.f32.mrf.mxu0 }
 0x127   : > { %v5919_v62 = vor.u32 %v6735_v40, %v5918_v38  ;;  %v1630_v14 = vadd.f32 %v1629_v7, %v1615_v56  ;;  %v6286_v56 = vld [vmem:[%s10204_s2 + $0xca0] sm:$0xf]  ;;  %v6727_v38 = vld [vmem:[%s10204_s2 + $0x98c] sm:$0xf0] }
 0x128   : > { %2644 = vmatpush.bf16.msrb.mxu1 %v5383_v44  ;;  %v6767_v44 = vld [vmem:[%s10204_s2 + $0xacc] sm:$0xf0]  ;;  %v1643_v49 = vpop.f32.mrf.mxu1  ;;  %v6014_v40 = vld [vmem:[%s10204_s2 + $0xa80] sm:$0xf] }
 0x129   : > { %2658 = vmatpush.bf16.msrb.mxu2 %v5511_v46  ;;  %v6174_v46 = vld [vmem:[%s10204_s2 + $0xbc0] sm:$0xf]  ;;  %v6047_v50 = vor.u32 %v6767_v44, %v6046_v42  ;;  %v1644_v25 = vadd.f32 %v1643_v49, %v1630_v14  ;;  %v6723_v7 = vld [vmem:[%s10204_s2 + $0x96c] sm:$0xf0] }
 0x12a   : > { %2672 = vmatpush.bf16.msrb.mxu3 %v5639_v57  ;;  %2631 = vmatpush.bf16.msrb.mxu0 %v5239_v48  ;;  %v1655_v57 = vpop.f32.mrf.mxu2  ;;  %v6175_v5 = vor.u32 %v6799_v47, %v6174_v46  ;;  %v6303_v48 = vor.u32 %v6831_v1, %v6302_v51  ;;  %v6142_v44 = vld [vmem:[%s10204_s2 + $0xb80] sm:$0xf]  ;;  %v6791_v46 = vld [vmem:[%s10204_s2 + $0xb8c] sm:$0xf0] }
 0x12b   : > { %v1656_v63 = vadd.f32 %v1655_v57, %v1642_v31  ;;  %v6270_v47 = vld [vmem:[%s10204_s2 + $0xc80] sm:$0xf]  ;;  %v6823_v51 = vld [vmem:[%s10204_s2 + $0xc8c] sm:$0xf0] }
 0x12c   : > { %2645 = vmatpush.bf16.msrb.mxu1 %v5367_v20  ;;  %v6795_v20 = vld [vmem:[%s10204_s2 + $0xbac] sm:$0xf0]  ;;  %v6254_v49 = vld [vmem:[%s10204_s2 + $0xc60] sm:$0xf] }
 0x12d   : > { %2659 = vmatpush.bf16.msrb.mxu2 %v5495_v22  ;;  %2632 = vmatmul.bf16.vlgmr.msrb.gmra.mxu0 %v7314_v35  ;;  %v6827_v22 = vld [vmem:[%s10204_s2 + $0xcac] sm:$0xf0]  ;;  %v1669_v19 = vpop.f32.mrf.mxu3 }
 0x12e   : > { %2673 = vmatpush.bf16.msrb.mxu3 %v5623_v30  ;;  %3568 = vmatpush.bf16.msra.mxu0 %v5935_v32  ;;  %v5903_v30 = vor.u32 %v6731_v12, %v5902_v2  ;;  %v8982_v31 = vadd.f32 %v1669_v19, %v1656_v63  ;;  %v6031_v32 = vor.u32 %v6763_v17, %v6030_v45  ;;  %v5998_v2 = vld [vmem:[%s10204_s2 + $0xa60] sm:$0xf]  ;;  %v6755_v45 = vld [vmem:[%s10204_s2 + $0xa6c] sm:$0xf0] }
 0x12f   : > { %2646 = vmatmul.bf16.vlgmr.msrb.gmra.mxu1 %v7291_v13  ;;  %v6287_v42 = vor.u32 %v6827_v22, %v6286_v56  ;;  %v6271_v12 = vor.u32 %v6823_v51, %v6270_v47  ;;  %v6787_v14 = vld [vmem:[%s10204_s2 + $0xb6c] sm:$0xf0]  ;;  %v5999_v22 = vor.u32 %v6755_v45, %v5998_v2  ;;  %v5838_v47 = vld [vmem:[%s10204_s2 + $0x920] sm:$0xf] }
 0x130   : > { %3582 = vmatpush.bf16.msra.mxu1 %v6063_v33  ;;  %2660 = vmatmul.bf16.vlgmr.msrb.gmra.mxu2 %v7299_v21  ;;  %v6159_v33 = vor.u32 %v6795_v20, %v6158_v55  ;;  %v6819_v17 = vld [vmem:[%s10204_s2 + $0xc6c] sm:$0xf0] }
 0x131   : > { %3596 = vmatpush.bf16.msra.mxu2 %v6191_v36  ;;  %v5886_v36 = vld [vmem:[%s10204_s2 + $0x980] sm:$0xf]  ;;  %5675 = vmatmul.msk.bf16.vlgmr.msrb.gmra.mxu3 %vm1390_vm1, %v7396_v61  ;;  %v6811_v2 = vld [vmem:[%s10204_s2 + $0xc2c] sm:$0xf0] }
 0x132   : > { %3610 = vmatpush.bf16.msra.mxu3 %v6319_v43  ;;  %3569 = vmatpush.bf16.msra.mxu0 %v5919_v62  ;;  %v6759_v43 = vld [vmem:[%s10204_s2 + $0xa8c] sm:$0xf0]  ;;  %v1657_v1 = vpop.f32.mrf.mxu2  ;;  %v5887_v57 = vor.u32 %v6727_v38, %v5886_v36  ;;  %v6110_v38 = vld [vmem:[%s10204_s2 + $0xb40] sm:$0xf] }
 0x133   : > { %v1658_v62 = vadd.f32 %v1657_v1, %v1644_v25  ;;  %v6015_v63 = vor.u32 %v6759_v43, %v6014_v40  ;;  %v5854_v25 = vld [vmem:[%s10204_s2 + $0x940] sm:$0xf]  ;;  %v6751_v36 = vld [vmem:[%s10204_s2 + $0xa4c] sm:$0xf0] }
 0x134   : > { %3583 = vmatpush.bf16.msra.mxu1 %v6047_v50  ;;  %v6143_v50 = vor.u32 %v6791_v46, %v6142_v44  ;;  %v6783_v40 = vld [vmem:[%s10204_s2 + $0xb4c] sm:$0xf0]  ;;  %v6238_v43 = vld [vmem:[%s10204_s2 + $0xc40] sm:$0xf] }
 0x135   : > { %3597 = vmatpush.bf16.msra.mxu2 %v6175_v5  ;;  %v5870_v5 = vld [vmem:[%s10204_s2 + $0x960] sm:$0xf]  ;;  %v1671_v55 = vpop.f32.mrf.mxu3  ;;  %v6815_v44 = vld [vmem:[%s10204_s2 + $0xc4c] sm:$0xf0]  ;;  %v6111_v1 = vor.u32 %v6783_v40, %v6110_v38 }
 0x136   : > { %3611 = vmatpush.bf16.msra.mxu3 %v6303_v48  ;;  %3570 = vmatpush.bf16.msra.mxu0 %v5903_v30  ;;  %v6126_v48 = vld [vmem:[%s10204_s2 + $0xb60] sm:$0xf]  ;;  %v5871_v20 = vor.u32 %v6723_v7, %v5870_v5  ;;  %v9034_v56 = vadd.f32 %v1671_v55, %v1658_v62  ;;  %v6719_v30 = vld [vmem:[%s10204_s2 + $0x94c] sm:$0xf0]  ;;  %v6239_v62 = vor.u32 %v6815_v44, %v6238_v43  ;;  %v5936_v43 = vld [vmem:[%s10204_s2 + $0x9f0] sm:$0xf0] }
 0x137   : > { %v6127_v19 = vor.u32 %v6787_v14, %v6126_v48  ;;  %v5855_v46 = vor.u32 %v6719_v30, %v5854_v25  ;;  %v6222_v5 = vld [vmem:[%s10204_s2 + $0xc20] sm:$0xf]  ;;  %v6711_v45 = vld [vmem:[%s10204_s2 + $0x90c] sm:$0xf0]  ;;  %v6769_v44 = vld [vmem:[%s10204_s2 + $0xae4] sm:$0xf] }
 0x138   : > { %3584 = vmatpush.bf16.msra.mxu1 %v6031_v32  ;;  %v5982_v32 = vld [vmem:[%s10204_s2 + $0xa40] sm:$0xf]  ;;  %v6223_v25 = vor.u32 %v6811_v2, %v6222_v5  ;;  %v2835_v2 = vrot.slane %v7299_v21, 1  ;;  %v6765_v21 = vld [vmem:[%s10204_s2 + $0xac4] sm:$0xf] }
 0x139   : > { %3598 = vmatpush.bf16.msra.mxu2 %v6159_v33  ;;  %v6255_v33 = vor.u32 %v6819_v17, %v6254_v49  ;;  %v5983_v51 = vor.u32 %v6751_v36, %v5982_v32  ;;  %v5950_v14 = vld [vmem:[%s10204_s2 + $0xa00] sm:$0xf]  ;;  %v6851_v32 = vld [vmem:[%s10204_s2 + $0xd6c] sm:$0xf0] }
 0x13a   : > { %3612 = vmatpush.bf16.msra.mxu3 %v6287_v42  ;;  %3571 = vmatpush.bf16.msra.mxu0 %v5887_v57  ;;  %v1420_v42 = vadd.f32 %v8332_v28, %v8271_v52  ;;  %v6715_v52 = vld [vmem:[%s10204_s2 + $0x92c] sm:$0xf0]  ;;  %v5966_v28 = vld [vmem:[%s10204_s2 + $0xa20] sm:$0xf]  ;;  %v2409_v36 = vpop.f32.mrf.mxu0 }
 0x13b   : > { %v6747_v57 = vld [vmem:[%s10204_s2 + $0xa2c] sm:$0xf0]  ;;  %v5839_v48 = vor.u32 %v6715_v52, %v5838_v47  ;;  %v6078_v49 = vld [vmem:[%s10204_s2 + $0xb00] sm:$0xf]  ;;  %v6801_v52 = vld [vmem:[%s10204_s2 + $0xbe4] sm:$0xf] }
 0x13c   : > { %3585 = vmatpush.bf16.msra.mxu1 %v6015_v63  ;;  %v6094_v63 = vld [vmem:[%s10204_s2 + $0xb20] sm:$0xf]  ;;  %v1434_v7 = vadd.f32 %v8378_v58, %v1420_v42  ;;  %v6743_v58 = vld [vmem:[%s10204_s2 + $0xa0c] sm:$0xf0]  ;;  %v5967_v17 = vor.u32 %v6747_v57, %v5966_v28  ;;  %v6737_v42 = vld [vmem:[%s10204_s2 + $0x9e4] sm:$0xf] }
 0x13d   : > { %3599 = vmatpush.bf16.msra.mxu2 %v6143_v50  ;;  %v6779_v50 = vld [vmem:[%s10204_s2 + $0xb2c] sm:$0xf0]  ;;  %v6382_v30 = vld [vmem:[%s10204_s2 + $0xd60] sm:$0xf]  ;;  %v5951_v40 = vor.u32 %v6743_v58, %v5950_v14  ;;  %v2826_v28 = vrot.slane %v7282_v6, 1  ;;  %v2830_v14 = vrot.slane %v7316_v39, 1 }
 0x13e   : > { %3613 = vmatpush.bf16.msra.mxu3 %v6271_v12  ;;  %3572 = vmatpush.bf16.msra.mxu0 %v5871_v20  ;;  %v5822_v12 = vld [vmem:[%s10204_s2 + $0x900] sm:$0xf]  ;;  %v6095_v55 = vor.u32 %v6779_v50, %v6094_v63  ;;  %v6775_v20 = vld [vmem:[%s10204_s2 + $0xb0c] sm:$0xf0]  ;;  %v6192_v57 = vld [vmem:[%s10204_s2 + $0xbf0] sm:$0xf0]  ;;  %v6383_v5 = vor.u32 %v6851_v32, %v6382_v30 }
 0x13f   : > { %v5823_v38 = vor.u32 %v6711_v45, %v5822_v12  ;;  %v6079_v47 = vor.u32 %v6775_v20, %v6078_v49  ;;  %v2833_v63 = vrot.slane %v7303_v24, 1  ;;  %v6366_v6 = vld [vmem:[%s10204_s2 + $0xd40] sm:$0xf]  ;;  %v2836_v12 = vrot.slane %v7307_v27, 1  ;;  %v5920_v24 = vld [vmem:[%s10204_s2 + $0x9d0] sm:$0xf0] }
 0x140   : > { %3586 = vmatpush.bf16.msra.mxu1 %v5999_v22  ;;  %v6206_v22 = vld [vmem:[%s10204_s2 + $0xc00] sm:$0xf]  ;;  %v6195_v58 = vor.u32 %v6801_v52, %v6192_v57  ;;  %v6048_v27 = vld [vmem:[%s10204_s2 + $0xad0] sm:$0xf0]  ;;  %v6797_v39 = vld [vmem:[%s10204_s2 + $0xbc4] sm:$0xf] }
 0x141   : > { %3600 = vmatpush.bf16.msra.mxu2 %v6127_v19  ;;  %v6807_v19 = vld [vmem:[%s10204_s2 + $0xc0c] sm:$0xf0]  ;;  %v6051_v30 = vor.u32 %v6765_v21, %v6048_v27  ;;  %v6793_v52 = vld [vmem:[%s10204_s2 + $0xba4] sm:$0xf] }
 0x142   : > { %3614 = vmatpush.bf16.msra.mxu3 %v6255_v33  ;;  %3573 = vmatpush.bf16.msra.mxu0 %v5855_v46  ;;  %v1448_v33 = vadd.f32 %v8398_v8, %v1434_v7  ;;  %v2410_v46 = vadd.f32 %v2409_v36, %v8330_v26  ;;  %v6207_v8 = vor.u32 %v6807_v19, %v6206_v22  ;;  %v2827_v26 = vrot.slane %v7295_v18, 1  ;;  %v6847_v7 = vld [vmem:[%s10204_s2 + $0xd4c] sm:$0xf0]  ;;  %v2411_v32 = vpop.f32.mrf.mxu0 }
 0x143   : > { %v5939_v18 = vor.u32 %v6737_v42, %v5936_v43  ;;  %v2437_v20 = vpop.f32.mrf.mxu2  ;;  %v9177_v19 = vsel %vm2825_vm2, %v2835_v2, %v2836_v12  ;;  %v6729_v42 = vld [vmem:[%s10204_s2 + $0x9a4] sm:$0xf] }
 0x144   : > { %3587 = vmatpush.bf16.msra.mxu1 %v5983_v51  ;;  %v2423_v51 = vpop.f32.mrf.mxu1  ;;  %v1462_v49 = vadd.f32 %v8424_v60, %v1448_v33  ;;  %v6367_v60 = vor.u32 %v6847_v7, %v6366_v6  ;;  %v2451_v33 = vpop.f32.mrf.mxu3  ;;  %v6725_v6 = vld [vmem:[%s10204_s2 + $0x984] sm:$0xf]  ;;  %v5888_v7 = vld [vmem:[%s10204_s2 + $0x990] sm:$0xf0] }
 0x145   : > { %3601 = vmatpush.bf16.msra.mxu2 %v6111_v1  ;;  %v6064_v1 = vld [vmem:[%s10204_s2 + $0xaf0] sm:$0xf0]  ;;  %v2424_v50 = vadd.f32 %v2423_v51, %v2410_v46  ;;  %v6757_v12 = vld [vmem:[%s10204_s2 + $0xa84] sm:$0xf]  ;;  %v5891_v27 = vor.u32 %v6725_v6, %v5888_v7 }
 0x146   : > { %3615 = vmatpush.bf16.msra.mxu3 %v6239_v62  ;;  %3574 = vmatpush.bf16.msra.mxu0 %v5839_v48  ;;  %v2832_v62 = vrot.slane %v7291_v13, 1  ;;  %v6067_v45 = vor.u32 %v6769_v44, %v6064_v1  ;;  %v6733_v13 = vld [vmem:[%s10204_s2 + $0x9c4] sm:$0xf]  ;;  %v2829_v48 = vrot.slane %v7314_v35, 1  ;;  %v2412_v44 = vadd.f32 %v2411_v32, %v1462_v49  ;;  %v6032_v51 = vld [vmem:[%s10204_s2 + $0xab0] sm:$0xf0] }
 0x147   : > { %v5923_v22 = vor.u32 %v6733_v13, %v5920_v24  ;;  %v6144_v13 = vld [vmem:[%s10204_s2 + $0xb90] sm:$0xf0]  ;;  %v6833_v24 = vld [vmem:[%s10204_s2 + $0xce4] sm:$0xf] }
 0x148   : > { %3588 = vmatpush.bf16.msra.mxu1 %v5967_v17  ;;  %v9165_v17 = vsel %vm2825_vm2, %v2826_v28, %v2827_v26  ;;  %v9168_v35 = vsel %vm2825_vm2, %v2832_v62, %v2833_v63  ;;  %v9180_v36 = vsel %vm2825_vm2, %v2829_v48, %v2830_v14  ;;  %v6160_v28 = vld [vmem:[%s10204_s2 + $0xbb0] sm:$0xf0]  ;;  %v6334_v62 = vld [vmem:[%s10204_s2 + $0xd00] sm:$0xf] }
 0x149   : > { %3602 = vmatpush.bf16.msra.mxu2 %v6095_v55  ;;  %v6176_v55 = vld [vmem:[%s10204_s2 + $0xbd0] sm:$0xf0]  ;;  %v6163_v2 = vor.u32 %v6793_v52, %v6160_v28 }
 0x14a   : > { %3616 = vmatpush.bf16.msra.mxu3 %v6223_v25  ;;  %3575 = vmatpush.bf16.msra.mxu0 %v5823_v38  ;;  %v2438_v25 = vadd.f32 %v2437_v20, %v2424_v50  ;;  %v6350_v38 = vld [vmem:[%s10204_s2 + $0xd20] sm:$0xf]  ;;  %v6179_v43 = vor.u32 %v6797_v39, %v6176_v55  ;;  %v6320_v48 = vld [vmem:[%s10204_s2 + $0xcf0] sm:$0xf0]  ;;  %v6721_v55 = vld [vmem:[%s10204_s2 + $0x964] sm:$0xf] }
 0x14b   : > { %v2439_v14 = vpop.f32.mrf.mxu2  ;;  %v5872_v20 = vld [vmem:[%s10204_s2 + $0x970] sm:$0xf0] }
 0x14c   : > { %3589 = vmatpush.bf16.msra.mxu1 %v5951_v40  ;;  %v6843_v40 = vld [vmem:[%s10204_s2 + $0xd2c] sm:$0xf0]  ;;  %v2425_v46 = vpop.f32.mrf.mxu1  ;;  %v2452_v1 = vadd.f32 %v2451_v33, %v2438_v25  ;;  %v2453_v39 = vpop.f32.mrf.mxu3  ;;  %v6000_v32 = vld [vmem:[%s10204_s2 + $0xa70] sm:$0xf0]  ;;  %v6785_v33 = vld [vmem:[%s10204_s2 + $0xb64] sm:$0xf] }
 0x14d   : > { %3603 = vmatpush.bf16.msra.mxu2 %v6079_v47  ;;  %3576 = vmatmul.bf16.vlgmr.msra.gmra.mxu0 %v9165_v17  ;;  %v5904_v47 = vld [vmem:[%s10204_s2 + $0x9b0] sm:$0xf0]  ;;  %v2426_v57 = vadd.f32 %v2425_v46, %v2412_v44  ;;  %v6351_v26 = vor.u32 %v6843_v40, %v6350_v38  ;;  %v2465_v25 = vpop.f32.mrf.mxu0  ;;  %v2838_v46 = vrot.slane %v7396_v61, 1  ;;  %v6749_v61 = vld [vmem:[%s10204_s2 + $0xa44] sm:$0xf] }
 0x14e   : > { %3617 = vmatpush.bf16.msra.mxu3 %v6207_v8  ;;  %3628 = vmatpush.bf16.msrb.mxu0 %v6383_v5  ;;  %v6761_v8 = vld [vmem:[%s10204_s2 + $0xaa4] sm:$0xf]  ;;  %v5907_v63 = vor.u32 %v6729_v42, %v5904_v47  ;;  %v6839_v5 = vld [vmem:[%s10204_s2 + $0xd0c] sm:$0xf0]  ;;  %v9255_v40 = vadd.f32 %v2465_v25, %v2452_v1  ;;  %v6128_v42 = vld [vmem:[%s10204_s2 + $0xb70] sm:$0xf0]  ;;  %v1490_v25 = vadd.f32 %v8595_v4, %v8453_v41 }
 0x14f   : > { %3590 = vmatmul.bf16.vlgmr.msra.gmra.mxu1 %v9180_v36  ;;  %v6035_v50 = vor.u32 %v6761_v8, %v6032_v51  ;;  %v2440_v21 = vadd.f32 %v2439_v14, %v2426_v57  ;;  %v6304_v44 = vld [vmem:[%s10204_s2 + $0xcd0] sm:$0xf0]  ;;  %v2839_v47 = vrot.slane %v7408_v23, 1  ;;  %v5875_v8 = vor.u32 %v6721_v55, %v5872_v20  ;;  %v6717_v1 = vld [vmem:[%s10204_s2 + $0x944] sm:$0xf] }
 0x150   : > { %3638 = vmatpush.bf16.msrb.mxu1 %v5939_v18  ;;  %3604 = vmatmul.bf16.vlgmr.msra.gmra.mxu2 %v9168_v35  ;;  %v6016_v18 = vld [vmem:[%s10204_s2 + $0xa90] sm:$0xf0]  ;;  %v6131_v28 = vor.u32 %v6785_v33, %v6128_v42  ;;  %v6777_v14 = vld [vmem:[%s10204_s2 + $0xb24] sm:$0xf] }
 0x151   : > { %3652 = vmatpush.bf16.msrb.mxu2 %v6067_v45  ;;  %3618 = vmatmul.bf16.vlgmr.msra.gmra.mxu3 %v9177_v19  ;;  %v6789_v45 = vld [vmem:[%s10204_s2 + $0xb84] sm:$0xf]  ;;  %v6019_v49 = vor.u32 %v6757_v12, %v6016_v18  ;;  %v2454_v38 = vadd.f32 %v2453_v39, %v2440_v21  ;;  %v5856_v52 = vld [vmem:[%s10204_s2 + $0x950] sm:$0xf0] }
 0x152   : > { %3666 = vmatpush.bf16.msrb.mxu3 %v6195_v58  ;;  %3629 = vmatpush.bf16.msrb.mxu0 %v6367_v60  ;;  %v6335_v58 = vor.u32 %v6839_v5, %v6334_v62  ;;  %v6147_v60 = vor.u32 %v6789_v45, %v6144_v13  ;;  %v5984_v23 = vld [vmem:[%s10204_s2 + $0xa50] sm:$0xf0]  ;;  %v9293_v5 = vsel %vm2825_vm2, %v2838_v46, %v2839_v47  ;;  %v6709_v20 = vld [vmem:[%s10204_s2 + $0x904] sm:$0xf] }
 0x153   : > { %v6112_v62 = vld [vmem:[%s10204_s2 + $0xb50] sm:$0xf0]  ;;  %v5859_v6 = vor.u32 %v6717_v1, %v5856_v52  ;;  %v5987_v7 = vor.u32 %v6749_v61, %v5984_v23  ;;  %v6817_v41 = vld [vmem:[%s10204_s2 + $0xc64] sm:$0xf] }
 0x154   : > { %3639 = vmatpush.bf16.msrb.mxu1 %v5923_v22  ;;  %v6323_v22 = vor.u32 %v6833_v24, %v6320_v48  ;;  %v5840_v12 = vld [vmem:[%s10204_s2 + $0x930] sm:$0xf0]  ;;  %v6745_v24 = vld [vmem:[%s10204_s2 + $0xa24] sm:$0xf] }
 0x155   : > { %3653 = vmatpush.bf16.msrb.mxu2 %v6051_v30  ;;  %v6753_v30 = vld [vmem:[%s10204_s2 + $0xa64] sm:$0xf]  ;;  %v2467_v13 = vpop.f32.mrf.mxu0  ;;  %v5968_v48 = vld [vmem:[%s10204_s2 + $0xa30] sm:$0xf0] }
 0x156   : > { %3667 = vmatpush.bf16.msrb.mxu3 %v6179_v43  ;;  %3630 = vmatpush.bf16.msrb.mxu0 %v6351_v26  ;;  %v6829_v43 = vld [vmem:[%s10204_s2 + $0xcc4] sm:$0xf]  ;;  %v6003_v51 = vor.u32 %v6753_v30, %v6000_v32  ;;  %v6096_v21 = vld [vmem:[%s10204_s2 + $0xb30] sm:$0xf0]  ;;  %v5971_v55 = vor.u32 %v6745_v24, %v5968_v48 }
 0x157   : > { %v6307_v57 = vor.u32 %v6829_v43, %v6304_v44  ;;  %v6781_v26 = vld [vmem:[%s10204_s2 + $0xb44] sm:$0xf]  ;;  %v6099_v30 = vor.u32 %v6777_v14, %v6096_v21  ;;  %v5952_v33 = vld [vmem:[%s10204_s2 + $0xa10] sm:$0xf0] }
 0x158   : > { %3640 = vmatpush.bf16.msrb.mxu1 %v5907_v63  ;;  %v6825_v63 = vld [vmem:[%s10204_s2 + $0xca4] sm:$0xf]  ;;  %v6115_v18 = vor.u32 %v6781_v26, %v6112_v62  ;;  %v6080_v42 = vld [vmem:[%s10204_s2 + $0xb10] sm:$0xf0] }
 0x159   : > { %3654 = vmatpush.bf16.msrb.mxu2 %v6035_v50  ;;  %v6288_v50 = vld [vmem:[%s10204_s2 + $0xcb0] sm:$0xf0]  ;;  %v6849_v44 = vld [vmem:[%s10204_s2 + $0xd64] sm:$0xf] }
 0x15a   : > { %3668 = vmatpush.bf16.msrb.mxu3 %v6163_v2  ;;  %3631 = vmatpush.bf16.msrb.mxu0 %v6335_v58  ;;  %v6713_v2 = vld [vmem:[%s10204_s2 + $0x924] sm:$0xf]  ;;  %v6291_v45 = vor.u32 %v6825_v63, %v6288_v50  ;;  %v9312_v58 = vadd.f32 %v2467_v13, %v2454_v38  ;;  %v6256_v4 = vld [vmem:[%s10204_s2 + $0xc70] sm:$0xf0] }
 0x15b   : > { %v5843_v39 = vor.u32 %v6713_v2, %v5840_v12  ;;  %v6773_v38 = vld [vmem:[%s10204_s2 + $0xb04] sm:$0xf]  ;;  %v6384_v47 = vld [vmem:[%s10204_s2 + $0xd70] sm:$0xf0]  ;;  %v6259_v23 = vor.u32 %v6817_v41, %v6256_v4  ;;  %v5926_v2 = vld [vmem:[%s10204_s2 + $0x9c8] sm:$0xf] }
 0x15c   : > { %3641 = vmatpush.bf16.msrb.mxu1 %v5891_v27  ;;  %v6821_v27 = vld [vmem:[%s10204_s2 + $0xc84] sm:$0xf]  ;;  %v2479_v43 = vpop.f32.mrf.mxu1  ;;  %v6083_v61 = vor.u32 %v6773_v38, %v6080_v42  ;;  %v6387_v26 = vor.u32 %v6849_v44, %v6384_v47  ;;  %v6240_v50 = vld [vmem:[%s10204_s2 + $0xc50] sm:$0xf0]  ;;  %v6736_v12 = vld [vmem:[%s10204_s2 + $0x9d4] sm:$0xf0] }
 0x15d   : > { %3655 = vmatpush.bf16.msrb.mxu2 %v6019_v49  ;;  %6396 = vmatmul.msk.bf16.vlgmr.msrb.gmra.mxu0 %vm1390_vm1, %v9293_v5  ;;  %v6272_v49 = vld [vmem:[%s10204_s2 + $0xc90] sm:$0xf0]  ;;  %v2480_v46 = vadd.f32 %v2479_v43, %v8521_v29  ;;  %v6070_v29 = vld [vmem:[%s10204_s2 + $0xae8] sm:$0xf]  ;;  %v6813_v63 = vld [vmem:[%s10204_s2 + $0xc44] sm:$0xf] }
 0x15e   : > { %3669 = vmatpush.bf16.msrb.mxu3 %v6147_v60  ;;  %3680 = vmatpush.bf16.msra.mxu0 %v6323_v22  ;;  %v5824_v60 = vld [vmem:[%s10204_s2 + $0x910] sm:$0xf0]  ;;  %v6741_v22 = vld [vmem:[%s10204_s2 + $0xa04] sm:$0xf]  ;;  %v6275_v32 = vor.u32 %v6821_v27, %v6272_v49  ;;  %v6243_v48 = vor.u32 %v6813_v63, %v6240_v50  ;;  %v5927_v49 = vor.u32 %v6736_v12, %v5926_v2  ;;  %v6764_v38 = vld [vmem:[%s10204_s2 + $0xab4] sm:$0xf0] }
 0x15f   : > { %v5827_v1 = vor.u32 %v6709_v20, %v5824_v60  ;;  %v5955_v52 = vor.u32 %v6741_v22, %v5952_v33  ;;  %v6224_v20 = vld [vmem:[%s10204_s2 + $0xc30] sm:$0xf0]  ;;  %v6038_v33 = vld [vmem:[%s10204_s2 + $0xaa8] sm:$0xf]  ;;  %v6805_v43 = vld [vmem:[%s10204_s2 + $0xc04] sm:$0xf] }
 0x160   : > { %3642 = vmatpush.bf16.msrb.mxu1 %v5875_v8  ;;  %v5942_v8 = vld [vmem:[%s10204_s2 + $0x9e8] sm:$0xf]  ;;  %v6352_v22 = vld [vmem:[%s10204_s2 + $0xd30] sm:$0xf0]  ;;  %v6837_v47 = vld [vmem:[%s10204_s2 + $0xd04] sm:$0xf] }
 0x161   : > { %3656 = vmatpush.bf16.msrb.mxu2 %v6003_v51  ;;  %v6740_v51 = vld [vmem:[%s10204_s2 + $0x9f4] sm:$0xf0]  ;;  %v6326_v50 = vld [vmem:[%s10204_s2 + $0xce8] sm:$0xf] }
 0x162   : > { %3670 = vmatpush.bf16.msrb.mxu3 %v6131_v28  ;;  %3681 = vmatpush.bf16.msra.mxu0 %v6307_v57  ;;  %v6772_v28 = vld [vmem:[%s10204_s2 + $0xaf4] sm:$0xf0]  ;;  %v1504_v57 = vadd.f32 %v8597_v15, %v1490_v25  ;;  %v5943_v62 = vor.u32 %v6740_v51, %v5942_v8  ;;  %v6368_v15 = vld [vmem:[%s10204_s2 + $0xd50] sm:$0xf0]  ;;  %v5910_v25 = vld [vmem:[%s10204_s2 + $0x9a8] sm:$0xf]  ;;  %v6039_v51 = vor.u32 %v6764_v38, %v6038_v33 }
 0x163   : > { %v2493_v24 = vpop.f32.mrf.mxu2  ;;  %v6336_v8 = vld [vmem:[%s10204_s2 + $0xd10] sm:$0xf0]  ;;  %v5862_v33 = vld [vmem:[%s10204_s2 + $0x948] sm:$0xf]  ;;  %v6720_v38 = vld [vmem:[%s10204_s2 + $0x954] sm:$0xf0] }
 0x164   : > { %3643 = vmatpush.bf16.msrb.mxu1 %v5859_v6  ;;  %v6845_v6 = vld [vmem:[%s10204_s2 + $0xd44] sm:$0xf]  ;;  %v1518_v13 = vadd.f32 %v8714_v37, %v1504_v57  ;;  %v2507_v14 = vpop.f32.mrf.mxu3  ;;  %v2494_v21 = vadd.f32 %v2493_v24, %v2480_v46  ;;  %v6208_v46 = vld [vmem:[%s10204_s2 + $0xc10] sm:$0xf0]  ;;  %v6339_v2 = vor.u32 %v6837_v47, %v6336_v8  ;;  %v6724_v24 = vld [vmem:[%s10204_s2 + $0x974] sm:$0xf0] }
 0x165   : > { %3657 = vmatpush.bf16.msrb.mxu2 %v5987_v7  ;;  %v6071_v7 = vor.u32 %v6772_v28, %v6070_v29  ;;  %v6371_v27 = vor.u32 %v6845_v6, %v6368_v15  ;;  %v6841_v37 = vld [vmem:[%s10204_s2 + $0xd24] sm:$0xf]  ;;  %v6022_v29 = vld [vmem:[%s10204_s2 + $0xa88] sm:$0xf]  ;;  %v6211_v63 = vor.u32 %v6805_v43, %v6208_v46  ;;  %v6836_v6 = vld [vmem:[%s10204_s2 + $0xcf4] sm:$0xf0] }
 0x166   : > { %3671 = vmatpush.bf16.msrb.mxu3 %v6115_v18  ;;  %3682 = vmatpush.bf16.msra.mxu0 %v6291_v45  ;;  %v6054_v18 = vld [vmem:[%s10204_s2 + $0xac8] sm:$0xf]  ;;  %v6768_v45 = vld [vmem:[%s10204_s2 + $0xad4] sm:$0xf0]  ;;  %v1532_v41 = vadd.f32 %v8725_v10, %v1518_v13  ;;  %v6355_v4 = vor.u32 %v6841_v37, %v6352_v22 }
 0x167   : > { %v6055_v60 = vor.u32 %v6768_v45, %v6054_v18  ;;  %v5894_v10 = vld [vmem:[%s10204_s2 + $0x988] sm:$0xf]  ;;  %v6796_v46 = vld [vmem:[%s10204_s2 + $0xbb4] sm:$0xf0] }
 0x168   : > { %3644 = vmatpush.bf16.msrb.mxu1 %v5843_v39  ;;  %v2481_v39 = vpop.f32.mrf.mxu1  ;;  %v5878_v13 = vld [vmem:[%s10204_s2 + $0x968] sm:$0xf]  ;;  %v6828_v8 = vld [vmem:[%s10204_s2 + $0xcb4] sm:$0xf0] }
 0x169   : > { %3658 = vmatpush.bf16.msrb.mxu2 %v5971_v55  ;;  %v6809_v55 = vld [vmem:[%s10204_s2 + $0xc24] sm:$0xf]  ;;  %v2482_v28 = vadd.f32 %v2481_v39, %v1532_v41  ;;  %v6182_v39 = vld [vmem:[%s10204_s2 + $0xbc8] sm:$0xf]  ;;  %v5879_v22 = vor.u32 %v6724_v24, %v5878_v13 }
 0x16a   : > { %3672 = vmatpush.bf16.msrb.mxu3 %v6099_v30  ;;  %3683 = vmatpush.bf16.msra.mxu0 %v6275_v32  ;;  %v6732_v30 = vld [vmem:[%s10204_s2 + $0x9b4] sm:$0xf0]  ;;  %v2508_v32 = vadd.f32 %v2507_v14, %v2494_v21  ;;  %v6227_v42 = vor.u32 %v6809_v55, %v6224_v20  ;;  %v6327_v14 = vor.u32 %v6836_v6, %v6326_v50  ;;  %v6310_v37 = vld [vmem:[%s10204_s2 + $0xcc8] sm:$0xf] }
 0x16b   : > { %v5911_v44 = vor.u32 %v6732_v30, %v5910_v25  ;;  %v6800_v55 = vld [vmem:[%s10204_s2 + $0xbd4] sm:$0xf0]  ;;  %v6294_v47 = vld [vmem:[%s10204_s2 + $0xca8] sm:$0xf] }
 0x16c   : > { %3645 = vmatpush.bf16.msrb.mxu1 %v5827_v1  ;;  %v2521_v1 = vpop.f32.mrf.mxu0  ;;  %v6183_v30 = vor.u32 %v6800_v55, %v6182_v39  ;;  %v6278_v6 = vld [vmem:[%s10204_s2 + $0xc88] sm:$0xf]  ;;  %v6852_v39 = vld [vmem:[%s10204_s2 + $0xd74] sm:$0xf0] }
 0x16d   : > { %3659 = vmatpush.bf16.msrb.mxu2 %v5955_v52  ;;  %v6728_v52 = vld [vmem:[%s10204_s2 + $0x994] sm:$0xf0]  ;;  %v2522_v57 = vadd.f32 %v2521_v1, %v2508_v32  ;;  %v6134_v24 = vld [vmem:[%s10204_s2 + $0xb68] sm:$0xf] }
 0x16e   : > { %3673 = vmatpush.bf16.msrb.mxu3 %v6083_v61  ;;  %3684 = vmatpush.bf16.msra.mxu0 %v6259_v23  ;;  %v6760_v61 = vld [vmem:[%s10204_s2 + $0xa94] sm:$0xf0]  ;;  %v6198_v23 = vld [vmem:[%s10204_s2 + $0xbe8] sm:$0xf]  ;;  %v5895_v12 = vor.u32 %v6728_v52, %v5894_v10 }
 0x16f   : > { %3646 = vmatmul.bf16.vlgmr.msrb.gmra.mxu1 %v9165_v17  ;;  %v6023_v18 = vor.u32 %v6760_v61, %v6022_v29  ;;  %v5846_v52 = vld [vmem:[%s10204_s2 + $0x928] sm:$0xf]  ;;  %v6716_v29 = vld [vmem:[%s10204_s2 + $0x934] sm:$0xf0] }
 0x170   : > { %3698 = vmatpush.bf16.msra.mxu1 %v6387_v26  ;;  %3660 = vmatmul.bf16.vlgmr.msrb.gmra.mxu2 %v9180_v36  ;;  %v6804_v26 = vld [vmem:[%s10204_s2 + $0xbf4] sm:$0xf0] }
 0x171   : > { %3708 = vmatpush.bf16.msra.mxu2 %v5943_v62  ;;  %3674 = vmatmul.bf16.vlgmr.msrb.gmra.mxu3 %v9168_v35  ;;  %v2495_v62 = vpop.f32.mrf.mxu2  ;;  %v6199_v45 = vor.u32 %v6804_v26, %v6198_v23  ;;  %v6748_v23 = vld [vmem:[%s10204_s2 + $0xa34] sm:$0xf0]  ;;  %v6150_v26 = vld [vmem:[%s10204_s2 + $0xb88] sm:$0xf] }
 0x172   : > { %3722 = vmatpush.bf16.msra.mxu3 %v6071_v7  ;;  %3685 = vmatpush.bf16.msra.mxu0 %v6243_v48  ;;  %v2509_v7 = vpop.f32.mrf.mxu3  ;;  %v2496_v15 = vadd.f32 %v2495_v62, %v2482_v28  ;;  %v6006_v48 = vld [vmem:[%s10204_s2 + $0xa68] sm:$0xf]  ;;  %v6792_v62 = vld [vmem:[%s10204_s2 + $0xb94] sm:$0xf0] }
 0x173   : > { %v5974_v28 = vld [vmem:[%s10204_s2 + $0xa28] sm:$0xf] }
 0x174   : > { %3699 = vmatpush.bf16.msra.mxu1 %v6371_v27  ;;  %v2510_v21 = vadd.f32 %v2509_v7, %v2496_v15  ;;  %v2535_v27 = vpop.f32.mrf.mxu1  ;;  %v2523_v32 = vpop.f32.mrf.mxu0  ;;  %v6824_v7 = vld [vmem:[%s10204_s2 + $0xc94] sm:$0xf0]  ;;  %v5847_v15 = vor.u32 %v6716_v29, %v5846_v52  ;;  %v6102_v29 = vld [vmem:[%s10204_s2 + $0xb28] sm:$0xf] }
 0x175   : > { %3709 = vmatpush.bf16.msra.mxu2 %v5927_v49  ;;  %v6756_v49 = vld [vmem:[%s10204_s2 + $0xa74] sm:$0xf0]  ;;  %v9476_v20 = vadd.f32 %v2535_v27, %v2522_v57  ;;  %v6295_v57 = vor.u32 %v6828_v8, %v6294_v47  ;;  %v6279_v13 = vor.u32 %v6824_v7, %v6278_v6  ;;  %v5912_v6 = vld [vmem:[%s10204_s2 + $0x9b8] sm:$0xf0] }
 0x176   : > { %3723 = vmatpush.bf16.msra.mxu3 %v6055_v60  ;;  %3686 = vmatpush.bf16.msra.mxu0 %v6227_v42  ;;  %v6832_v60 = vld [vmem:[%s10204_s2 + $0xcd4] sm:$0xf0]  ;;  %v6007_v25 = vor.u32 %v6756_v49, %v6006_v48  ;;  %v5990_v42 = vld [vmem:[%s10204_s2 + $0xa48] sm:$0xf]  ;;  %v2524_v41 = vadd.f32 %v2523_v32, %v2510_v21 }
 0x177   : > { %v6311_v43 = vor.u32 %v6832_v60, %v6310_v37  ;;  %v6788_v48 = vld [vmem:[%s10204_s2 + $0xb74] sm:$0xf0]  ;;  %v6390_v49 = vld [vmem:[%s10204_s2 + $0xd68] sm:$0xf]  ;;  %v6738_v37 = vld [vmem:[%s10204_s2 + $0x9ec] sm:$0xf]  ;;  %v1560_v60 = vadd.f32 %v8800_v34, %v8751_v9 }
 0x178   : > { %3700 = vmatpush.bf16.msra.mxu1 %v6355_v4  ;;  %v6752_v4 = vld [vmem:[%s10204_s2 + $0xa54] sm:$0xf0]  ;;  %v6391_v32 = vor.u32 %v6852_v39, %v6390_v49  ;;  %v6072_v39 = vld [vmem:[%s10204_s2 + $0xaf8] sm:$0xf0] }
 0x179   : > { %3710 = vmatpush.bf16.msra.mxu2 %v5911_v44  ;;  %v6166_v44 = vld [vmem:[%s10204_s2 + $0xba8] sm:$0xf]  ;;  %v5991_v1 = vor.u32 %v6752_v4, %v5990_v42  ;;  %v6820_v27 = vld [vmem:[%s10204_s2 + $0xc74] sm:$0xf0]  ;;  %v1574_v47 = vadd.f32 %v8846_v3, %v1560_v60 }
 0x17a   : > { %3724 = vmatpush.bf16.msra.mxu3 %v6039_v51  ;;  %3687 = vmatpush.bf16.msra.mxu0 %v6211_v63  ;;  %v5863_v51 = vor.u32 %v6720_v38, %v5862_v33  ;;  %v6167_v10 = vor.u32 %v6796_v46, %v6166_v44  ;;  %v1572_v63 = vadd.f32 %v8770_v54, %v8658_v0  ;;  %v6118_v33 = vld [vmem:[%s10204_s2 + $0xb48] sm:$0xf]  ;;  %v6784_v38 = vld [vmem:[%s10204_s2 + $0xb54] sm:$0xf0]  ;;  %v6734_v46 = vld [vmem:[%s10204_s2 + $0x9cc] sm:$0xf] }
 0x17b   : > { %v5975_v0 = vor.u32 %v6748_v23, %v5974_v28  ;;  %v6151_v54 = vor.u32 %v6792_v62, %v6150_v26  ;;  %v6246_v42 = vld [vmem:[%s10204_s2 + $0xc48] sm:$0xf]  ;;  %v6848_v4 = vld [vmem:[%s10204_s2 + $0xd54] sm:$0xf0]  ;;  %v1588_v7 = vadd.f32 %v8854_v16, %v1574_v47  ;;  %v6766_v47 = vld [vmem:[%s10204_s2 + $0xacc] sm:$0xf] }
 0x17c   : > { %3701 = vmatpush.bf16.msra.mxu1 %v6339_v2  ;;  %v2537_v61 = vpop.f32.mrf.mxu1  ;;  %v5830_v2 = vld [vmem:[%s10204_s2 + $0x908] sm:$0xf]  ;;  %v1586_v21 = vadd.f32 %v8781_v11, %v1572_v63  ;;  %v5944_v11 = vld [vmem:[%s10204_s2 + $0x9f8] sm:$0xf0]  ;;  %v6780_v28 = vld [vmem:[%s10204_s2 + $0xb34] sm:$0xf0] }
 0x17d   : > { %3711 = vmatpush.bf16.msra.mxu2 %v5895_v12  ;;  %3688 = vmatmul.bf16.vlgmr.msra.gmra.mxu0 %v9177_v19  ;;  %v9531_v50 = vadd.f32 %v2537_v61, %v2524_v41  ;;  %v6712_v12 = vld [vmem:[%s10204_s2 + $0x914] sm:$0xf0]  ;;  %v5947_v34 = vor.u32 %v6738_v37, %v5944_v11  ;;  %v6374_v41 = vld [vmem:[%s10204_s2 + $0xd48] sm:$0xf]  ;;  %v6730_v63 = vld [vmem:[%s10204_s2 + $0x9ac] sm:$0xf] }
 0x17e   : > { %3725 = vmatpush.bf16.msra.mxu3 %v6023_v18  ;;  %3736 = vmatpush.bf16.msrb.mxu0 %v6199_v45  ;;  %v5958_v18 = vld [vmem:[%s10204_s2 + $0xa08] sm:$0xf]  ;;  %v6744_v45 = vld [vmem:[%s10204_s2 + $0xa14] sm:$0xf0]  ;;  %v5831_v55 = vor.u32 %v6712_v12, %v5830_v2  ;;  %v1600_v9 = vadd.f32 %v8826_v59, %v1586_v21  ;;  %v5928_v59 = vld [vmem:[%s10204_s2 + $0x9d8] sm:$0xf0]  ;;  %v6375_v52 = vor.u32 %v6848_v4, %v6374_v41 }
 0x17f   : > { %6397 = vmatmul.msk.bf16.vlgmr.msra.gmra.mxu1 %vm1390_vm1, %v9293_v5  ;;  %v6230_v3 = vld [vmem:[%s10204_s2 + $0xc28] sm:$0xf]  ;;  %v6812_v23 = vld [vmem:[%s10204_s2 + $0xc34] sm:$0xf0]  ;;  %v5896_v21 = vld [vmem:[%s10204_s2 + $0x998] sm:$0xf0] }
 0x180   : > { %3750 = vmatpush.bf16.msrb.mxu1 %v6327_v14  ;;  %v6262_v14 = vld [vmem:[%s10204_s2 + $0xc68] sm:$0xf]  ;;  %v6844_v62 = vld [vmem:[%s10204_s2 + $0xd34] sm:$0xf0]  ;;  %v6722_v4 = vld [vmem:[%s10204_s2 + $0x96c] sm:$0xf] }
 0x181   : > { %3712 = vmatpush.bf16.msra.mxu2 %v5879_v22  ;;  %v5959_v22 = vor.u32 %v6744_v45, %v5958_v18  ;;  %v6358_v26 = vld [vmem:[%s10204_s2 + $0xd28] sm:$0xf]  ;;  %v6808_v16 = vld [vmem:[%s10204_s2 + $0xc14] sm:$0xf0] }
 0x182   : > { %3726 = vmatpush.bf16.msra.mxu3 %v6007_v25  ;;  %3737 = vmatpush.bf16.msrb.mxu0 %v6183_v30  ;;  %v6135_v25 = vor.u32 %v6788_v48, %v6134_v24  ;;  %v6263_v30 = vor.u32 %v6820_v27, %v6262_v14  ;;  %v6086_v2 = vld [vmem:[%s10204_s2 + $0xb08] sm:$0xf]  ;;  %v6359_v12 = vor.u32 %v6844_v62, %v6358_v26  ;;  %v6840_v48 = vld [vmem:[%s10204_s2 + $0xd14] sm:$0xf0]  ;;  %v6726_v14 = vld [vmem:[%s10204_s2 + $0x98c] sm:$0xf] }
 0x183   : > { %v2549_v44 = vpop.f32.mrf.mxu2  ;;  %v6214_v18 = vld [vmem:[%s10204_s2 + $0xc08] sm:$0xf]  ;;  %v5915_v24 = vor.u32 %v6730_v63, %v5912_v6  ;;  %v6762_v62 = vld [vmem:[%s10204_s2 + $0xaac] sm:$0xf]  ;;  %v6040_v63 = vld [vmem:[%s10204_s2 + $0xab8] sm:$0xf0] }
 0x184   : > { %3751 = vmatpush.bf16.msrb.mxu1 %v6311_v43  ;;  %v6816_v43 = vld [vmem:[%s10204_s2 + $0xc54] sm:$0xf0]  ;;  %v2550_v8 = vadd.f32 %v2549_v44, %v1600_v9  ;;  %v6342_v45 = vld [vmem:[%s10204_s2 + $0xd08] sm:$0xf]  ;;  %v5899_v9 = vor.u32 %v6726_v14, %v5896_v21  ;;  %v5880_v44 = vld [vmem:[%s10204_s2 + $0x978] sm:$0xf0] }
 0x185   : > { %3713 = vmatpush.bf16.msra.mxu2 %v5863_v51  ;;  %v6119_v51 = vor.u32 %v6784_v38, %v6118_v33  ;;  %v6215_v38 = vor.u32 %v6808_v16, %v6214_v18  ;;  %v6794_v6 = vld [vmem:[%s10204_s2 + $0xbac] sm:$0xf] }
 0x186   : > { %3727 = vmatpush.bf16.msra.mxu3 %v5991_v1  ;;  %3738 = vmatpush.bf16.msrb.mxu0 %v6167_v10  ;;  %v2563_v1 = vpop.f32.mrf.mxu3  ;;  %v6247_v10 = vor.u32 %v6816_v43, %v6246_v42  ;;  %v6343_v42 = vor.u32 %v6840_v48, %v6342_v45  ;;  %v5848_v48 = vld [vmem:[%s10204_s2 + $0x938] sm:$0xf0] }
 0x187   : > { %v2564_v61 = vadd.f32 %v2563_v1, %v2550_v8  ;;  %v6056_v8 = vld [vmem:[%s10204_s2 + $0xad8] sm:$0xf0] }
 0x188   : > { %3752 = vmatpush.bf16.msrb.mxu1 %v6295_v57  ;;  %v5931_v57 = vor.u32 %v6734_v46, %v5928_v59  ;;  %v6184_v1 = vld [vmem:[%s10204_s2 + $0xbd8] sm:$0xf0] }
 0x189   : > { %3714 = vmatpush.bf16.msra.mxu2 %v5847_v15  ;;  %v6103_v15 = vor.u32 %v6780_v28, %v6102_v29  ;;  %v5883_v29 = vor.u32 %v6722_v4, %v5880_v44  ;;  %v6059_v28 = vor.u32 %v6766_v47, %v6056_v8  ;;  %v6850_v4 = vld [vmem:[%s10204_s2 + $0xd6c] sm:$0xf]  ;;  %v6392_v44 = vld [vmem:[%s10204_s2 + $0xd78] sm:$0xf0] }
 0x18a   : > { %3728 = vmatpush.bf16.msra.mxu3 %v5975_v0  ;;  %3739 = vmatpush.bf16.msrb.mxu0 %v6151_v54  ;;  %v6776_v0 = vld [vmem:[%s10204_s2 + $0xb14] sm:$0xf0]  ;;  %v6231_v54 = vor.u32 %v6812_v23, %v6230_v3  ;;  %v2577_v27 = vpop.f32.mrf.mxu0  ;;  %v6718_v3 = vld [vmem:[%s10204_s2 + $0x94c] sm:$0xf] }
 0x18b   : > { %v2551_v49 = vpop.f32.mrf.mxu2  ;;  %v2578_v37 = vadd.f32 %v2577_v27, %v2564_v61  ;;  %v6087_v60 = vor.u32 %v6776_v0, %v6086_v2  ;;  %v6168_v2 = vld [vmem:[%s10204_s2 + $0xbb8] sm:$0xf0]  ;;  %v6826_v0 = vld [vmem:[%s10204_s2 + $0xcac] sm:$0xf] }
 0x18c   : > { %3753 = vmatpush.bf16.msrb.mxu1 %v6279_v13  ;;  %v1602_v13 = vadd.f32 %v8896_v53, %v1588_v7  ;;  %v6770_v53 = vld [vmem:[%s10204_s2 + $0xaec] sm:$0xf]  ;;  %v6171_v14 = vor.u32 %v6794_v6, %v6168_v2  ;;  %v5976_v2 = vld [vmem:[%s10204_s2 + $0xa38] sm:$0xf0] }
 0x18d   : > { %3715 = vmatpush.bf16.msra.mxu2 %v5831_v55  ;;  %v6802_v55 = vld [vmem:[%s10204_s2 + $0xbec] sm:$0xf]  ;;  %v6075_v43 = vor.u32 %v6770_v53, %v6072_v39  ;;  %v6152_v39 = vld [vmem:[%s10204_s2 + $0xb98] sm:$0xf0] }
 0x18e   : > { %3729 = vmatpush.bf16.msra.mxu3 %v5959_v22  ;;  %3740 = vmatpush.bf16.msrb.mxu0 %v6135_v25  ;;  %v2552_v11 = vadd.f32 %v2551_v49, %v1602_v13  ;;  %v2591_v22 = vpop.f32.mrf.mxu1  ;;  %v6200_v25 = vld [vmem:[%s10204_s2 + $0xbf8] sm:$0xf0]  ;;  %v2565_v33 = vpop.f32.mrf.mxu3  ;;  %v6043_v13 = vor.u32 %v6762_v62, %v6040_v63  ;;  %v6758_v27 = vld [vmem:[%s10204_s2 + $0xa8c] sm:$0xf] }
 0x18f   : > { %v6203_v46 = vor.u32 %v6802_v55, %v6200_v25  ;;  %v6024_v49 = vld [vmem:[%s10204_s2 + $0xa98] sm:$0xf0]  ;;  %v6790_v53 = vld [vmem:[%s10204_s2 + $0xb8c] sm:$0xf] }
 0x190   : > { %3754 = vmatpush.bf16.msrb.mxu1 %v6263_v30  ;;  %3716 = vmatmul.bf16.vlgmr.msra.gmra.mxu2 %v9165_v17  ;;  %v6834_v30 = vld [vmem:[%s10204_s2 + $0xcec] sm:$0xf]  ;;  %v2566_v41 = vadd.f32 %v2565_v33, %v2552_v11  ;;  %v5832_v25 = vld [vmem:[%s10204_s2 + $0x918] sm:$0xf0] }
 0x191   : > { %3768 = vmatpush.bf16.msrb.mxu2 %v6391_v32  ;;  %3730 = vmatmul.bf16.vlgmr.msra.gmra.mxu3 %v9180_v36  ;;  %v6328_v32 = vld [vmem:[%s10204_s2 + $0xcf8] sm:$0xf0]  ;;  %v6822_v55 = vld [vmem:[%s10204_s2 + $0xc8c] sm:$0xf] }
 0x192   : > { %3778 = vmatpush.bf16.msrb.mxu3 %v5947_v34  ;;  %3741 = vmatpush.bf16.msrb.mxu0 %v6119_v51  ;;  %v2592_v34 = vadd.f32 %v2591_v22, %v2578_v37  ;;  %v6331_v59 = vor.u32 %v6834_v30, %v6328_v32  ;;  %v6798_v51 = vld [vmem:[%s10204_s2 + $0xbcc] sm:$0xf]  ;;  %v2579_v26 = vpop.f32.mrf.mxu0  ;;  %v6280_v37 = vld [vmem:[%s10204_s2 + $0xc98] sm:$0xf0]  ;;  %v6155_v30 = vor.u32 %v6790_v53, %v6152_v39 }
 0x193   : > { %v6187_v61 = vor.u32 %v6798_v51, %v6184_v1  ;;  %v2580_v7 = vadd.f32 %v2579_v26, %v2566_v41  ;;  %v6710_v22 = vld [vmem:[%s10204_s2 + $0x90c] sm:$0xf]  ;;  %v6283_v32 = vor.u32 %v6822_v55, %v6280_v37  ;;  %v6088_v53 = vld [vmem:[%s10204_s2 + $0xb18] sm:$0xf0] }
 0x194   : > { %3755 = vmatpush.bf16.msrb.mxu1 %v6247_v10  ;;  %v6830_v10 = vld [vmem:[%s10204_s2 + $0xccc] sm:$0xf]  ;;  %v6216_v55 = vld [vmem:[%s10204_s2 + $0xc18] sm:$0xf0] }
 0x195   : > { %3769 = vmatpush.bf16.msrb.mxu2 %v6375_v52  ;;  %v6312_v52 = vld [vmem:[%s10204_s2 + $0xcd8] sm:$0xf0]  ;;  %v6754_v33 = vld [vmem:[%s10204_s2 + $0xa6c] sm:$0xf] }
 0x196   : > { %3779 = vmatpush.bf16.msrb.mxu3 %v5931_v57  ;;  %3742 = vmatpush.bf16.msrb.mxu0 %v6103_v15  ;;  %v5864_v57 = vld [vmem:[%s10204_s2 + $0x958] sm:$0xf0]  ;;  %v6315_v23 = vor.u32 %v6830_v10, %v6312_v52  ;;  %v2593_v15 = vpop.f32.mrf.mxu1  ;;  %v6750_v1 = vld [vmem:[%s10204_s2 + $0xa4c] sm:$0xf] }
 0x197   : > { %v5867_v18 = vor.u32 %v6718_v3, %v5864_v57  ;;  %v2594_v45 = vadd.f32 %v2593_v15, %v2580_v7  ;;  %v5992_v10 = vld [vmem:[%s10204_s2 + $0xa58] sm:$0xf0]  ;;  %v6782_v52 = vld [vmem:[%s10204_s2 + $0xb4c] sm:$0xf] }
 0x198   : > { %3756 = vmatpush.bf16.msrb.mxu1 %v6231_v54  ;;  %v6296_v54 = vld [vmem:[%s10204_s2 + $0xcb8] sm:$0xf0]  ;;  %v6814_v3 = vld [vmem:[%s10204_s2 + $0xc4c] sm:$0xf]  ;;  %v5995_v62 = vor.u32 %v6750_v1, %v5992_v10 }
 0x199   : > { %3770 = vmatpush.bf16.msrb.mxu2 %v6359_v12  ;;  %v2605_v12 = vpop.f32.mrf.mxu2  ;;  %v6299_v21 = vor.u32 %v6826_v0, %v6296_v54  ;;  %v6248_v57 = vld [vmem:[%s10204_s2 + $0xc58] sm:$0xf0]  ;;  %v6746_v15 = vld [vmem:[%s10204_s2 + $0xa2c] sm:$0xf] }
 0x19a   : > { %3780 = vmatpush.bf16.msrb.mxu3 %v5915_v24  ;;  %3743 = vmatpush.bf16.msrb.mxu0 %v6087_v60  ;;  %v9724_v16 = vadd.f32 %v2605_v12, %v2592_v34  ;;  %v6714_v24 = vld [vmem:[%s10204_s2 + $0x92c] sm:$0xf]  ;;  %v6027_v60 = vor.u32 %v6758_v27, %v6024_v49  ;;  %v6251_v7 = vor.u32 %v6814_v3, %v6248_v57 }
 0x19b   : > { %v5851_v11 = vor.u32 %v6714_v24, %v5848_v48  ;;  %v6818_v34 = vld [vmem:[%s10204_s2 + $0xc6c] sm:$0xf]  ;;  %v5979_v24 = vor.u32 %v6746_v15, %v5976_v2  ;;  %v3914_v2 = vld [vmem:[%s10206_s4 + $0x20] sm:$0xff] }
 0x19c   : > { %3757 = vmatpush.bf16.msrb.mxu1 %v6215_v38  ;;  %v6008_v38 = vld [vmem:[%s10204_s2 + $0xa78] sm:$0xf0]  ;;  %v6778_v0 = vld [vmem:[%s10204_s2 + $0xb2c] sm:$0xf] }
 0x19d   : > { %3771 = vmatpush.bf16.msrb.mxu2 %v6343_v42  ;;  %3744 = vmatmul.bf16.vlgmr.msrb.gmra.mxu0 %v9168_v35  ;;  %v6786_v42 = vld [vmem:[%s10204_s2 + $0xb6c] sm:$0xf]  ;;  %v6011_v47 = vor.u32 %v6754_v33, %v6008_v38 }
 0x19e   : > { %3781 = vmatpush.bf16.msrb.mxu3 %v5899_v9  ;;  %3792 = vmatpush.bf16.msra.mxu0 %v6075_v43  ;;  %v6136_v9 = vld [vmem:[%s10204_s2 + $0xb78] sm:$0xf0]  ;;  %v6810_v12 = vld [vmem:[%s10204_s2 + $0xc2c] sm:$0xf] }
 0x19f   : > { %3758 = vmatmul.bf16.vlgmr.msrb.gmra.mxu1 %v9177_v19  ;;  %v6264_v43 = vld [vmem:[%s10204_s2 + $0xc78] sm:$0xf0]  ;;  %v6139_v8 = vor.u32 %v6786_v42, %v6136_v9  ;;  %v6774_v27 = vld [vmem:[%s10204_s2 + $0xb0c] sm:$0xf] }
 0x1a0   : > { %3806 = vmatpush.bf16.msra.mxu1 %v6203_v46  ;;  %6398 = vmatmul.msk.bf16.vlgmr.msrb.gmra.mxu2 %vm1390_vm1, %v9293_v5  ;;  %v6267_v51 = vor.u32 %v6818_v34, %v6264_v43  ;;  %v6806_v39 = vld [vmem:[%s10204_s2 + $0xc0c] sm:$0xf]  ;;  %v6091_v38 = vor.u32 %v6774_v27, %v6088_v53  ;;  %v3940_v27 = vld [vmem:[%s10206_s4 + $0xf0] sm:$0xff] }
 0x1a1   : > { %3820 = vmatpush.bf16.msra.mxu2 %v6331_v59  ;;  %v2607_v41 = vpop.f32.mrf.mxu2  ;;  %v5835_v59 = vor.u32 %v6710_v22, %v5832_v25  ;;  %v6219_v42 = vor.u32 %v6806_v39, %v6216_v55  ;;  %v3919_v3 = vld [vmem:[%s10206_s4 + $0x48] sm:$0xff]  ;;  %v9928_v55 = vld [vmem:[%s10205_s3] sm:$0xf] }
 0x1a2   : > { %3782 = vmatpush.bf16.msrb.mxu3 %v5883_v29  ;;  %3793 = vmatpush.bf16.msra.mxu0 %v6059_v28  ;;  %v9782_v46 = vadd.f32 %v2607_v41, %v2594_v45  ;;  %v6395_v29 = vor.u32 %v6850_v4, %v6392_v44  ;;  %v6120_v28 = vld [vmem:[%s10204_s2 + $0xb58] sm:$0xf0]  ;;  %v6842_v45 = vld [vmem:[%s10204_s2 + $0xd2c] sm:$0xf] }
 0x1a3   : > { %v6123_v6 = vor.u32 %v6782_v52, %v6120_v28  ;;  %v3922_v52 = vld [vmem:[%s10206_s4 + $0x60] sm:$0xff]  ;;  %v3920_v28 = vld [vmem:[%s10206_s4 + $0x50] sm:$0xff]  ;;  %v3939_v39 = vld [vmem:[%s10206_s4 + $0xe8] sm:$0xff] }
 0x1a4   : > { %3807 = vmatpush.bf16.msra.mxu1 %v6187_v61  ;;  %v6846_v61 = vld [vmem:[%s10204_s2 + $0xd4c] sm:$0xf]  ;;  %v2619_v26 = vpop.f32.mrf.mxu3 }
 0x1a5   : > { %3821 = vmatpush.bf16.msra.mxu2 %v6315_v23  ;;  %v6376_v23 = vld [vmem:[%s10204_s2 + $0xd58] sm:$0xf0]  ;;  %v2620_v63 = vadd.f32 %v2619_v26, %v8982_v31 }
 0x1a6   : > { %3783 = vmatpush.bf16.msrb.mxu3 %v5867_v18  ;;  %3794 = vmatpush.bf16.msra.mxu0 %v6043_v13  ;;  %v6379_v54 = vor.u32 %v6846_v61, %v6376_v23  ;;  %v6104_v31 = vld [vmem:[%s10204_s2 + $0xb38] sm:$0xf0]  ;;  %v3918_v61 = vld [vmem:[%s10206_s4 + $0x40] sm:$0xff] }
 0x1a7   : > { %v6232_v18 = vld [vmem:[%s10204_s2 + $0xc38] sm:$0xf0]  ;;  %v6107_v48 = vor.u32 %v6778_v0, %v6104_v31 }
 0x1a8   : > { %3808 = vmatpush.bf16.msra.mxu1 %v6171_v14  ;;  %v6360_v13 = vld [vmem:[%s10204_s2 + $0xd38] sm:$0xf0]  ;;  %v6235_v14 = vor.u32 %v6810_v12, %v6232_v18  ;;  %v3912_v12 = vld [vmem:[%s10206_s4 + $0x10] sm:$0xff] }
 0x1a9   : > { %3822 = vmatpush.bf16.msra.mxu2 %v6299_v21  ;;  %v6742_v21 = vld [vmem:[%s10204_s2 + $0xa0c] sm:$0xf]  ;;  %v6363_v49 = vor.u32 %v6842_v45, %v6360_v13  ;;  %v3917_v26 = vld [vmem:[%s10206_s4 + $0x38] sm:$0xff] }
 0x1aa   : > { %3784 = vmatpush.bf16.msrb.mxu3 %v5851_v11  ;;  %3795 = vmatpush.bf16.msra.mxu0 %v6027_v60  ;;  %v2633_v37 = vpop.f32.mrf.mxu0  ;;  %v6838_v11 = vld [vmem:[%s10204_s2 + $0xd0c] sm:$0xf]  ;;  %v6344_v60 = vld [vmem:[%s10204_s2 + $0xd18] sm:$0xf0] }
 0x1ab   : > { %v2634_v22 = vadd.f32 %v2633_v37, %v2620_v63  ;;  %v6347_v34 = vor.u32 %v6838_v11, %v6344_v60  ;;  %v3911_v45 = vld [vmem:[%s10206_s4 + $0x8] sm:$0xff]  ;;  %v3938_v11 = vld [vmem:[%s10206_s4 + $0xe0] sm:$0xff] }
 0x1ac   : > { %3809 = vmatpush.bf16.msra.mxu1 %v6155_v30  ;;  %v2621_v25 = vpop.f32.mrf.mxu3 }
 0x1ad   : > { %3823 = vmatpush.bf16.msra.mxu2 %v6283_v32  ;;  %v2647_v32 = vpop.f32.mrf.mxu1  ;;  %v2622_v33 = vadd.f32 %v2621_v25, %v9034_v56 }
 0x1ae   : > { %3785 = vmatpush.bf16.msrb.mxu3 %v5835_v59  ;;  %3796 = vmatpush.bf16.msra.mxu0 %v6011_v47  ;;  %v2648_v9 = vadd.f32 %v2647_v32, %v2634_v22  ;;  %v3858_v22 = vperm.slane %v9928_v55, 0 }
 0x1b0   : > { %3810 = vmatpush.bf16.msra.mxu1 %v6139_v8 }
 0x1b1   : > { %3824 = vmatpush.bf16.msra.mxu2 %v6267_v51  ;;  %3786 = vmatmul.bf16.vlgmr.msrb.gmra.mxu3 %v9165_v17  ;;  %v5960_v17 = vld [vmem:[%s10204_s2 + $0xa18] sm:$0xf0] }
 0x1b2   : > { %3838 = vmatpush.bf16.msra.mxu3 %v6395_v29  ;;  %3797 = vmatpush.bf16.msra.mxu0 %v5995_v62  ;;  %v5963_v30 = vor.u32 %v6742_v21, %v5960_v17  ;;  %v2635_v4 = vpop.f32.mrf.mxu0  ;;  %v3921_v29 = vld [vmem:[%s10206_s4 + $0x58] sm:$0xff]  ;;  %v3916_v62 = vld [vmem:[%s10206_s4 + $0x30] sm:$0xff]  ;;  %v3910_v17 = vld [vmem:[%s10206_s4] sm:$0xff] }
 0x1b3   : > { %v2661_v43 = vpop.f32.mrf.mxu2  ;;  %v2636_v44 = vadd.f32 %v2635_v4, %v2622_v33 }
 0x1b4   : > { %3811 = vmatpush.bf16.msra.mxu1 %v6123_v6  ;;  %v2662_v41 = vadd.f32 %v2661_v43, %v2648_v9  ;;  %v2675_v59 = vpop.f32.mrf.mxu3  ;;  %v3915_v6 = vld [vmem:[%s10206_s4 + $0x28] sm:$0xff] }
 0x1b5   : > { %3825 = vmatpush.bf16.msra.mxu2 %v6251_v7  ;;  %v2649_v56 = vpop.f32.mrf.mxu1 }
 0x1b6   : > { %3839 = vmatpush.bf16.msra.mxu3 %v6379_v54  ;;  %3798 = vmatpush.bf16.msra.mxu0 %v5979_v24  ;;  %v2650_v47 = vadd.f32 %v2649_v56, %v2636_v44  ;;  %v9864_v8 = vadd.f32 %v2675_v59, %v2662_v41  ;;  %v3913_v54 = vld [vmem:[%s10206_s4 + $0x18] sm:$0xff]  ;;  %v3934_v41 = vld [vmem:[%s10206_s4 + $0xc0] sm:$0xff]  ;;  %v3932_v59 = vld [vmem:[%s10206_s4 + $0xb0] sm:$0xff] }
 0x1b8   : > { %3812 = vmatpush.bf16.msra.mxu1 %v6107_v48  ;;  %v3941_v48 = vld [vmem:[%s10206_s4 + $0xf8] sm:$0xff] }
 0x1b9   : > { %3826 = vmatpush.bf16.msra.mxu2 %v6235_v14 }
 0x1ba   : > { %3840 = vmatpush.bf16.msra.mxu3 %v6363_v49  ;;  %3799 = vmatpush.bf16.msra.mxu0 %v5963_v30  ;;  %v3937_v30 = vld [vmem:[%s10206_s4 + $0xd8] sm:$0xff] }
 0x1bb   : > { %v2663_v51 = vpop.f32.mrf.mxu2 }
 0x1bc   : > { %3813 = vmatpush.bf16.msra.mxu1 %v6091_v38  ;;  %v2664_v1 = vadd.f32 %v2663_v51, %v2650_v47  ;;  %v2677_v10 = vpop.f32.mrf.mxu3  ;;  %v3936_v38 = vld [vmem:[%s10206_s4 + $0xd0] sm:$0xff]  ;;  %v3931_v51 = vld [vmem:[%s10206_s4 + $0xa8] sm:$0xff] }
 0x1bd   : > { %3827 = vmatpush.bf16.msra.mxu2 %v6219_v42  ;;  %3800 = vmatmul.bf16.vlgmr.msra.gmra.mxu0 %v9180_v36  ;;  %v3925_v36 = vld [vmem:[%s10206_s4 + $0x78] sm:$0xff] }
 0x1be   : > { %3841 = vmatpush.bf16.msra.mxu3 %v6347_v34  ;;  %3974 = vmatpush.msrb.mxu0 %v3925_v36 }
 0x1bf   : > { %3814 = vmatmul.bf16.vlgmr.msra.gmra.mxu1 %v9168_v35  ;;  %v3924_v35 = vld [vmem:[%s10206_s4 + $0x70] sm:$0xff] }
 0x1c0   : > { %3828 = vmatmul.bf16.vlgmr.msra.gmra.mxu2 %v9177_v19  ;;  %v9872_v19 = vadd.f32 %v2677_v10, %v2664_v1  ;;  %3975 = vmatpush.msrb.mxu0 %v3924_v35 }
 0x1c1   : > { %6399 = vmatmul.msk.bf16.vlgmr.msra.gmra.mxu3 %vm1390_vm1, %v9293_v5  ;;  %v3923_v5 = vld [vmem:[%s10206_s4 + $0x68] sm:$0xff]  ;;  %3994 = vmatpush.msrb.mxu1 %v3941_v48 }
 0x1c2   : > { %3976 = vmatpush.msrb.mxu0 %v3923_v5  ;;  %v3930_v5 = vld [vmem:[%s10206_s4 + $0xa0] sm:$0xff] }
 0x1c3   : > { %3995 = vmatpush.msrb.mxu1 %v3940_v27 }
 0x1c4   : > { %3977 = vmatpush.msrb.mxu0 %v3922_v52 }
 0x1c5   : > { %3996 = vmatpush.msrb.mxu1 %v3939_v39 }
 0x1c6   : > { %3978 = vmatpush.msrb.mxu0 %v3921_v29 }
 0x1c7   : > { %3997 = vmatpush.msrb.mxu1 %v3938_v11  ;;  %v3952_v11 = vld [vmem:[%s10206_s4 + $0x150] sm:$0xff] }
 0x1c8   : > { %3979 = vmatpush.msrb.mxu0 %v3920_v28  ;;  %v3929_v28 = vld [vmem:[%s10206_s4 + $0x98] sm:$0xff] }
 0x1c9   : > { %3998 = vmatpush.msrb.mxu1 %v3937_v30  ;;  %v3950_v30 = vld [vmem:[%s10206_s4 + $0x140] sm:$0xff] }
 0x1ca   : > { %v3577_v57 = vpop.f32.mrf.mxu0  ;;  %3980 = vmatpush.msrb.mxu0 %v3919_v3 }
 0x1cb   : > { %3999 = vmatpush.msrb.mxu1 %v3936_v38  ;;  %v3949_v38 = vld [vmem:[%s10206_s4 + $0x138] sm:$0xff] }
 0x1cc   : > { %3981 = vmatpush.msrb.mxu0 %v3918_v61  ;;  %v3591_v23 = vpop.f32.mrf.mxu1 }
 0x1cd   : > { %v3592_v7 = vadd.f32 %v3591_v23, %v3577_v57  ;;  %v3928_v57 = vld [vmem:[%s10206_s4 + $0x90] sm:$0xff] }
 0x1ce   : > { %3982 = vmatpush.msrb.mxu0 %v3917_v26 }
 0x1d0   : > { %3983 = vmatpush.msrb.mxu0 %v3916_v62  ;;  %v3927_v62 = vld [vmem:[%s10206_s4 + $0x88] sm:$0xff] }
 0x1d2   : > { %v3579_v15 = vpop.f32.mrf.mxu0  ;;  %3984 = vmatpush.msrb.mxu0 %v3915_v6  ;;  %v3926_v6 = vld [vmem:[%s10206_s4 + $0x80] sm:$0xff] }
 0x1d3   : > { %v3605_v63 = vpop.f32.mrf.mxu2 }
 0x1d4   : > { %3985 = vmatpush.msrb.mxu0 %v3914_v2  ;;  %v3619_v0 = vpop.f32.mrf.mxu3  ;;  %v3606_v31 = vadd.f32 %v3605_v63, %v3592_v7  ;;  %v3593_v18 = vpop.f32.mrf.mxu1 }
 0x1d5   : > { %v3594_v24 = vadd.f32 %v3593_v18, %v3579_v15 }
 0x1d6   : > { %3986 = vmatpush.msrb.mxu0 %v3913_v54  ;;  %v3620_v13 = vadd.f32 %v3619_v0, %v3606_v31 }
 0x1d8   : > { %3987 = vmatpush.msrb.mxu0 %v3912_v12 }
 0x1da   : > { %3988 = vmatpush.msrb.mxu0 %v3911_v45  ;;  %v3633_v21 = vpop.f32.mrf.mxu0  ;;  %v3957_v45 = vld [vmem:[%s10206_s4 + $0x178] sm:$0xff] }
 0x1db   : > { %v3607_v14 = vpop.f32.mrf.mxu2  ;;  %v3634_v53 = vadd.f32 %v3633_v21, %v3620_v13  ;;  %4014 = vmatpush.msrb.mxu2 %v3957_v45  ;;  %v3955_v21 = vld [vmem:[%s10206_s4 + $0x168] sm:$0xff]  ;;  %v3860_v45 = vperm.slane %v9928_v55, 2 }
 0x1dc   : > { %3989 = vmatpush.msrb.mxu0 %v3910_v17  ;;  %v3608_v49 = vadd.f32 %v3607_v14, %v3594_v24  ;;  %v3621_v37 = vpop.f32.mrf.mxu3  ;;  %v3956_v24 = vld [vmem:[%s10206_s4 + $0x170] sm:$0xff]  ;;  %v3859_v14 = vperm.slane %v9928_v55, 1 }
 0x1dd   : > { %v3848_v60 = vadd.f32 %v3634_v53, %v9255_v40  ;;  %v3935_v40 = vld [vmem:[%s10206_s4 + $0xc8] sm:$0xff]  ;;  %4015 = vmatpush.msrb.mxu2 %v3956_v24 }
 0x1de   : > { %v3622_v25 = vadd.f32 %v3621_v37, %v3608_v49  ;;  %4000 = vmatpush.msrb.mxu1 %v3935_v40  ;;  %v3954_v49 = vld [vmem:[%s10206_s4 + $0x160] sm:$0xff]  ;;  %v3948_v40 = vld [vmem:[%s10206_s4 + $0x130] sm:$0xff] }
 0x1df   : > { %v9941_v42 = vadd.f32 %v3858_v22, %v3848_v60  ;;  %4016 = vmatpush.msrb.mxu2 %v3955_v21  ;;  %v3966_v21 = vld [vmem:[%s10206_s4 + $0x1c0] sm:$0xff] }
 0x1e0   : > { %4001 = vmatpush.msrb.mxu1 %v3934_v41  ;;  %v3947_v41 = vld [vmem:[%s10206_s4 + $0x128] sm:$0xff] }
 0x1e1   : > { %v3874_v4 = vmax.f32 %v9941_v42, 0.0  ;;  %4017 = vmatpush.msrb.mxu2 %v3954_v49 }
 0x1e2   : > { %v3635_v32 = vpop.f32.mrf.mxu0 }
 0x1e3   : > { %v3636_v33 = vadd.f32 %v3635_v32, %v3622_v25 }
 0x1e5   : > { %v3852_v9 = vadd.f32 %v3636_v33, %v9312_v58  ;;  %v3933_v58 = vld [vmem:[%s10206_s4 + $0xb8] sm:$0xff] }
 0x1e6   : > { %4002 = vmatpush.msrb.mxu1 %v3933_v58 }
 0x1e7   : > { %v9947_v34 = vadd.f32 %v3858_v22, %v3852_v9 }
 0x1e8   : > { %4003 = vmatpush.msrb.mxu1 %v3932_v59  ;;  %v3946_v59 = vld [vmem:[%s10206_s4 + $0x120] sm:$0xff] }
 0x1e9   : > { %v3878_v44 = vmax.f32 %v9947_v34, 0.0 }
 0x1ea   : > { %4004 = vmatpush.msrb.mxu1 %v3931_v51 }
 0x1eb   : > { %v3882_v56 = vadd.f32 %v3878_v44, %v3874_v4 }
 0x1ec   : > { %v3647_v43 = vpop.f32.mrf.mxu1  ;;  %4005 = vmatpush.msrb.mxu1 %v3930_v5  ;;  %v3944_v5 = vld [vmem:[%s10206_s4 + $0x110] sm:$0xff] }
 0x1ed   : > { %v3883_v47 = vrot.slane %v3882_v56, 4 }
 0x1ee   : > { %4006 = vmatpush.msrb.mxu1 %v3929_v28  ;;  %v3943_v28 = vld [vmem:[%s10206_s4 + $0x108] sm:$0xff] }
 0x1ef   : > { %v3884_v10 = vadd.f32 %v3883_v47, %v3882_v56 }
 0x1f0   : > { %4007 = vmatpush.msrb.mxu1 %v3928_v57  ;;  %v3942_v57 = vld [vmem:[%s10206_s4 + $0x100] sm:$0xff] }
 0x1f1   : > { %v3885_v29 = vrot.slane %v3884_v10, 2 }
 0x1f2   : > { %4008 = vmatpush.msrb.mxu1 %v3927_v62 }
 0x1f3   : > { %v3661_v1 = vpop.f32.mrf.mxu2  ;;  %v3886_v3 = vadd.f32 %v3885_v29, %v3884_v10  ;;  %v3945_v10 = vld [vmem:[%s10206_s4 + $0x118] sm:$0xff] }
 0x1f4   : > { %v3675_v36 = vpop.f32.mrf.mxu3  ;;  %v3649_v35 = vpop.f32.mrf.mxu1  ;;  %v3662_v52 = vadd.f32 %v3661_v1, %v3647_v43  ;;  %4009 = vmatpush.msrb.mxu1 %v3926_v6  ;;  %v3971_v6 = vld [vmem:[%s10206_s4 + $0x1e8] sm:$0xff] }
 0x1f5   : > { %v3887_v26 = vrot.slane %v3886_v3, 1 }
 0x1f6   : > { %v3676_v61 = vadd.f32 %v3675_v36, %v3662_v52 }
 0x1f7   : > { %v3888_v2 = vadd.f32 %v3887_v26, %v3886_v3  ;;  %v3973_v3 = vld [vmem:[%s10206_s4 + $0x1f8] sm:$0xff] }
 0x1f8   : > { %4034 = vmatpush.msrb.mxu3 %v3973_v3 }
 0x1f9   : > { %3990 = vmatmul.f32.vlgmr.msrb.gmra.mxu0 %v3888_v2 }
 0x1fa   : > { %v3689_v23 = vpop.f32.mrf.mxu0 }
 0x1fb   : > { %v3663_v63 = vpop.f32.mrf.mxu2  ;;  %v3690_v0 = vadd.f32 %v3689_v23, %v3676_v61  ;;  %v3972_v23 = vld [vmem:[%s10206_s4 + $0x1f0] sm:$0xff] }
 0x1fc   : > { %v3664_v7 = vadd.f32 %v3663_v63, %v3649_v35  ;;  %v3677_v15 = vpop.f32.mrf.mxu3  ;;  %v3703_v54 = vpop.f32.mrf.mxu1  ;;  %4035 = vmatpush.msrb.mxu3 %v3972_v23 }
 0x1fd   : > { %v3704_v12 = vadd.f32 %v3703_v54, %v3690_v0 }
 0x1fe   : > { %v3678_v31 = vadd.f32 %v3677_v15, %v3664_v7  ;;  %4036 = vmatpush.msrb.mxu3 %v3971_v6  ;;  %v3970_v15 = vld [vmem:[%s10206_s4 + $0x1e0] sm:$0xff] }
 0x1ff   : > { %v3849_v48 = vadd.f32 %v3704_v12, %v9476_v20  ;;  %v3953_v20 = vld [vmem:[%s10206_s4 + $0x158] sm:$0xff]  ;;  %v3968_v12 = vld [vmem:[%s10206_s4 + $0x1d0] sm:$0xff] }
 0x200   : > { %4018 = vmatpush.msrb.mxu2 %v3953_v20  ;;  %4037 = vmatpush.msrb.mxu3 %v3970_v15  ;;  %v3964_v20 = vld [vmem:[%s10206_s4 + $0x1b0] sm:$0xff] }
 0x201   : > { %v9996_v53 = vadd.f32 %v3859_v14, %v3849_v48  ;;  %v3967_v48 = vld [vmem:[%s10206_s4 + $0x1c8] sm:$0xff] }
 0x202   : > { %v3691_v18 = vpop.f32.mrf.mxu0  ;;  %4019 = vmatpush.msrb.mxu2 %v3952_v11 }
 0x203   : > { %v3692_v13 = vadd.f32 %v3691_v18, %v3678_v31  ;;  %v3875_v60 = vmax.f32 %v9996_v53, 0.0  ;;  %v3969_v31 = vld [vmem:[%s10206_s4 + $0x1d8] sm:$0xff] }
 0x204   : > { %v3705_v17 = vpop.f32.mrf.mxu1  ;;  %4038 = vmatpush.msrb.mxu3 %v3969_v31 }
 0x205   : > { %v3706_v27 = vadd.f32 %v3705_v17, %v3692_v13 }
 0x206   : > { %4039 = vmatpush.msrb.mxu3 %v3968_v12 }
 0x207   : > { %v3853_v39 = vadd.f32 %v3706_v27, %v9531_v50  ;;  %v3951_v50 = vld [vmem:[%s10206_s4 + $0x148] sm:$0xff] }
 0x208   : > { %4020 = vmatpush.msrb.mxu2 %v3951_v50  ;;  %4040 = vmatpush.msrb.mxu3 %v3967_v48 }
 0x209   : > { %v10002_v37 = vadd.f32 %v3859_v14, %v3853_v39 }
 0x20a   : > { %4021 = vmatpush.msrb.mxu2 %v3950_v30  ;;  %4041 = vmatpush.msrb.mxu3 %v3966_v21  ;;  %v3962_v30 = vld [vmem:[%s10206_s4 + $0x1a0] sm:$0xff] }
 0x20b   : > { %v3879_v22 = vmax.f32 %v10002_v37, 0.0 }
 0x20c   : > { %4022 = vmatpush.msrb.mxu2 %v3949_v38  ;;  %v3961_v38 = vld [vmem:[%s10206_s4 + $0x198] sm:$0xff] }
 0x20d   : > { %v3889_v25 = vadd.f32 %v3879_v22, %v3875_v60 }
 0x20e   : > { %4023 = vmatpush.msrb.mxu2 %v3948_v40 }
 0x20f   : > { %v3890_v33 = vrot.slane %v3889_v25, 4 }
 0x210   : > { %4024 = vmatpush.msrb.mxu2 %v3947_v41 }
 0x211   : > { %v3891_v9 = vadd.f32 %v3890_v33, %v3889_v25 }
 0x212   : > { %4025 = vmatpush.msrb.mxu2 %v3946_v59  ;;  %v3959_v59 = vld [vmem:[%s10206_s4 + $0x188] sm:$0xff] }
 0x213   : > { %v3717_v32 = vpop.f32.mrf.mxu2  ;;  %v3892_v43 = vrot.slane %v3891_v9, 2 }
 0x214   : > { %v3731_v58 = vpop.f32.mrf.mxu3  ;;  %4026 = vmatpush.msrb.mxu2 %v3945_v10 }
 0x215   : > { %v3893_v56 = vadd.f32 %v3892_v43, %v3891_v9  ;;  %v3732_v36 = vadd.f32 %v3731_v58, %v3717_v32  ;;  %v3960_v58 = vld [vmem:[%s10206_s4 + $0x190] sm:$0xff] }
 0x216   : > { %4027 = vmatpush.msrb.mxu2 %v3944_v5 }
 0x217   : > { %v3894_v1 = vrot.slane %v3893_v56, 1 }
 0x218   : > { %4028 = vmatpush.msrb.mxu2 %v3943_v28 }
 0x219   : > { %v3895_v35 = vadd.f32 %v3894_v1, %v3893_v56 }
 0x21a   : > { %v3745_v47 = vpop.f32.mrf.mxu0  ;;  %4029 = vmatpush.msrb.mxu2 %v3942_v57 }
 0x21b   : > { %v3719_v51 = vpop.f32.mrf.mxu2  ;;  %v3746_v29 = vadd.f32 %v3745_v47, %v3732_v36  ;;  %4010 = vmatmul.f32.vlgmr.msrb.gmra.mxu1 %v3895_v35  ;;  %v3958_v47 = vld [vmem:[%s10206_s4 + $0x180] sm:$0xff] }
 0x21c   : > { %v3759_v52 = vpop.f32.mrf.mxu1  ;;  %v3733_v61 = vpop.f32.mrf.mxu3 }
 0x21d   : > { %v3760_v26 = vadd.f32 %v3759_v52, %v3746_v29  ;;  %v3734_v7 = vadd.f32 %v3733_v61, %v3719_v51 }
 0x222   : > { %v3747_v62 = vpop.f32.mrf.mxu0 }
 0x223   : > { %v3773_v63 = vpop.f32.mrf.mxu2  ;;  %v3748_v2 = vadd.f32 %v3747_v62, %v3734_v7 }
 0x224   : > { %v3774_v0 = vadd.f32 %v3773_v63, %v3760_v26  ;;  %v3761_v54 = vpop.f32.mrf.mxu1  ;;  %v3861_v63 = vperm.slane %v9928_v55, 3 }
 0x225   : > { %v3762_v13 = vadd.f32 %v3761_v54, %v3748_v2 }
 0x226   : > { %v3850_v18 = vadd.f32 %v3774_v0, %v9724_v16  ;;  %v3965_v16 = vld [vmem:[%s10206_s4 + $0x1b8] sm:$0xff] }
 0x227   : > { %4042 = vmatpush.msrb.mxu3 %v3965_v16 }
 0x228   : > { %v10069_v17 = vadd.f32 %v3860_v45, %v3850_v18 }
 0x229   : > { %4043 = vmatpush.msrb.mxu3 %v3964_v20 }
 0x22a   : > { %v3876_v11 = vmax.f32 %v10069_v17, 0.0 }
 0x22b   : > { %v3775_v24 = vpop.f32.mrf.mxu2 }
 0x22c   : > { %v3776_v14 = vadd.f32 %v3775_v24, %v3762_v13 }
 0x22e   : > { %v3854_v27 = vadd.f32 %v3776_v14, %v9782_v46  ;;  %v3963_v46 = vld [vmem:[%s10206_s4 + $0x1a8] sm:$0xff] }
 0x22f   : > { %4044 = vmatpush.msrb.mxu3 %v3963_v46 }
 0x230   : > { %v10075_v49 = vadd.f32 %v3860_v45, %v3854_v27 }
 0x231   : > { %4045 = vmatpush.msrb.mxu3 %v3962_v30 }
 0x232   : > { %v3880_v50 = vmax.f32 %v10075_v49, 0.0 }
 0x233   : > { %4046 = vmatpush.msrb.mxu3 %v3961_v38 }
 0x234   : > { %v3787_v39 = vpop.f32.mrf.mxu3  ;;  %v3896_v25 = vadd.f32 %v3880_v50, %v3876_v11 }
 0x235   : > { %4047 = vmatpush.msrb.mxu3 %v3960_v58 }
 0x236   : > { %v3897_v32 = vrot.slane %v3896_v25, 4 }
 0x237   : > { %4048 = vmatpush.msrb.mxu3 %v3959_v59 }
 0x238   : > { %v3898_v9 = vadd.f32 %v3897_v32, %v3896_v25 }
 0x239   : > { %4049 = vmatpush.msrb.mxu3 %v3958_v47 }
 0x23a   : > { %v3801_v33 = vpop.f32.mrf.mxu0  ;;  %v3899_v56 = vrot.slane %v3898_v9, 2 }
 0x23b   : > { %v3802_v43 = vadd.f32 %v3801_v33, %v3787_v39 }
 0x23c   : > { %v3789_v40 = vpop.f32.mrf.mxu3  ;;  %v3815_v41 = vpop.f32.mrf.mxu1  ;;  %v3900_v51 = vadd.f32 %v3899_v56, %v3898_v9 }
 0x23d   : > { %v3816_v1 = vadd.f32 %v3815_v41, %v3802_v43 }
 0x23e   : > { %v3901_v10 = vrot.slane %v3900_v51, 1 }
 0x240   : > { %v3902_v28 = vadd.f32 %v3901_v10, %v3900_v51 }
 0x242   : > { %v3803_v35 = vpop.f32.mrf.mxu0  ;;  %4030 = vmatmul.f32.vlgmr.msrb.gmra.mxu2 %v3902_v28 }
 0x243   : > { %v3829_v36 = vpop.f32.mrf.mxu2  ;;  %v3804_v52 = vadd.f32 %v3803_v35, %v3789_v40 }
 0x244   : > { %v3830_v5 = vadd.f32 %v3829_v36, %v3816_v1  ;;  %v3843_v29 = vpop.f32.mrf.mxu3  ;;  %v3817_v3 = vpop.f32.mrf.mxu1 }
 0x245   : > { %v3818_v61 = vadd.f32 %v3817_v3, %v3804_v52 }
 0x246   : > { %v3844_v57 = vadd.f32 %v3843_v29, %v3830_v5 }
 0x248   : > { %v3851_v62 = vadd.f32 %v3844_v57, %v9864_v8 }
 0x24a   : > { %v10106_v15 = vadd.f32 %v3861_v63, %v3851_v62 }
 0x24b   : > { %v3831_v23 = vpop.f32.mrf.mxu2 }
 0x24c   : > { %v3832_v26 = vadd.f32 %v3831_v23, %v3818_v61  ;;  %v3845_v6 = vpop.f32.mrf.mxu3  ;;  %v3877_v54 = vmax.f32 %v10106_v15, 0.0 }
 0x24e   : > { %v3846_v7 = vadd.f32 %v3845_v6, %v3832_v26 }
 0x250   : > { %v3855_v2 = vadd.f32 %v3846_v7, %v9872_v19  ;;  %v4055_v19 = vld [vmem:[%s10207_s5] sm:$0xff] }
 0x251   : > { %4057 = vst [vmem:[#allocation1] ss:$4 sm:$0xff] %v4055_v19 }
 0x252   : > { %v10109_v0 = vadd.f32 %v3861_v63, %v3855_v2 }
 0x254   : > { %v3881_v31 = vmax.f32 %v10109_v0, 0.0 }
 0x256   : > { %v3903_v12 = vadd.f32 %v3881_v31, %v3877_v54 }
 0x258   : > { %v3904_v8 = vrot.slane %v3903_v12, 4  ;;  %v4060_v48 = vld.sshfl [vmem:[#allocation1 + $0x10] sm:$0xff pattern:$0x73625140] }
 0x259   : > { %v4061_v14 = vld.sshfl [vmem:[#allocation1 + $0x18] sm:$0xff pattern:$0x73625140]  ;;  %6404 = vmatpush.msk.msra.mxu2 %vm4066_vm3, %v4060_v48  ;;  %v4058_v21 = vld.sshfl [vmem:[#allocation1] sm:$0xff pattern:$0x73625140] }
 0x25a   : > { %v3905_v18 = vadd.f32 %v3904_v8, %v3903_v12  ;;  %6406 = vmatpush.msk.msra.mxu3 %vm4066_vm3, %v4061_v14  ;;  %v4059_v27 = vld.sshfl [vmem:[#allocation1 + $0x8] sm:$0xff pattern:$0x73625140]  ;;  %6400 = vmatpush.msk.msra.mxu0 %vm4066_vm3, %v4058_v21 }
 0x25b   : > { %6402 = vmatpush.msk.msra.mxu1 %vm4066_vm3, %v4059_v27 }
 0x25c   : > { %v3906_v55 = vrot.slane %v3905_v18, 2 }
 0x25e   : > { %v3907_v45 = vadd.f32 %v3906_v55, %v3905_v18 }
 0x260   : > { %v3908_v13 = vrot.slane %v3907_v45, 1 }
 0x262   : > { %v3909_v24 = vadd.f32 %v3908_v13, %v3907_v45 }
 0x264   : > { %4050 = vmatmul.f32.vlgmr.msrb.gmra.mxu3 %v3909_v24 }
 0x276   : > { %v3991_v39 = vpop.f32.mrf.mxu0 }
 0x298   : > { %v4011_v16 = vpop.f32.mrf.mxu1 }
 0x299   : > { %v4012_v46 = vadd.f32 %v4011_v16, %v3991_v39 }
 0x2c5   : > { %v4031_v20 = vpop.f32.mrf.mxu2 }
 0x2c6   : > { %v4032_v25 = vadd.f32 %v4031_v20, %v4012_v46 }
 0x2e7   : > { %v4051_v30 = vpop.f32.mrf.mxu3 }
 0x2e8   : > { %v4052_v32 = vadd.f32 %v4051_v30, %v4032_v25 }
 0x2ea   : > { %v4054_v33 = vmax.f32 %v4052_v32, 0.0  ;;  %v4243_v32 = vld [vmem:[%s10134_s18] sm:$0xff] }
 0x2ec   : > { %6401 = vmatmul.msk.f32.vlgmr.msra.gmra.mxu0 %vm4062_vm4, %v4054_v33  ;;  %6403 = vmatmul.msk.f32.vlgmr.msra.gmra.mxu1 %vm4062_vm4, %v4054_v33 }
 0x2ed   : > { %6405 = vmatmul.msk.f32.vlgmr.msra.gmra.mxu2 %vm4062_vm4, %v4054_v33  ;;  %6407 = vmatmul.msk.f32.vlgmr.msra.gmra.mxu3 %vm4062_vm4, %v4054_v33  ;;  %v4247_v33 = vld [vmem:[%s10134_s18 + $0x20] sm:$0xff] }
 0x369   : > { %v4092_v38 = vpop.f32.mrf.mxu0  ;;  %v4112_v9 = vpop.f32.mrf.mxu1 }
 0x36a   : > { %v6408_v40 = vmul.f32 -1.442695, %v4092_v38  ;;  %v6409_v43 = vmul.f32 -1.442695, %v4112_v9 }
 0x36c   : > { %6862 = vpow2.f32 %v6408_v40 }
 0x36d   : > { %6864 = vpow2.f32 %v6409_v43 }
 0x370   : > { %v4132_v41 = vpop.f32.mrf.mxu2  ;;  %v4152_v58 = vpop.f32.mrf.mxu3 }
 0x371   : > { %v6410_v56 = vmul.f32 -1.442695, %v4132_v41  ;;  %v6411_v59 = vmul.f32 -1.442695, %v4152_v58  ;;  %v4244_v58 = vld [vmem:[%s10134_s18 + $0x8] sm:$0xff] }
 0x372   : > { %v6863_v47 = vpop.eup %6862 }
 0x373   : > { %v6865_v51 = vpop.eup %6864  ;;  %v4167_v1 = vadd.f32 1.0, %v6863_v47  ;;  %6866 = vpow2.f32 %v6410_v56  ;;  %v4248_v56 = vld [vmem:[%s10134_s18 + $0x28] sm:$0xff] }
 0x374   : > { %v4168_v36 = vadd.f32 1.0, %v6865_v51  ;;  %6868 = vpow2.f32 %v6411_v59 }
 0x375   : > { %6870 = vrcp.f32 %v4167_v1  ;;  %v4180_v23 = vand.u32 2147483647, %v4167_v1  ;;  %v4182_v26 = vand.u32 2147483648, %v4167_v1  ;;  %vm4176_vm6 = vweird.f32 %v4167_v1 }
 0x376   : > { %6872 = vrcp.f32 %v4168_v36  ;;  %v4195_v63 = vand.u32 2147483647, %v4168_v36  ;;  %v4197_v6 = vand.u32 2147483648, %v4168_v36  ;;  %vm4191_vm7 = vweird.f32 %v4168_v36 }
 0x377   : > { %vm4181_vm9 = vcmp.eq.f32.partialorder %v4180_v23, 8.507059e+37  ;;  %v4183_v18 = vor.u32 1.1754944e-38, %v4182_v26  ;;  %v4245_v23 = vld [vmem:[%s10134_s18 + $0x10] sm:$0xff] }
 0x378   : > { %vm4196_vm11 = vcmp.eq.f32.partialorder %v4195_v63, 8.507059e+37  ;;  %v4198_v13 = vor.u32 1.1754944e-38, %v4197_v6  ;;  %v4249_v26 = vld [vmem:[%s10134_s18 + $0x30] sm:$0xff] }
 0x379   : > { %v6867_v10 = vpop.eup %6866 }
 0x37a   : > { %v6869_v35 = vpop.eup %6868  ;;  %v10120_v5 = vadd.f32 1.0, %v6867_v10 }
 0x37b   : > { %v6871_v52 = vpop.eup %6870  ;;  %v10122_v29 = vadd.f32 1.0, %v6869_v35 }
 0x37c   : > { %v6873_v28 = vpop.eup %6872  ;;  %v4172_v3 = vmul.f32 %v6871_v52, %v4167_v1  ;;  %6874 = vrcp.f32 %v10120_v5  ;;  %vm4177_vm5 = vweird.f32 %v6871_v52  ;;  %v4210_v55 = vand.u32 2147483647, %v10120_v5 }
 0x37d   : > { %v4187_v57 = vmul.f32 %v6873_v28, %v4168_v36  ;;  %6876 = vrcp.f32 %v10122_v29  ;;  %vm4192_vm8 = vweird.f32 %v6873_v28  ;;  %vm4178_vm10 = vmor %vm4176_vm6, %vm4177_vm5  ;;  %vm4206_vm13 = vweird.f32 %v10120_v5 }
 0x37e   : > { %v4173_v61 = vsub.f32 1.0, %v4172_v3  ;;  %vm4193_vm12 = vmor %vm4191_vm7, %vm4192_vm8  ;;  %v4212_v14 = vand.u32 2147483648, %v10120_v5  ;;  %vm4221_vm14 = vweird.f32 %v10122_v29  ;;  %vm10141_vm15 = vcmp.eq.f32.partialorder %v4210_v55, 8.507059e+37 }
 0x37f   : > { %v4188_v62 = vsub.f32 1.0, %v4187_v57  ;;  %v4225_v30 = vand.u32 2147483647, %v10122_v29  ;;  %v4227_v59 = vand.u32 2147483648, %v10122_v29 }
 0x380   : > { %v4174_v7 = vmul.f32 %v6871_v52, %v4173_v61  ;;  %v4213_v34 = vor.u32 1.1754944e-38, %v4212_v14 }
 0x381   : > { %v4189_v2 = vmul.f32 %v6873_v28, %v4188_v62  ;;  %vm10161_vm3 = vcmp.eq.f32.partialorder %v4225_v30, 8.507059e+37 }
 0x382   : > { %v6875_v12 = vpop.eup %6874  ;;  %v4175_v8 = vadd.f32 %v6871_v52, %v4174_v7  ;;  %v4246_v7 = vld [vmem:[%s10134_s18 + $0x18] sm:$0xff] }
 0x383   : > { %v4190_v45 = vadd.f32 %v6873_v28, %v4189_v2  ;;  %v4202_v24 = vmul.f32 %v6875_v12, %v10120_v5  ;;  %v6877_v19 = vpop.eup %6876  ;;  %vm4207_vm0 = vweird.f32 %v6875_v12  ;;  %v4250_v2 = vld [vmem:[%s10134_s18 + $0x38] sm:$0xff] }
 0x384   : > { %v4179_v48 = vsel %vm4178_vm10, %v6871_v52, %v4175_v8  ;;  %v4217_v39 = vmul.f32 %v6877_v19, %v10122_v29  ;;  %vm4222_vm1 = vweird.f32 %v6877_v19  ;;  %vm4208_vm2 = vmor %vm4206_vm13, %vm4207_vm0  ;;  %v4228_v52 = vor.u32 1.1754944e-38, %v4227_v59 }
 0x385   : > { %v4184_v21 = vsel %vm4181_vm9, %v4183_v18, %v4179_v48  ;;  %v4194_v27 = vsel %vm4193_vm12, %v6873_v28, %v4190_v45  ;;  %v4203_v16 = vsub.f32 1.0, %v4202_v24  ;;  %vm4223_vm4 = vmor %vm4221_vm14, %vm4222_vm1 }
 0x386   : > { %v4231_v20 = vperm.slane %v4184_v21, 0  ;;  %v4199_v46 = vsel %vm4196_vm11, %v4198_v13, %v4194_v27  ;;  %v4218_v40 = vsub.f32 1.0, %v4217_v39 }
 0x387   : > { %v4232_v38 = vperm.slane %v4199_v46, 0  ;;  %v4204_v9 = vmul.f32 %v6875_v12, %v4203_v16 }
 0x388   : > { %v4235_v43 = vmul.f32 %v4231_v20, %v3874_v4  ;;  %v4239_v41 = vmul.f32 %v4231_v20, %v3878_v44  ;;  %v4219_v36 = vmul.f32 %v6877_v19, %v4218_v40 }
 0x389   : > { %v4236_v47 = vmul.f32 %v4232_v38, %v3875_v60  ;;  %v4240_v51 = vmul.f32 %v4232_v38, %v3879_v22  ;;  %v4205_v1 = vadd.f32 %v6875_v12, %v4204_v9 }
 0x38a   : > { %v4251_v10 = vadd.f32 %v4243_v32, %v4235_v43  ;;  %v4255_v42 = vadd.f32 %v4247_v33, %v4239_v41  ;;  %v4220_v60 = vadd.f32 %v6877_v19, %v4219_v36 }
 0x38b   : > { %v4252_v44 = vadd.f32 %v4244_v58, %v4236_v47  ;;  %v4256_v53 = vadd.f32 %v4248_v56, %v4240_v51  ;;  %v4209_v37 = vsel %vm4208_vm2, %v6875_v12, %v4205_v1 }
 0x38c   : > { %v4259_v22 = vmax.f32 %v4251_v10, 0.0  ;;  %v4263_v35 = vmax.f32 %v4255_v42, 0.0  ;;  %v4214_v5 = vsel %vm10141_vm15, %v4213_v34, %v4209_v37  ;;  %v4224_v61 = vsel %vm4223_vm4, %v6877_v19, %v4220_v60 }
 0x38d   : > { %v4260_v28 = vmax.f32 %v4252_v44, 0.0  ;;  %v4264_v3 = vmax.f32 %v4256_v53, 0.0  ;;  %v4233_v57 = vperm.slane %v4214_v5, 0  ;;  %v4229_v62 = vsel %vm10161_vm3, %v4228_v52, %v4224_v61 }
 0x38e   : > { %4267 = vst [vmem:[%s10170_s24] sm:$0xff] %v4259_v22  ;;  %v4234_v6 = vperm.slane %v4229_v62, 0 }
 0x38f   : > { %4271 = vst [vmem:[%s10170_s24 + $0x20] sm:$0xff] %v4263_v35  ;;  %v4237_v29 = vmul.f32 %v4233_v57, %v3876_v11  ;;  %v4241_v63 = vmul.f32 %v4233_v57, %v3880_v50 }
 0x390   : > { %4268 = vst [vmem:[%s10170_s24 + $0x8] sm:$0xff] %v4260_v28  ;;  %v4238_v18 = vmul.f32 %v4234_v6, %v3877_v54  ;;  %v4242_v17 = vmul.f32 %v4234_v6, %v3881_v31 }
 0x391   : > { %4272 = vst [vmem:[%s10170_s24 + $0x28] sm:$0xff] %v4264_v3  ;;  %v4253_v12 = vadd.f32 %v4245_v23, %v4237_v29  ;;  %v4257_v8 = vadd.f32 %v4249_v26, %v4241_v63 }
 0x392   : > { %v4254_v49 = vadd.f32 %v4246_v7, %v4238_v18  ;;  %v4258_v50 = vadd.f32 %v4250_v2, %v4242_v17 }
 0x393   : > { %v4261_v11 = vmax.f32 %v4253_v12, 0.0  ;;  %v4265_v55 = vmax.f32 %v4257_v8, 0.0 }
 0x394   : > { %v4262_v45 = vmax.f32 %v4254_v49, 0.0  ;;  %v4266_v13 = vmax.f32 %v4258_v50, 0.0 }
 0x395   : > { %4269 = vst [vmem:[%s10170_s24 + $0x10] sm:$0xff] %v4261_v11 }
 0x396   : > { %4273 = vst [vmem:[%s10170_s24 + $0x30] sm:$0xff] %v4265_v55 }
 0x397   : > { %4270 = vst [vmem:[%s10170_s24 + $0x18] sm:$0xff] %v4262_v45 }
 0x398   : > { %4274 = vst [vmem:[%s10170_s24 + $0x38] sm:$0xff] %v4266_v13 }
 0x399 PF: > { %s16_s21 = sadd.s32 1, %s6884_s21  }
 0x39a   : > { %p13_p4 = scmp.ge.s32.totalorder %s16_s21, 4  }
 0x39c   :  { %15 = sbr.rel (!%p13_p4) target bundleno = 1 (0x1), region = 79 }

</bundles_post_ra>
